<compile_context>
chip_gen: v5e
topology: v5e:2x2
jax: 0.10.0
libtpu: 0.0.40
codegen_flags: <defaults>
</compile_context>

<pallas_src>
import functools

import jax
import jax.numpy as jnp
from jax.experimental import pallas as pl
from jax.experimental.pallas import tpu as pltpu

BN_EPS = 1e-5   # cfg.bn.eps default
LANE = 128      # TPU lane width


def _round_up(x, m):
    return ((x + m - 1) // m) * m


def _pick_row_tile(n_pad, target=512):
    """Largest multiple-of-8 divisor of n_pad that is <= target and leaves >= 2 grid
    steps on the parallel row axis (so both v7x TensorCores get work)."""
    cap = min(target, max(n_pad // 2, 8))
    t = max((cap // 8) * 8, 8)
    while n_pad % t != 0:
        t -= 8
    return max(t, 8)


def _vmem_limit_bytes():
    """Per-generation VMEM budget: ~75% of physical (96 MiB v5e/v6e, 48 MiB v7x)."""
    try:
        cap = int(pltpu.get_tpu_info().vmem_capacity_bytes)
    except Exception:
        cap = 64 * 1024 * 1024
    return min(max(int(cap * 0.75), 32 * 1024 * 1024), 100 * 1024 * 1024)


# ----------------------------------------------------------------------------
# Fused per-hop Pallas kernel: propagate + feature matmul + bias/BN + ReLU
# ----------------------------------------------------------------------------
def _hop_kernel(a_ref, t_ref, w_ref, scale_ref, shift_ref, slab_ref, *out_refs,
                n_real, tm, emit_t):
    """One row tile of hop p for one MixHop layer.

      T_p[tile]   = A_hat[tile, :] @ T_{p-1}                (bf16 MXU, f32 acc)
      slab[tile, p-slice] = ReLU( (T_p[tile] @ W_p) * scale + shift )   (pad rows -> 0)
      (T_p[tile] also written out in bf16 for the next hop, except on the last hop)

    T_{p-1}, W_p, scale, shift use constant index maps -> DMA'd once per call.
    `slab_ref` is the aliased output buffer (never read here); the hop's lane slice is
    written through the blocked output spec only, so other hops' slices are preserved.
    """
    del slab_ref
    if emit_t:
        t_out_ref, y_ref = out_refs
    else:
        (y_ref,) = out_refs

    # Propagation: (tm, n_pad) @ (n_pad, f_in) -> f32, then bf16 for the MXU epilogue.
    t_new = jnp.dot(a_ref[...], t_ref[...], preferred_element_type=jnp.float32)
    t_bf16 = t_new.astype(jnp.bfloat16)
    if emit_t:
        t_out_ref[...] = t_bf16

    # DenseNGCNLayer feature transform + folded bias + BatchNorm(eval) + ReLU.
    h = jnp.dot(t_bf16, w_ref[...], preferred_element_type=jnp.float32)
    y = jnp.maximum(h * scale_ref[...] + shift_ref[...], 0.0)

    # Zero padded rows so the padded slab never carries ReLU(shift) garbage.
    row = pl.program_id(0) * tm + jax.lax.broadcasted_iota(jnp.int32, y.shape, 0)
    y = jnp.where(row < n_real, y, 0.0)
    y_ref[...] = y.astype(y_ref.dtype)


def mixhop_hop(a_hat, t_prev, w_p, scale_p, shift_p, slab, *,
               hop_idx, tm, n_real, emit_t, vmem_limit):
    """Fused hop: returns (T_p, slab) if emit_t else slab (slab is aliased/donated)."""
    n_pad = a_hat.shape[0]
    f_in = t_prev.shape[1]
    f_out = w_p.shape[1]
    c_pad = slab.shape[1]

    # Rough per-call VMEM footprint (double-buffered streams + resident blocks, bf16).
    est = (2 * tm * n_pad + 2 * n_pad * f_in + 2 * f_in * f_out
           + 2 * tm * f_in + 2 * tm * f_out) * 2
    if est > vmem_limit:
        # TODO(synk): K-tiled propagate + block-sparse A path for graphs where the
        # resident-H plan does not fit VMEM.
        raise ValueError("resident-H tile plan exceeds the VMEM budget for this graph")

    kernel = functools.partial(_hop_kernel, n_real=n_real, tm=tm, emit_t=emit_t)

    in_specs = [
        pl.BlockSpec((tm, n_pad), lambda i: (i, 0)),     # A_hat row panel (streamed)
        pl.BlockSpec((n_pad, f_in), lambda i: (0, 0)),   # T_{p-1} resident (1 DMA/call)
        pl.BlockSpec((f_in, f_out), lambda i: (0, 0)),   # W_p resident
        pl.BlockSpec((1, f_out), lambda i: (0, 0)),      # folded BN scale
        pl.BlockSpec((1, f_out), lambda i: (0, 0)),      # folded bias+BN shift
        pl.BlockSpec(memory_space=pl.ANY),               # slab (aliased output donor)
    ]
    y_spec = pl.BlockSpec((tm, f_out), lambda i, p=hop_idx: (i, p))

    if emit_t:
        out_shape = (jax.ShapeDtypeStruct((n_pad, f_in), jnp.bfloat16),
                     jax.ShapeDtypeStruct((n_pad, c_pad), jnp.bfloat16))
        out_specs = (pl.BlockSpec((tm, f_in), lambda i: (i, 0)), y_spec)
        aliases = {5: 1}
    else:
        out_shape = jax.ShapeDtypeStruct((n_pad, c_pad), jnp.bfloat16)
        out_specs = y_spec
        aliases = {5: 0}

    flops = 2 * n_pad * n_pad * f_in + 2 * n_pad * f_in * f_out
    bytes_accessed = 2 * (n_pad * n_pad + n_pad * f_in + f_in * f_out
                          + n_pad * f_out + (n_pad * f_in if emit_t else 0))

    return pl.pallas_call(
        kernel,
        out_shape=out_shape,
        grid_spec=pltpu.PrefetchScalarGridSpec(
            num_scalar_prefetch=0,
            grid=(n_pad // tm,),
            in_specs=in_specs,
            out_specs=out_specs,
        ),
        input_output_aliases=aliases,
        compiler_params=pltpu.CompilerParams(
            dimension_semantics=("parallel",),
            vmem_limit_bytes=vmem_limit,
        ),
        cost_estimate=pl.CostEstimate(flops=flops, transcendentals=0,
                                      bytes_accessed=bytes_accessed),
    )(a_hat, t_prev, w_p, scale_p, shift_p, slab)


# ----------------------------------------------------------------------------
# Plain-JAX glue: adjacency normalization, parameters, padding, forward driver
# ----------------------------------------------------------------------------
def build_normalized_adj(edge_index, num_nodes):
    """Dense GCN-normalized adjacency with self loops (get_normalized_adj).

    Self loops are added "remaining-style" (diagonal clamped to 1), matching
    torch_geometric's add_remaining_self_loops / gcn_norm behaviour.
    """
    # TODO(synk): real LRGB graphs should use block-sparse A tiles driven by
    # PrefetchScalarGridSpec (skip empty tiles); dense (N,N) A is used here.
    src, dst = edge_index[0], edge_index[1]
    A = jnp.zeros((num_nodes, num_nodes), jnp.float32)
    A = A.at[src, dst].set(1.0)
    A = jnp.maximum(A, A.T)                              # symmetrize
    eye = jnp.eye(num_nodes, dtype=jnp.float32)
    A = A * (1.0 - eye) + eye                            # add (remaining) self loops
    deg = jnp.sum(A, axis=1)
    d_inv_sqrt = jax.lax.rsqrt(deg)
    return A * d_inv_sqrt[:, None] * d_inv_sqrt[None, :]


def init_params(key, dim_raw, dim_inner, max_p, layers_mp, dim_out):
    """Logical (unpadded) parameters mirroring the PyTorch module in eval mode."""
    params = {}
    k = key

    def nxt():
        nonlocal k
        k, sub = jax.random.split(k)
        return sub

    params["enc_w"] = 0.1 * jax.random.normal(nxt(), (dim_raw, dim_inner), jnp.float32)
    params["enc_b"] = jnp.zeros((1, dim_inner), jnp.float32)

    params["mp_layers"] = []
    f_in = dim_inner
    c = max_p * dim_inner
    for _ in range(layers_mp):
        layer = {
            "w": 0.1 * jax.random.normal(nxt(), (max_p, f_in, dim_inner), jnp.float32),
            "b": 0.01 * jax.random.normal(nxt(), (max_p, dim_inner), jnp.float32),
            # BatchNorm1d(sum(layers)) params, PyTorch defaults for running stats
            "gamma": jnp.ones((c,), jnp.float32),
            "beta": jnp.zeros((c,), jnp.float32),
            "mean": jnp.zeros((c,), jnp.float32),
            "var": jnp.ones((c,), jnp.float32),
        }
        params["mp_layers"].append(layer)
        f_in = c                                         # sum(cfg.mixhop_args.layers)

    # post_mp head (layers_post_mp == 1 => head_dim_in = sum(layers))
    # TODO(synk): task-specific GNNHead (graph pooling etc.) not reproduced; per-node linear head used.
    params["head_w"] = 0.1 * jax.random.normal(nxt(), (f_in, dim_out), jnp.float32)
    params["head_b"] = jnp.zeros((1, dim_out), jnp.float32)
    return params


def prepare_params(params, dim_inner, max_p):
    """Pad feature dims to 128 lanes, fold bias+BN into per-hop scale/shift, cast MXU
    weights to bf16.  Padded channels carry exact zeros so results are unchanged."""
    fo_pad = _round_up(dim_inner, LANE)
    prepared = {}

    prepared["enc_w"] = jnp.pad(params["enc_w"], ((0, 0), (0, fo_pad - dim_inner)))
    prepared["enc_b"] = jnp.pad(params["enc_b"], ((0, 0), (0, fo_pad - dim_inner)))

    layers = []
    in_blocks = 1                      # layer-1 input is a single (dim_inner) block
    for lp in params["mp_layers"]:
        w = lp["w"]                                            # (P, in_blocks*dim_inner, dim_inner)
        n_hops = w.shape[0]
        w_emb = w.reshape(n_hops, in_blocks, dim_inner, dim_inner)
        w_emb = jnp.pad(w_emb, ((0, 0), (0, 0),
                                (0, fo_pad - dim_inner),
                                (0, fo_pad - dim_inner)))
        w_emb = w_emb.reshape(n_hops, in_blocks * fo_pad, fo_pad).astype(jnp.bfloat16)

        # Fold bias + BatchNorm(eval):  BN(H + b) = H*scale + (beta + (b - mean)*scale)
        scale_l = lp["gamma"] * jax.lax.rsqrt(lp["var"] + BN_EPS)          # (P*dim_inner,)
        shift_l = lp["beta"] + (lp["b"].reshape(-1) - lp["mean"]) * scale_l

        def _embed_vec(v):
            v = v.reshape(n_hops, 1, dim_inner)
            return jnp.pad(v, ((0, 0), (0, 0), (0, fo_pad - dim_inner)))   # (P, 1, fo_pad)

        layers.append({"w": w_emb,
                       "scale": _embed_vec(scale_l),
                       "shift": _embed_vec(shift_l)})
        in_blocks = n_hops
    prepared["mp_layers"] = layers

    # Head: embed rows to match the padded channel layout of the last layer's output.
    hw = params["head_w"].reshape(max_p, dim_inner, -1)
    hw = jnp.pad(hw, ((0, 0), (0, fo_pad - dim_inner), (0, 0)))
    prepared["head_w"] = hw.reshape(max_p * fo_pad, -1)
    prepared["head_b"] = params["head_b"]
    return prepared


def mixhop_gcn_forward(x_raw, a_hat_pad, prepared, *, max_p, n_real, tm, vmem_limit):
    n_pad = a_hat_pad.shape[0]
    fo_pad = prepared["enc_w"].shape[1]
    c_pad = max_p * fo_pad

    # Encoder + pre_mp (Identity) — tiny matmul, left to XLA (scheduled around the
    # custom calls thanks to the attached CostEstimates + whole-forward jit).
    x0 = jnp.dot(x_raw, prepared["enc_w"]) + prepared["enc_b"]     # (N, fo_pad) f32
    x = jnp.pad(x0, ((0, n_pad - n_real), (0, 0))).astype(jnp.bfloat16)

    # MixHop message-passing layers: per hop, fused propagate+transform kernel writes
    # its 128-aligned lane slice of the layer slab (aliased buffer, no concatenate).
    # TODO(synk): "shrinking slab" association for layers >= 2 (MXU-bound v5e/v7x).
    for layer in prepared["mp_layers"]:
        slab = jnp.zeros((n_pad, c_pad), jnp.bfloat16)
        t = x
        for p in range(max_p):
            emit_t = (p + 1 < max_p)                 # last hop's T_P never touches HBM
            res = mixhop_hop(a_hat_pad, t, layer["w"][p],
                             layer["scale"][p], layer["shift"][p], slab,
                             hop_idx=p, tm=tm, n_real=n_real,
                             emit_t=emit_t, vmem_limit=vmem_limit)
            if emit_t:
                t, slab = res
            else:
                slab = res
        x = slab

    # post_mp head (per-node linear; see TODO above) — tiny matmul, left to XLA.
    out = jnp.dot(x.astype(jnp.float32), prepared["head_w"]) + prepared["head_b"]
    return out[:n_real]


if __name__ == "__main__":
    # Small, deterministic synthetic graph.
    N = 64            # nodes
    DIM_RAW = 16      # raw node feature dim
    DIM_INNER = 32    # cfg.gnn.dim_inner
    MAX_P = 3         # cfg.mixhop_args.max_P
    LAYERS_MP = 2     # cfg.gnn.layers_mp
    DIM_OUT = 8
    NUM_EDGES = 256

    key = jax.random.PRNGKey(0)
    k_x, k_e, k_p = jax.random.split(key, 3)

    x_raw = jax.random.normal(k_x, (N, DIM_RAW), jnp.float32)
    edge_index = jax.random.randint(k_e, (2, NUM_EDGES), 0, N, dtype=jnp.int32)

    a_hat = build_normalized_adj(edge_index, N)                      # (N, N) f32
    n_pad = _round_up(N, LANE)
    # TODO(synk): int8 (v5e/v6e) / fp8-e4m3 (v7x) A_hat compression with per-row scales
    # would halve the dominant HBM stream; kept bf16 to preserve reference numerics.
    a_hat_pad = jnp.pad(a_hat, ((0, n_pad - N), (0, n_pad - N))).astype(jnp.bfloat16)

    tm = _pick_row_tile(n_pad)              # >= 2 grid steps on the parallel row axis
    vmem_limit = _vmem_limit_bytes()        # ~96 MiB v5e/v6e, ~48 MiB v7x

    params = init_params(k_p, DIM_RAW, DIM_INNER, MAX_P, LAYERS_MP, DIM_OUT)
    prepared = prepare_params(params, DIM_INNER, MAX_P)

    fwd = jax.jit(functools.partial(mixhop_gcn_forward, max_p=MAX_P, n_real=N,
                                    tm=tm, vmem_limit=vmem_limit))
    out = fwd(x_raw, a_hat_pad, prepared)
    out = jax.block_until_ready(out)
    assert out.shape == (N, DIM_OUT) and out.dtype == jnp.float32
    print("KERNEL_OK")
</pallas_src>

<mosaic_0001>
module attributes {stable_mosaic.version = 11 : i64} {
  func.func @_hop_kernel(%arg0: i32, %arg1: memref<64x128xbf16, #tpu.memory_space<vmem>>, %arg2: memref<128x128xbf16, #tpu.memory_space<vmem>>, %arg3: memref<128x128xbf16, #tpu.memory_space<vmem>>, %arg4: memref<1x128xf32, #tpu.memory_space<vmem>>, %arg5: memref<1x128xf32, #tpu.memory_space<vmem>>, %arg6: memref<128x384xbf16, #tpu.memory_space<any>>, %arg7: memref<64x128xbf16, #tpu.memory_space<vmem>>, %arg8: memref<64x128xbf16, #tpu.memory_space<vmem>>) attributes {dimension_semantics = [#tpu.dimension_semantics<parallel>], iteration_bounds = array<i64: 2>, scalar_prefetch = 0 : i64, scratch_operands = 0 : i64, tpu.core_type = #tpu.core_type<tc>, window_params = [{transform_indices = @transform_0, window_bounds = array<i64: 64, 128>}, {pipeline_mode = #tpu.pipeline_mode<synchronous>, transform_indices = @transform_1, window_bounds = array<i64: 128, 128>}, {pipeline_mode = #tpu.pipeline_mode<synchronous>, transform_indices = @transform_2, window_bounds = array<i64: 128, 128>}, {pipeline_mode = #tpu.pipeline_mode<synchronous>, transform_indices = @transform_3, window_bounds = array<i64: 1, 128>}, {pipeline_mode = #tpu.pipeline_mode<synchronous>, transform_indices = @transform_4, window_bounds = array<i64: 1, 128>}, {}, {transform_indices = @transform_6, window_bounds = array<i64: 64, 128>}, {transform_indices = @transform_7, window_bounds = array<i64: 64, 128>}]} {
    %c0 = arith.constant 0 : index
    %c0_0 = arith.constant 0 : index
    %0 = vector.load %arg1[%c0, %c0_0] : memref<64x128xbf16, #tpu.memory_space<vmem>>, vector<64x128xbf16>
    %c0_1 = arith.constant 0 : index
    %c0_2 = arith.constant 0 : index
    %1 = vector.load %arg2[%c0_1, %c0_2] : memref<128x128xbf16, #tpu.memory_space<vmem>>, vector<128x128xbf16>
    %cst = arith.constant dense<0.000000e+00> : vector<64x128xf32>
    %2 = tpu.matmul %0, %1, %cst {dimension_numbers = #tpu.dot_dimension_numbers<[1], [0], [0], [1], [0, 0, 1, 1], [], []>} : vector<64x128xbf16>, vector<128x128xbf16>, vector<64x128xf32> -> vector<64x128xf32>
    %3 = arith.truncf %2 : vector<64x128xf32> to vector<64x128xbf16>
    %c0_3 = arith.constant 0 : index
    %c0_4 = arith.constant 0 : index
    %4 = vector.load %arg7[%c0_3, %c0_4] : memref<64x128xbf16, #tpu.memory_space<vmem>>, vector<64x128xbf16>
    tpu.vector_store %arg7[%c0_3, %c0_4], %3 {strides = array<i32>} : memref<64x128xbf16, #tpu.memory_space<vmem>>, vector<64x128xbf16>,
    %c0_5 = arith.constant 0 : index
    %c0_6 = arith.constant 0 : index
    %5 = vector.load %arg3[%c0_5, %c0_6] : memref<128x128xbf16, #tpu.memory_space<vmem>>, vector<128x128xbf16>
    %cst_7 = arith.constant dense<0.000000e+00> : vector<64x128xf32>
    %6 = tpu.matmul %3, %5, %cst_7 {dimension_numbers = #tpu.dot_dimension_numbers<[1], [0], [0], [1], [0, 0, 1, 1], [], []>} : vector<64x128xbf16>, vector<128x128xbf16>, vector<64x128xf32> -> vector<64x128xf32>
    %c0_8 = arith.constant 0 : index
    %c0_9 = arith.constant 0 : index
    %7 = vector.load %arg4[%c0_8, %c0_9] : memref<1x128xf32, #tpu.memory_space<vmem>>, vector<1x128xf32>
    %8 = vector.broadcast %7 : vector<1x128xf32> to vector<64x128xf32>
    %9 = arith.mulf %6, %8 : vector<64x128xf32>
    %c0_10 = arith.constant 0 : index
    %c0_11 = arith.constant 0 : index
    %10 = vector.load %arg5[%c0_10, %c0_11] : memref<1x128xf32, #tpu.memory_space<vmem>>, vector<1x128xf32>
    %11 = vector.broadcast %10 : vector<1x128xf32> to vector<64x128xf32>
    %12 = arith.addf %9, %11 : vector<64x128xf32>
    %cst_12 = arith.constant 0.000000e+00 : f32
    %13 = vector.broadcast %cst_12 : f32 to vector<64x128xf32>
    %14 = arith.maximumf %12, %13 : vector<64x128xf32>
    %c64_i32 = arith.constant 64 : i32
    %15 = arith.muli %arg0, %c64_i32 : i32
    %16 = tpu.iota {dimensions = array<i32: 0>} : vector<64x128xi32>
    %17 = vector.broadcast %15 : i32 to vector<64x128xi32>
    %18 = arith.addi %17, %16 : vector<64x128xi32>
    %c64_i32_13 = arith.constant 64 : i32
    %19 = vector.broadcast %c64_i32_13 : i32 to vector<64x128xi32>
    %20 = arith.cmpi slt, %18, %19 : vector<64x128xi32>
    %cst_14 = arith.constant 0.000000e+00 : f32
    %21 = vector.broadcast %cst_14 : f32 to vector<64x128xf32>
    %22 = arith.select %20, %14, %21 : vector<64x128xi1>, vector<64x128xf32>
    %23 = arith.truncf %22 : vector<64x128xf32> to vector<64x128xbf16>
    %c0_15 = arith.constant 0 : index
    %c0_16 = arith.constant 0 : index
    %24 = vector.load %arg8[%c0_15, %c0_16] : memref<64x128xbf16, #tpu.memory_space<vmem>>, vector<64x128xbf16>
    tpu.vector_store %arg8[%c0_15, %c0_16], %23 {strides = array<i32>} : memref<64x128xbf16, #tpu.memory_space<vmem>>, vector<64x128xbf16>,
    return
  }
  func.func @transform_0(%arg0: i32) -> (i32, i32) {
    %c0_i32 = arith.constant 0 : i32
    %c0_i32_0 = arith.constant 0 : i32
    return %arg0, %c0_i32 : i32, i32
  }
  func.func @transform_1(%arg0: i32) -> (i32, i32) {
    %c0_i32 = arith.constant 0 : i32
    %c0_i32_0 = arith.constant 0 : i32
    %c0_i32_1 = arith.constant 0 : i32
    return %c0_i32, %c0_i32_0 : i32, i32
  }
  func.func @transform_2(%arg0: i32) -> (i32, i32) {
    %c0_i32 = arith.constant 0 : i32
    %c0_i32_0 = arith.constant 0 : i32
    %c0_i32_1 = arith.constant 0 : i32
    return %c0_i32, %c0_i32_0 : i32, i32
  }
  func.func @transform_3(%arg0: i32) -> (i32, i32) {
    %c0_i32 = arith.constant 0 : i32
    %c0_i32_0 = arith.constant 0 : i32
    %c0_i32_1 = arith.constant 0 : i32
    return %c0_i32, %c0_i32_0 : i32, i32
  }
  func.func @transform_4(%arg0: i32) -> (i32, i32) {
    %c0_i32 = arith.constant 0 : i32
    %c0_i32_0 = arith.constant 0 : i32
    %c0_i32_1 = arith.constant 0 : i32
    return %c0_i32, %c0_i32_0 : i32, i32
  }
  func.func @transform_6(%arg0: i32) -> (i32, i32) {
    %c0_i32 = arith.constant 0 : i32
    %c0_i32_0 = arith.constant 0 : i32
    return %arg0, %c0_i32 : i32, i32
  }
  func.func @transform_7(%arg0: i32) -> (i32, i32) {
    %c0_i32 = arith.constant 0 : i32
    %c0_i32_0 = arith.constant 0 : i32
    return %arg0, %c0_i32 : i32, i32
  }
}

module attributes {stable_mosaic.version = 11 : i64} {
  func.func @_hop_kernel(%arg0: i32, %arg1: memref<64x128xbf16, #tpu.memory_space<vmem>>, %arg2: memref<128x128xbf16, #tpu.memory_space<vmem>>, %arg3: memref<128x128xbf16, #tpu.memory_space<vmem>>, %arg4: memref<1x128xf32, #tpu.memory_space<vmem>>, %arg5: memref<1x128xf32, #tpu.memory_space<vmem>>, %arg6: memref<128x384xbf16, #tpu.memory_space<any>>, %arg7: memref<64x128xbf16, #tpu.memory_space<vmem>>, %arg8: memref<64x128xbf16, #tpu.memory_space<vmem>>) attributes {dimension_semantics = [#tpu.dimension_semantics<parallel>], iteration_bounds = array<i64: 2>, scalar_prefetch = 0 : i64, scratch_operands = 0 : i64, tpu.core_type = #tpu.core_type<tc>, window_params = [{transform_indices = @transform_0, window_bounds = array<i64: 64, 128>}, {pipeline_mode = #tpu.pipeline_mode<synchronous>, transform_indices = @transform_1, window_bounds = array<i64: 128, 128>}, {pipeline_mode = #tpu.pipeline_mode<synchronous>, transform_indices = @transform_2, window_bounds = array<i64: 128, 128>}, {pipeline_mode = #tpu.pipeline_mode<synchronous>, transform_indices = @transform_3, window_bounds = array<i64: 1, 128>}, {pipeline_mode = #tpu.pipeline_mode<synchronous>, transform_indices = @transform_4, window_bounds = array<i64: 1, 128>}, {}, {transform_indices = @transform_6, window_bounds = array<i64: 64, 128>}, {transform_indices = @transform_7, window_bounds = array<i64: 64, 128>}]} {
    %c0 = arith.constant 0 : index
    %c0_0 = arith.constant 0 : index
    %0 = vector.load %arg1[%c0, %c0_0] : memref<64x128xbf16, #tpu.memory_space<vmem>>, vector<64x128xbf16>
    %c0_1 = arith.constant 0 : index
    %c0_2 = arith.constant 0 : index
    %1 = vector.load %arg2[%c0_1, %c0_2] : memref<128x128xbf16, #tpu.memory_space<vmem>>, vector<128x128xbf16>
    %cst = arith.constant dense<0.000000e+00> : vector<64x128xf32>
    %2 = tpu.matmul %0, %1, %cst {dimension_numbers = #tpu.dot_dimension_numbers<[1], [0], [0], [1], [0, 0, 1, 1], [], []>} : vector<64x128xbf16>, vector<128x128xbf16>, vector<64x128xf32> -> vector<64x128xf32>
    %3 = arith.truncf %2 : vector<64x128xf32> to vector<64x128xbf16>
    %c0_3 = arith.constant 0 : index
    %c0_4 = arith.constant 0 : index
    %4 = vector.load %arg7[%c0_3, %c0_4] : memref<64x128xbf16, #tpu.memory_space<vmem>>, vector<64x128xbf16>
    tpu.vector_store %arg7[%c0_3, %c0_4], %3 {strides = array<i32>} : memref<64x128xbf16, #tpu.memory_space<vmem>>, vector<64x128xbf16>,
    %c0_5 = arith.constant 0 : index
    %c0_6 = arith.constant 0 : index
    %5 = vector.load %arg3[%c0_5, %c0_6] : memref<128x128xbf16, #tpu.memory_space<vmem>>, vector<128x128xbf16>
    %cst_7 = arith.constant dense<0.000000e+00> : vector<64x128xf32>
    %6 = tpu.matmul %3, %5, %cst_7 {dimension_numbers = #tpu.dot_dimension_numbers<[1], [0], [0], [1], [0, 0, 1, 1], [], []>} : vector<64x128xbf16>, vector<128x128xbf16>, vector<64x128xf32> -> vector<64x128xf32>
    %c0_8 = arith.constant 0 : index
    %c0_9 = arith.constant 0 : index
    %7 = vector.load %arg4[%c0_8, %c0_9] : memref<1x128xf32, #tpu.memory_space<vmem>>, vector<1x128xf32>
    %8 = vector.broadcast %7 : vector<1x128xf32> to vector<64x128xf32>
    %9 = arith.mulf %6, %8 : vector<64x128xf32>
    %c0_10 = arith.constant 0 : index
    %c0_11 = arith.constant 0 : index
    %10 = vector.load %arg5[%c0_10, %c0_11] : memref<1x128xf32, #tpu.memory_space<vmem>>, vector<1x128xf32>
    %11 = vector.broadcast %10 : vector<1x128xf32> to vector<64x128xf32>
    %12 = arith.addf %9, %11 : vector<64x128xf32>
    %cst_12 = arith.constant 0.000000e+00 : f32
    %13 = vector.broadcast %cst_12 : f32 to vector<64x128xf32>
    %14 = arith.maximumf %12, %13 : vector<64x128xf32>
    %c64_i32 = arith.constant 64 : i32
    %15 = arith.muli %arg0, %c64_i32 : i32
    %16 = tpu.iota {dimensions = array<i32: 0>} : vector<64x128xi32>
    %17 = vector.broadcast %15 : i32 to vector<64x128xi32>
    %18 = arith.addi %17, %16 : vector<64x128xi32>
    %c64_i32_13 = arith.constant 64 : i32
    %19 = vector.broadcast %c64_i32_13 : i32 to vector<64x128xi32>
    %20 = arith.cmpi slt, %18, %19 : vector<64x128xi32>
    %cst_14 = arith.constant 0.000000e+00 : f32
    %21 = vector.broadcast %cst_14 : f32 to vector<64x128xf32>
    %22 = arith.select %20, %14, %21 : vector<64x128xi1>, vector<64x128xf32>
    %23 = arith.truncf %22 : vector<64x128xf32> to vector<64x128xbf16>
    %c0_15 = arith.constant 0 : index
    %c0_16 = arith.constant 0 : index
    %24 = vector.load %arg8[%c0_15, %c0_16] : memref<64x128xbf16, #tpu.memory_space<vmem>>, vector<64x128xbf16>
    tpu.vector_store %arg8[%c0_15, %c0_16], %23 {strides = array<i32>} : memref<64x128xbf16, #tpu.memory_space<vmem>>, vector<64x128xbf16>,
    return
  }
  func.func @transform_0(%arg0: i32) -> (i32, i32) {
    %c0_i32 = arith.constant 0 : i32
    %c0_i32_0 = arith.constant 0 : i32
    return %arg0, %c0_i32 : i32, i32
  }
  func.func @transform_1(%arg0: i32) -> (i32, i32) {
    %c0_i32 = arith.constant 0 : i32
    %c0_i32_0 = arith.constant 0 : i32
    %c0_i32_1 = arith.constant 0 : i32
    return %c0_i32, %c0_i32_0 : i32, i32
  }
  func.func @transform_2(%arg0: i32) -> (i32, i32) {
    %c0_i32 = arith.constant 0 : i32
    %c0_i32_0 = arith.constant 0 : i32
    %c0_i32_1 = arith.constant 0 : i32
    return %c0_i32, %c0_i32_0 : i32, i32
  }
  func.func @transform_3(%arg0: i32) -> (i32, i32) {
    %c0_i32 = arith.constant 0 : i32
    %c0_i32_0 = arith.constant 0 : i32
    %c0_i32_1 = arith.constant 0 : i32
    return %c0_i32, %c0_i32_0 : i32, i32
  }
  func.func @transform_4(%arg0: i32) -> (i32, i32) {
    %c0_i32 = arith.constant 0 : i32
    %c0_i32_0 = arith.constant 0 : i32
    %c0_i32_1 = arith.constant 0 : i32
    return %c0_i32, %c0_i32_0 : i32, i32
  }
  func.func @transform_6(%arg0: i32) -> (i32, i32) {
    %c0_i32 = arith.constant 0 : i32
    %c0_i32_0 = arith.constant 0 : i32
    return %arg0, %c0_i32 : i32, i32
  }
  func.func @transform_7(%arg0: i32) -> (i32, i32) {
    %c1_i32 = arith.constant 1 : i32
    %c0_i32 = arith.constant 0 : i32
    return %arg0, %c1_i32 : i32, i32
  }
}

module attributes {stable_mosaic.version = 11 : i64} {
  func.func @_hop_kernel(%arg0: i32, %arg1: memref<64x128xbf16, #tpu.memory_space<vmem>>, %arg2: memref<128x128xbf16, #tpu.memory_space<vmem>>, %arg3: memref<128x128xbf16, #tpu.memory_space<vmem>>, %arg4: memref<1x128xf32, #tpu.memory_space<vmem>>, %arg5: memref<1x128xf32, #tpu.memory_space<vmem>>, %arg6: memref<128x384xbf16, #tpu.memory_space<any>>, %arg7: memref<64x128xbf16, #tpu.memory_space<vmem>>) attributes {dimension_semantics = [#tpu.dimension_semantics<parallel>], iteration_bounds = array<i64: 2>, scalar_prefetch = 0 : i64, scratch_operands = 0 : i64, tpu.core_type = #tpu.core_type<tc>, window_params = [{transform_indices = @transform_0, window_bounds = array<i64: 64, 128>}, {pipeline_mode = #tpu.pipeline_mode<synchronous>, transform_indices = @transform_1, window_bounds = array<i64: 128, 128>}, {pipeline_mode = #tpu.pipeline_mode<synchronous>, transform_indices = @transform_2, window_bounds = array<i64: 128, 128>}, {pipeline_mode = #tpu.pipeline_mode<synchronous>, transform_indices = @transform_3, window_bounds = array<i64: 1, 128>}, {pipeline_mode = #tpu.pipeline_mode<synchronous>, transform_indices = @transform_4, window_bounds = array<i64: 1, 128>}, {}, {transform_indices = @transform_6, window_bounds = array<i64: 64, 128>}]} {
    %c0 = arith.constant 0 : index
    %c0_0 = arith.constant 0 : index
    %0 = vector.load %arg1[%c0, %c0_0] : memref<64x128xbf16, #tpu.memory_space<vmem>>, vector<64x128xbf16>
    %c0_1 = arith.constant 0 : index
    %c0_2 = arith.constant 0 : index
    %1 = vector.load %arg2[%c0_1, %c0_2] : memref<128x128xbf16, #tpu.memory_space<vmem>>, vector<128x128xbf16>
    %cst = arith.constant dense<0.000000e+00> : vector<64x128xf32>
    %2 = tpu.matmul %0, %1, %cst {dimension_numbers = #tpu.dot_dimension_numbers<[1], [0], [0], [1], [0, 0, 1, 1], [], []>} : vector<64x128xbf16>, vector<128x128xbf16>, vector<64x128xf32> -> vector<64x128xf32>
    %3 = arith.truncf %2 : vector<64x128xf32> to vector<64x128xbf16>
    %c0_3 = arith.constant 0 : index
    %c0_4 = arith.constant 0 : index
    %4 = vector.load %arg3[%c0_3, %c0_4] : memref<128x128xbf16, #tpu.memory_space<vmem>>, vector<128x128xbf16>
    %cst_5 = arith.constant dense<0.000000e+00> : vector<64x128xf32>
    %5 = tpu.matmul %3, %4, %cst_5 {dimension_numbers = #tpu.dot_dimension_numbers<[1], [0], [0], [1], [0, 0, 1, 1], [], []>} : vector<64x128xbf16>, vector<128x128xbf16>, vector<64x128xf32> -> vector<64x128xf32>
    %c0_6 = arith.constant 0 : index
    %c0_7 = arith.constant 0 : index
    %6 = vector.load %arg4[%c0_6, %c0_7] : memref<1x128xf32, #tpu.memory_space<vmem>>, vector<1x128xf32>
    %7 = vector.broadcast %6 : vector<1x128xf32> to vector<64x128xf32>
    %8 = arith.mulf %5, %7 : vector<64x128xf32>
    %c0_8 = arith.constant 0 : index
    %c0_9 = arith.constant 0 : index
    %9 = vector.load %arg5[%c0_8, %c0_9] : memref<1x128xf32, #tpu.memory_space<vmem>>, vector<1x128xf32>
    %10 = vector.broadcast %9 : vector<1x128xf32> to vector<64x128xf32>
    %11 = arith.addf %8, %10 : vector<64x128xf32>
    %cst_10 = arith.constant 0.000000e+00 : f32
    %12 = vector.broadcast %cst_10 : f32 to vector<64x128xf32>
    %13 = arith.maximumf %11, %12 : vector<64x128xf32>
    %c64_i32 = arith.constant 64 : i32
    %14 = arith.muli %arg0, %c64_i32 : i32
    %15 = tpu.iota {dimensions = array<i32: 0>} : vector<64x128xi32>
    %16 = vector.broadcast %14 : i32 to vector<64x128xi32>
    %17 = arith.addi %16, %15 : vector<64x128xi32>
    %c64_i32_11 = arith.constant 64 : i32
    %18 = vector.broadcast %c64_i32_11 : i32 to vector<64x128xi32>
    %19 = arith.cmpi slt, %17, %18 : vector<64x128xi32>
    %cst_12 = arith.constant 0.000000e+00 : f32
    %20 = vector.broadcast %cst_12 : f32 to vector<64x128xf32>
    %21 = arith.select %19, %13, %20 : vector<64x128xi1>, vector<64x128xf32>
    %22 = arith.truncf %21 : vector<64x128xf32> to vector<64x128xbf16>
    %c0_13 = arith.constant 0 : index
    %c0_14 = arith.constant 0 : index
    %23 = vector.load %arg7[%c0_13, %c0_14] : memref<64x128xbf16, #tpu.memory_space<vmem>>, vector<64x128xbf16>
    tpu.vector_store %arg7[%c0_13, %c0_14], %22 {strides = array<i32>} : memref<64x128xbf16, #tpu.memory_space<vmem>>, vector<64x128xbf16>,
    return
  }
  func.func @transform_0(%arg0: i32) -> (i32, i32) {
    %c0_i32 = arith.constant 0 : i32
    %c0_i32_0 = arith.constant 0 : i32
    return %arg0, %c0_i32 : i32, i32
  }
  func.func @transform_1(%arg0: i32) -> (i32, i32) {
    %c0_i32 = arith.constant 0 : i32
    %c0_i32_0 = arith.constant 0 : i32
    %c0_i32_1 = arith.constant 0 : i32
    return %c0_i32, %c0_i32_0 : i32, i32
  }
  func.func @transform_2(%arg0: i32) -> (i32, i32) {
    %c0_i32 = arith.constant 0 : i32
    %c0_i32_0 = arith.constant 0 : i32
    %c0_i32_1 = arith.constant 0 : i32
    return %c0_i32, %c0_i32_0 : i32, i32
  }
  func.func @transform_3(%arg0: i32) -> (i32, i32) {
    %c0_i32 = arith.constant 0 : i32
    %c0_i32_0 = arith.constant 0 : i32
    %c0_i32_1 = arith.constant 0 : i32
    return %c0_i32, %c0_i32_0 : i32, i32
  }
  func.func @transform_4(%arg0: i32) -> (i32, i32) {
    %c0_i32 = arith.constant 0 : i32
    %c0_i32_0 = arith.constant 0 : i32
    %c0_i32_1 = arith.constant 0 : i32
    return %c0_i32, %c0_i32_0 : i32, i32
  }
  func.func @transform_6(%arg0: i32) -> (i32, i32) {
    %c2_i32 = arith.constant 2 : i32
    %c0_i32 = arith.constant 0 : i32
    return %arg0, %c2_i32 : i32, i32
  }
}

module attributes {stable_mosaic.version = 11 : i64} {
  func.func @_hop_kernel(%arg0: i32, %arg1: memref<64x128xbf16, #tpu.memory_space<vmem>>, %arg2: memref<128x384xbf16, #tpu.memory_space<vmem>>, %arg3: memref<384x128xbf16, #tpu.memory_space<vmem>>, %arg4: memref<1x128xf32, #tpu.memory_space<vmem>>, %arg5: memref<1x128xf32, #tpu.memory_space<vmem>>, %arg6: memref<128x384xbf16, #tpu.memory_space<any>>, %arg7: memref<64x384xbf16, #tpu.memory_space<vmem>>, %arg8: memref<64x128xbf16, #tpu.memory_space<vmem>>) attributes {dimension_semantics = [#tpu.dimension_semantics<parallel>], iteration_bounds = array<i64: 2>, scalar_prefetch = 0 : i64, scratch_operands = 0 : i64, tpu.core_type = #tpu.core_type<tc>, window_params = [{transform_indices = @transform_0, window_bounds = array<i64: 64, 128>}, {pipeline_mode = #tpu.pipeline_mode<synchronous>, transform_indices = @transform_1, window_bounds = array<i64: 128, 384>}, {pipeline_mode = #tpu.pipeline_mode<synchronous>, transform_indices = @transform_2, window_bounds = array<i64: 384, 128>}, {pipeline_mode = #tpu.pipeline_mode<synchronous>, transform_indices = @transform_3, window_bounds = array<i64: 1, 128>}, {pipeline_mode = #tpu.pipeline_mode<synchronous>, transform_indices = @transform_4, window_bounds = array<i64: 1, 128>}, {}, {transform_indices = @transform_6, window_bounds = array<i64: 64, 384>}, {transform_indices = @transform_7, window_bounds = array<i64: 64, 128>}]} {
    %c0 = arith.constant 0 : index
    %c0_0 = arith.constant 0 : index
    %0 = vector.load %arg1[%c0, %c0_0] : memref<64x128xbf16, #tpu.memory_space<vmem>>, vector<64x128xbf16>
    %c0_1 = arith.constant 0 : index
    %c0_2 = arith.constant 0 : index
    %1 = vector.load %arg2[%c0_1, %c0_2] : memref<128x384xbf16, #tpu.memory_space<vmem>>, vector<128x384xbf16>
    %cst = arith.constant dense<0.000000e+00> : vector<64x384xf32>
    %2 = tpu.matmul %0, %1, %cst {dimension_numbers = #tpu.dot_dimension_numbers<[1], [0], [0], [1], [0, 0, 1, 1], [], []>} : vector<64x128xbf16>, vector<128x384xbf16>, vector<64x384xf32> -> vector<64x384xf32>
    %3 = arith.truncf %2 : vector<64x384xf32> to vector<64x384xbf16>
    %c0_3 = arith.constant 0 : index
    %c0_4 = arith.constant 0 : index
    %4 = vector.load %arg7[%c0_3, %c0_4] : memref<64x384xbf16, #tpu.memory_space<vmem>>, vector<64x384xbf16>
    tpu.vector_store %arg7[%c0_3, %c0_4], %3 {strides = array<i32>} : memref<64x384xbf16, #tpu.memory_space<vmem>>, vector<64x384xbf16>,
    %c0_5 = arith.constant 0 : index
    %c0_6 = arith.constant 0 : index
    %5 = vector.load %arg3[%c0_5, %c0_6] : memref<384x128xbf16, #tpu.memory_space<vmem>>, vector<384x128xbf16>
    %cst_7 = arith.constant dense<0.000000e+00> : vector<64x128xf32>
    %6 = tpu.matmul %3, %5, %cst_7 {dimension_numbers = #tpu.dot_dimension_numbers<[1], [0], [0], [1], [0, 0, 1, 1], [], []>} : vector<64x384xbf16>, vector<384x128xbf16>, vector<64x128xf32> -> vector<64x128xf32>
    %c0_8 = arith.constant 0 : index
    %c0_9 = arith.constant 0 : index
    %7 = vector.load %arg4[%c0_8, %c0_9] : memref<1x128xf32, #tpu.memory_space<vmem>>, vector<1x128xf32>
    %8 = vector.broadcast %7 : vector<1x128xf32> to vector<64x128xf32>
    %9 = arith.mulf %6, %8 : vector<64x128xf32>
    %c0_10 = arith.constant 0 : index
    %c0_11 = arith.constant 0 : index
    %10 = vector.load %arg5[%c0_10, %c0_11] : memref<1x128xf32, #tpu.memory_space<vmem>>, vector<1x128xf32>
    %11 = vector.broadcast %10 : vector<1x128xf32> to vector<64x128xf32>
    %12 = arith.addf %9, %11 : vector<64x128xf32>
    %cst_12 = arith.constant 0.000000e+00 : f32
    %13 = vector.broadcast %cst_12 : f32 to vector<64x128xf32>
    %14 = arith.maximumf %12, %13 : vector<64x128xf32>
    %c64_i32 = arith.constant 64 : i32
    %15 = arith.muli %arg0, %c64_i32 : i32
    %16 = tpu.iota {dimensions = array<i32: 0>} : vector<64x128xi32>
    %17 = vector.broadcast %15 : i32 to vector<64x128xi32>
    %18 = arith.addi %17, %16 : vector<64x128xi32>
    %c64_i32_13 = arith.constant 64 : i32
    %19 = vector.broadcast %c64_i32_13 : i32 to vector<64x128xi32>
    %20 = arith.cmpi slt, %18, %19 : vector<64x128xi32>
    %cst_14 = arith.constant 0.000000e+00 : f32
    %21 = vector.broadcast %cst_14 : f32 to vector<64x128xf32>
    %22 = arith.select %20, %14, %21 : vector<64x128xi1>, vector<64x128xf32>
    %23 = arith.truncf %22 : vector<64x128xf32> to vector<64x128xbf16>
    %c0_15 = arith.constant 0 : index
    %c0_16 = arith.constant 0 : index
    %24 = vector.load %arg8[%c0_15, %c0_16] : memref<64x128xbf16, #tpu.memory_space<vmem>>, vector<64x128xbf16>
    tpu.vector_store %arg8[%c0_15, %c0_16], %23 {strides = array<i32>} : memref<64x128xbf16, #tpu.memory_space<vmem>>, vector<64x128xbf16>,
    return
  }
  func.func @transform_0(%arg0: i32) -> (i32, i32) {
    %c0_i32 = arith.constant 0 : i32
    %c0_i32_0 = arith.constant 0 : i32
    return %arg0, %c0_i32 : i32, i32
  }
  func.func @transform_1(%arg0: i32) -> (i32, i32) {
    %c0_i32 = arith.constant 0 : i32
    %c0_i32_0 = arith.constant 0 : i32
    %c0_i32_1 = arith.constant 0 : i32
    return %c0_i32, %c0_i32_0 : i32, i32
  }
  func.func @transform_2(%arg0: i32) -> (i32, i32) {
    %c0_i32 = arith.constant 0 : i32
    %c0_i32_0 = arith.constant 0 : i32
    %c0_i32_1 = arith.constant 0 : i32
    return %c0_i32, %c0_i32_0 : i32, i32
  }
  func.func @transform_3(%arg0: i32) -> (i32, i32) {
    %c0_i32 = arith.constant 0 : i32
    %c0_i32_0 = arith.constant 0 : i32
    %c0_i32_1 = arith.constant 0 : i32
    return %c0_i32, %c0_i32_0 : i32, i32
  }
  func.func @transform_4(%arg0: i32) -> (i32, i32) {
    %c0_i32 = arith.constant 0 : i32
    %c0_i32_0 = arith.constant 0 : i32
    %c0_i32_1 = arith.constant 0 : i32
    return %c0_i32, %c0_i32_0 : i32, i32
  }
  func.func @transform_6(%arg0: i32) -> (i32, i32) {
    %c0_i32 = arith.constant 0 : i32
    %c0_i32_0 = arith.constant 0 : i32
    return %arg0, %c0_i32 : i32, i32
  }
  func.func @transform_7(%arg0: i32) -> (i32, i32) {
    %c0_i32 = arith.constant 0 : i32
    %c0_i32_0 = arith.constant 0 : i32
    return %arg0, %c0_i32 : i32, i32
  }
}

module attributes {stable_mosaic.version = 11 : i64} {
  func.func @_hop_kernel(%arg0: i32, %arg1: memref<64x128xbf16, #tpu.memory_space<vmem>>, %arg2: memref<128x384xbf16, #tpu.memory_space<vmem>>, %arg3: memref<384x128xbf16, #tpu.memory_space<vmem>>, %arg4: memref<1x128xf32, #tpu.memory_space<vmem>>, %arg5: memref<1x128xf32, #tpu.memory_space<vmem>>, %arg6: memref<128x384xbf16, #tpu.memory_space<any>>, %arg7: memref<64x384xbf16, #tpu.memory_space<vmem>>, %arg8: memref<64x128xbf16, #tpu.memory_space<vmem>>) attributes {dimension_semantics = [#tpu.dimension_semantics<parallel>], iteration_bounds = array<i64: 2>, scalar_prefetch = 0 : i64, scratch_operands = 0 : i64, tpu.core_type = #tpu.core_type<tc>, window_params = [{transform_indices = @transform_0, window_bounds = array<i64: 64, 128>}, {pipeline_mode = #tpu.pipeline_mode<synchronous>, transform_indices = @transform_1, window_bounds = array<i64: 128, 384>}, {pipeline_mode = #tpu.pipeline_mode<synchronous>, transform_indices = @transform_2, window_bounds = array<i64: 384, 128>}, {pipeline_mode = #tpu.pipeline_mode<synchronous>, transform_indices = @transform_3, window_bounds = array<i64: 1, 128>}, {pipeline_mode = #tpu.pipeline_mode<synchronous>, transform_indices = @transform_4, window_bounds = array<i64: 1, 128>}, {}, {transform_indices = @transform_6, window_bounds = array<i64: 64, 384>}, {transform_indices = @transform_7, window_bounds = array<i64: 64, 128>}]} {
    %c0 = arith.constant 0 : index
    %c0_0 = arith.constant 0 : index
    %0 = vector.load %arg1[%c0, %c0_0] : memref<64x128xbf16, #tpu.memory_space<vmem>>, vector<64x128xbf16>
    %c0_1 = arith.constant 0 : index
    %c0_2 = arith.constant 0 : index
    %1 = vector.load %arg2[%c0_1, %c0_2] : memref<128x384xbf16, #tpu.memory_space<vmem>>, vector<128x384xbf16>
    %cst = arith.constant dense<0.000000e+00> : vector<64x384xf32>
    %2 = tpu.matmul %0, %1, %cst {dimension_numbers = #tpu.dot_dimension_numbers<[1], [0], [0], [1], [0, 0, 1, 1], [], []>} : vector<64x128xbf16>, vector<128x384xbf16>, vector<64x384xf32> -> vector<64x384xf32>
    %3 = arith.truncf %2 : vector<64x384xf32> to vector<64x384xbf16>
    %c0_3 = arith.constant 0 : index
    %c0_4 = arith.constant 0 : index
    %4 = vector.load %arg7[%c0_3, %c0_4] : memref<64x384xbf16, #tpu.memory_space<vmem>>, vector<64x384xbf16>
    tpu.vector_store %arg7[%c0_3, %c0_4], %3 {strides = array<i32>} : memref<64x384xbf16, #tpu.memory_space<vmem>>, vector<64x384xbf16>,
    %c0_5 = arith.constant 0 : index
    %c0_6 = arith.constant 0 : index
    %5 = vector.load %arg3[%c0_5, %c0_6] : memref<384x128xbf16, #tpu.memory_space<vmem>>, vector<384x128xbf16>
    %cst_7 = arith.constant dense<0.000000e+00> : vector<64x128xf32>
    %6 = tpu.matmul %3, %5, %cst_7 {dimension_numbers = #tpu.dot_dimension_numbers<[1], [0], [0], [1], [0, 0, 1, 1], [], []>} : vector<64x384xbf16>, vector<384x128xbf16>, vector<64x128xf32> -> vector<64x128xf32>
    %c0_8 = arith.constant 0 : index
    %c0_9 = arith.constant 0 : index
    %7 = vector.load %arg4[%c0_8, %c0_9] : memref<1x128xf32, #tpu.memory_space<vmem>>, vector<1x128xf32>
    %8 = vector.broadcast %7 : vector<1x128xf32> to vector<64x128xf32>
    %9 = arith.mulf %6, %8 : vector<64x128xf32>
    %c0_10 = arith.constant 0 : index
    %c0_11 = arith.constant 0 : index
    %10 = vector.load %arg5[%c0_10, %c0_11] : memref<1x128xf32, #tpu.memory_space<vmem>>, vector<1x128xf32>
    %11 = vector.broadcast %10 : vector<1x128xf32> to vector<64x128xf32>
    %12 = arith.addf %9, %11 : vector<64x128xf32>
    %cst_12 = arith.constant 0.000000e+00 : f32
    %13 = vector.broadcast %cst_12 : f32 to vector<64x128xf32>
    %14 = arith.maximumf %12, %13 : vector<64x128xf32>
    %c64_i32 = arith.constant 64 : i32
    %15 = arith.muli %arg0, %c64_i32 : i32
    %16 = tpu.iota {dimensions = array<i32: 0>} : vector<64x128xi32>
    %17 = vector.broadcast %15 : i32 to vector<64x128xi32>
    %18 = arith.addi %17, %16 : vector<64x128xi32>
    %c64_i32_13 = arith.constant 64 : i32
    %19 = vector.broadcast %c64_i32_13 : i32 to vector<64x128xi32>
    %20 = arith.cmpi slt, %18, %19 : vector<64x128xi32>
    %cst_14 = arith.constant 0.000000e+00 : f32
    %21 = vector.broadcast %cst_14 : f32 to vector<64x128xf32>
    %22 = arith.select %20, %14, %21 : vector<64x128xi1>, vector<64x128xf32>
    %23 = arith.truncf %22 : vector<64x128xf32> to vector<64x128xbf16>
    %c0_15 = arith.constant 0 : index
    %c0_16 = arith.constant 0 : index
    %24 = vector.load %arg8[%c0_15, %c0_16] : memref<64x128xbf16, #tpu.memory_space<vmem>>, vector<64x128xbf16>
    tpu.vector_store %arg8[%c0_15, %c0_16], %23 {strides = array<i32>} : memref<64x128xbf16, #tpu.memory_space<vmem>>, vector<64x128xbf16>,
    return
  }
  func.func @transform_0(%arg0: i32) -> (i32, i32) {
    %c0_i32 = arith.constant 0 : i32
    %c0_i32_0 = arith.constant 0 : i32
    return %arg0, %c0_i32 : i32, i32
  }
  func.func @transform_1(%arg0: i32) -> (i32, i32) {
    %c0_i32 = arith.constant 0 : i32
    %c0_i32_0 = arith.constant 0 : i32
    %c0_i32_1 = arith.constant 0 : i32
    return %c0_i32, %c0_i32_0 : i32, i32
  }
  func.func @transform_2(%arg0: i32) -> (i32, i32) {
    %c0_i32 = arith.constant 0 : i32
    %c0_i32_0 = arith.constant 0 : i32
    %c0_i32_1 = arith.constant 0 : i32
    return %c0_i32, %c0_i32_0 : i32, i32
  }
  func.func @transform_3(%arg0: i32) -> (i32, i32) {
    %c0_i32 = arith.constant 0 : i32
    %c0_i32_0 = arith.constant 0 : i32
    %c0_i32_1 = arith.constant 0 : i32
    return %c0_i32, %c0_i32_0 : i32, i32
  }
  func.func @transform_4(%arg0: i32) -> (i32, i32) {
    %c0_i32 = arith.constant 0 : i32
    %c0_i32_0 = arith.constant 0 : i32
    %c0_i32_1 = arith.constant 0 : i32
    return %c0_i32, %c0_i32_0 : i32, i32
  }
  func.func @transform_6(%arg0: i32) -> (i32, i32) {
    %c0_i32 = arith.constant 0 : i32
    %c0_i32_0 = arith.constant 0 : i32
    return %arg0, %c0_i32 : i32, i32
  }
  func.func @transform_7(%arg0: i32) -> (i32, i32) {
    %c1_i32 = arith.constant 1 : i32
    %c0_i32 = arith.constant 0 : i32
    return %arg0, %c1_i32 : i32, i32
  }
}

module attributes {stable_mosaic.version = 11 : i64} {
  func.func @_hop_kernel(%arg0: i32, %arg1: memref<64x128xbf16, #tpu.memory_space<vmem>>, %arg2: memref<128x384xbf16, #tpu.memory_space<vmem>>, %arg3: memref<384x128xbf16, #tpu.memory_space<vmem>>, %arg4: memref<1x128xf32, #tpu.memory_space<vmem>>, %arg5: memref<1x128xf32, #tpu.memory_space<vmem>>, %arg6: memref<128x384xbf16, #tpu.memory_space<any>>, %arg7: memref<64x128xbf16, #tpu.memory_space<vmem>>) attributes {dimension_semantics = [#tpu.dimension_semantics<parallel>], iteration_bounds = array<i64: 2>, scalar_prefetch = 0 : i64, scratch_operands = 0 : i64, tpu.core_type = #tpu.core_type<tc>, window_params = [{transform_indices = @transform_0, window_bounds = array<i64: 64, 128>}, {pipeline_mode = #tpu.pipeline_mode<synchronous>, transform_indices = @transform_1, window_bounds = array<i64: 128, 384>}, {pipeline_mode = #tpu.pipeline_mode<synchronous>, transform_indices = @transform_2, window_bounds = array<i64: 384, 128>}, {pipeline_mode = #tpu.pipeline_mode<synchronous>, transform_indices = @transform_3, window_bounds = array<i64: 1, 128>}, {pipeline_mode = #tpu.pipeline_mode<synchronous>, transform_indices = @transform_4, window_bounds = array<i64: 1, 128>}, {}, {transform_indices = @transform_6, window_bounds = array<i64: 64, 128>}]} {
    %c0 = arith.constant 0 : index
    %c0_0 = arith.constant 0 : index
    %0 = vector.load %arg1[%c0, %c0_0] : memref<64x128xbf16, #tpu.memory_space<vmem>>, vector<64x128xbf16>
    %c0_1 = arith.constant 0 : index
    %c0_2 = arith.constant 0 : index
    %1 = vector.load %arg2[%c0_1, %c0_2] : memref<128x384xbf16, #tpu.memory_space<vmem>>, vector<128x384xbf16>
    %cst = arith.constant dense<0.000000e+00> : vector<64x384xf32>
    %2 = tpu.matmul %0, %1, %cst {dimension_numbers = #tpu.dot_dimension_numbers<[1], [0], [0], [1], [0, 0, 1, 1], [], []>} : vector<64x128xbf16>, vector<128x384xbf16>, vector<64x384xf32> -> vector<64x384xf32>
    %3 = arith.truncf %2 : vector<64x384xf32> to vector<64x384xbf16>
    %c0_3 = arith.constant 0 : index
    %c0_4 = arith.constant 0 : index
    %4 = vector.load %arg3[%c0_3, %c0_4] : memref<384x128xbf16, #tpu.memory_space<vmem>>, vector<384x128xbf16>
    %cst_5 = arith.constant dense<0.000000e+00> : vector<64x128xf32>
    %5 = tpu.matmul %3, %4, %cst_5 {dimension_numbers = #tpu.dot_dimension_numbers<[1], [0], [0], [1], [0, 0, 1, 1], [], []>} : vector<64x384xbf16>, vector<384x128xbf16>, vector<64x128xf32> -> vector<64x128xf32>
    %c0_6 = arith.constant 0 : index
    %c0_7 = arith.constant 0 : index
    %6 = vector.load %arg4[%c0_6, %c0_7] : memref<1x128xf32, #tpu.memory_space<vmem>>, vector<1x128xf32>
    %7 = vector.broadcast %6 : vector<1x128xf32> to vector<64x128xf32>
    %8 = arith.mulf %5, %7 : vector<64x128xf32>
    %c0_8 = arith.constant 0 : index
    %c0_9 = arith.constant 0 : index
    %9 = vector.load %arg5[%c0_8, %c0_9] : memref<1x128xf32, #tpu.memory_space<vmem>>, vector<1x128xf32>
    %10 = vector.broadcast %9 : vector<1x128xf32> to vector<64x128xf32>
    %11 = arith.addf %8, %10 : vector<64x128xf32>
    %cst_10 = arith.constant 0.000000e+00 : f32
    %12 = vector.broadcast %cst_10 : f32 to vector<64x128xf32>
    %13 = arith.maximumf %11, %12 : vector<64x128xf32>
    %c64_i32 = arith.constant 64 : i32
    %14 = arith.muli %arg0, %c64_i32 : i32
    %15 = tpu.iota {dimensions = array<i32: 0>} : vector<64x128xi32>
    %16 = vector.broadcast %14 : i32 to vector<64x128xi32>
    %17 = arith.addi %16, %15 : vector<64x128xi32>
    %c64_i32_11 = arith.constant 64 : i32
    %18 = vector.broadcast %c64_i32_11 : i32 to vector<64x128xi32>
    %19 = arith.cmpi slt, %17, %18 : vector<64x128xi32>
    %cst_12 = arith.constant 0.000000e+00 : f32
    %20 = vector.broadcast %cst_12 : f32 to vector<64x128xf32>
    %21 = arith.select %19, %13, %20 : vector<64x128xi1>, vector<64x128xf32>
    %22 = arith.truncf %21 : vector<64x128xf32> to vector<64x128xbf16>
    %c0_13 = arith.constant 0 : index
    %c0_14 = arith.constant 0 : index
    %23 = vector.load %arg7[%c0_13, %c0_14] : memref<64x128xbf16, #tpu.memory_space<vmem>>, vector<64x128xbf16>
    tpu.vector_store %arg7[%c0_13, %c0_14], %22 {strides = array<i32>} : memref<64x128xbf16, #tpu.memory_space<vmem>>, vector<64x128xbf16>,
    return
  }
  func.func @transform_0(%arg0: i32) -> (i32, i32) {
    %c0_i32 = arith.constant 0 : i32
    %c0_i32_0 = arith.constant 0 : i32
    return %arg0, %c0_i32 : i32, i32
  }
  func.func @transform_1(%arg0: i32) -> (i32, i32) {
    %c0_i32 = arith.constant 0 : i32
    %c0_i32_0 = arith.constant 0 : i32
    %c0_i32_1 = arith.constant 0 : i32
    return %c0_i32, %c0_i32_0 : i32, i32
  }
  func.func @transform_2(%arg0: i32) -> (i32, i32) {
    %c0_i32 = arith.constant 0 : i32
    %c0_i32_0 = arith.constant 0 : i32
    %c0_i32_1 = arith.constant 0 : i32
    return %c0_i32, %c0_i32_0 : i32, i32
  }
  func.func @transform_3(%arg0: i32) -> (i32, i32) {
    %c0_i32 = arith.constant 0 : i32
    %c0_i32_0 = arith.constant 0 : i32
    %c0_i32_1 = arith.constant 0 : i32
    return %c0_i32, %c0_i32_0 : i32, i32
  }
  func.func @transform_4(%arg0: i32) -> (i32, i32) {
    %c0_i32 = arith.constant 0 : i32
    %c0_i32_0 = arith.constant 0 : i32
    %c0_i32_1 = arith.constant 0 : i32
    return %c0_i32, %c0_i32_0 : i32, i32
  }
  func.func @transform_6(%arg0: i32) -> (i32, i32) {
    %c2_i32 = arith.constant 2 : i32
    %c0_i32 = arith.constant 0 : i32
    return %arg0, %c2_i32 : i32, i32
  }
}

</mosaic_0001>

<bundles_post_ra>
// kernel: mixhop_gcn_forward.8
= control target key start
LH: loop header
LB: loop body
LE: loop exit
PB: predicated region body
PF: predicated region fallthrough
CT: control target
= control target key end

     0   :  { %s906_s21 = smov 0   ;;  %s908_s22 = smov 0   ;;  %s1045_s0 = inlined_call_operand.vmem [shape: bf16[128,128], index: 0, kind: input, shape index: {}]   ;;  %s1046_s1 = inlined_call_operand.vmem [shape: bf16[128,128], index: 1, kind: input, shape index: {}]   ;;  %s1047_s2 = inlined_call_operand.vmem [shape: bf16[128,128], index: 2, kind: input, shape index: {}]   ;;  %s1048_s3 = inlined_call_operand.vmem [shape: f32[1,128], index: 3, kind: input, shape index: {}]   ;;  %s1049_s4 = inlined_call_operand.vmem [shape: f32[1,128], index: 4, kind: input, shape index: {}]   ;;  %s1050_s5 = inlined_call_operand.vmem [shape: bf16[128,384], index: 5, kind: input, shape index: {}, may-alias: {5,6}]   ;;  %s1051_s6 = inlined_call_operand.vmem [shape: bf16[128,384], index: 6, kind: output, shape index: {}, may-alias: {5,6}]  }
   0x1   :  { %s910_s23 = smov 0  }
   0x2 LB: > { %s919_s5 = sadd.s32 4294967295, %s869_s23   ;;  %s921_s24 = sadd.s32 1, %s869_s23   ;;  %s869_s23 = sphi %s910_s23, %s1055_s23   ;;  %s865_s22 = sphi %s908_s22, %s1054_s22   ;;  %s861_s21 = sphi %s906_s21, %s1053_s21  }
   0x3   : > { %s130_s25 = ssub.s32 %s869_s23, %s921_s24  ;;  %s133_s26 = sadd.s32 1, %s865_s22 }
   0x4   : > { %p131_p0 = scmp.eq.s32.totalorder %s130_s25, 0  ;;  %p143_p1 = scmp.ne.s32.totalorder %s865_s22, %s861_s21 }
   0x5   : > { %p144_p2 = scmp.eq.s32.totalorder %s919_s5, 1  ;;  %p665_p3 = scmp.ge.s32.totalorder %s869_s23, 1 }
   0x6   : > { %s929_s27 = scalar_select %p131_p0, %s865_s22, %s133_s26  }
   0x7   : > { %p931_p4 = por %p144_p2, %p143_p1  ;;  %p189_p5 = scmp.lt.s32.totalorder %s869_s23, 3 }
   0x9   : > { %p190_p6 = pnand %p665_p3, %p189_p5 }
   0xa   : > { %s667_s13 = sshll.u32 (!%p190_p6), %s919_s5, 3  ;;  %s749_s30 = sshll.u32 (!%p190_p6), %s919_s5, 6 }
   0xb   : > { %193 = sbr.rel (%p190_p6) target bundleno = 365 (0x16d), region = 40  ;;  %p217_p7 = scmp.lt.s32.totalorder (!%p190_p6), %s667_s13, 15 }
   0xc   : > { %s213_s9 = sand.u32 (!%p190_p6), 1, %s861_s21  }
   0xd   : > { %s666_s10 = sshll.u32 (!%p190_p6), %s213_s9, 5 }
   0xe   : > { %s1004_s11 = scalar_lea.vmem (!%p190_p6), [#allocation2], %s666_s10 }
  0x10   : > { %v773_v0 = vld [vmem:[%s1046_s1 + $0x38] sm:$0xff]  ;;  %v772_v1 = vld [vmem:[%s1046_s1 + $0x30] sm:$0xff]  ;;  %v771_v2 = vld [vmem:[%s1046_s1 + $0x28] sm:$0xff]  ;;  %s1057_s13 = smov (!%p217_p7, %s667_s13), 15  ;;  %v478_v32 = vlaneseq  ;;  %v487_v39 = vstv %s749_s30  ;;  %s751_s21 = smul.u32 (%p931_p4), 96, %s919_s5 }
  0x11   : > { %319 = vmatpush.bf16.msra.mxu0 %v773_v0  ;;  %805 = vmatpush.bf16.msra.mxu2 %v773_v0  ;;  %v770_v3 = vld [vmem:[%s1046_s1 + $0x20] sm:$0xff]  ;;  %v769_v4 = vld [vmem:[%s1046_s1 + $0x18] sm:$0xff]  ;;  %v768_v6 = vld [vmem:[%s1046_s1 + $0x10] sm:$0xff]  ;;  %s668_s29 = sshll.u32 %s1057_s13, 2 }
  0x12   : > { %v781_v5 = vld [vmem:[%s1047_s2 + $0x38] sm:$0xff]  ;;  %v780_v7 = vld [vmem:[%s1047_s2 + $0x30] sm:$0xff]  ;;  %v767_v8 = vld [vmem:[%s1046_s1 + $0x8] sm:$0xff]  ;;  %s220_s12 = scalar_lea.vmem %s1045_s0, %s668_s29  ;;  %v479_v35 = vshrl.u32 %v478_v32, 7  ;;  %s633_s15 = scalar_lea.vmem (%p931_p4), %s1051_s6, %s751_s21 }
  0x13   : > { %416 = vmatpush.bf16.msra.mxu1 %v781_v5  ;;  %813 = vmatpush.bf16.msra.mxu3 %v781_v5  ;;  %v779_v9 = vld [vmem:[%s1047_s2 + $0x28] sm:$0xff]  ;;  %v766_v10 = vld [vmem:[%s1046_s1] sm:$0xff]  ;;  %v764_v13 = vld [vmem:[%s220_s12 + $0x10] sm:$0xff] }
  0x14   : > { %v778_v11 = vld [vmem:[%s1047_s2 + $0x20] sm:$0xff]  ;;  %v777_v14 = vld [vmem:[%s1047_s2 + $0x18] sm:$0xff]  ;;  %v763_v15 = vld [vmem:[%s220_s12 + $0x8] sm:$0xff]  ;;  %v480_v38 = vadd.s32 8, %v479_v35  ;;  %v488_v41 = vadd.s32 %v487_v39, %v479_v35  ;;  %v483_v53 = vadd.s32 32, %v479_v35  ;;  %v484_v55 = vadd.s32 40, %v479_v35 }
  0x15   : > { %320 = vmatpush.bf16.msra.mxu0 %v772_v1  ;;  %806 = vmatpush.bf16.msra.mxu2 %v772_v1  ;;  %v762_v12 = vld [vmem:[%s220_s12] sm:$0xff]  ;;  %v765_v16 = vld [vmem:[%s220_s12 + $0x18] sm:$0xff]  ;;  %v776_v17 = vld [vmem:[%s1047_s2 + $0x10] sm:$0xff]  ;;  %v481_v59 = vadd.s32 16, %v479_v35  ;;  %v482_v62 = vadd.s32 24, %v479_v35 }
  0x16   : > { %v775_v18 = vld [vmem:[%s1047_s2 + $0x8] sm:$0xff]  ;;  %v774_v19 = vld [vmem:[%s1047_s2] sm:$0xff]  ;;  %v489_v43 = vadd.s32 %v487_v39, %v480_v38  ;;  %vm496_vm0 = vcmp.lt.s32.totalorder %v488_v41, 64  ;;  %v492_v58 = vadd.s32 %v487_v39, %v483_v53  ;;  %v493_v61 = vadd.s32 %v487_v39, %v484_v55 }
  0x17   : > { %417 = vmatpush.bf16.msra.mxu1 %v780_v7  ;;  %814 = vmatpush.bf16.msra.mxu3 %v780_v7  ;;  %v990_v33 = vld [vmem:[%s1048_s3] ss:$0 sm:$0xff]  ;;  %v491_v5 = vadd.s32 %v487_v39, %v482_v62 }
  0x18   : > { %v997_v37 = vld [vmem:[%s1049_s4] ss:$0 sm:$0xff]  ;;  %vm497_vm1 = vcmp.lt.s32.totalorder %v489_v43, 64  ;;  %vm500_vm2 = vcmp.lt.s32.totalorder %v492_v58, 64  ;;  %vm501_vm3 = vcmp.lt.s32.totalorder %v493_v61, 64 }
  0x19   : > { %321 = vmatpush.bf16.msra.mxu0 %v771_v2  ;;  %807 = vmatpush.bf16.msra.mxu2 %v771_v2  ;;  %vm499_vm5 = vcmp.lt.s32.totalorder %v491_v5, 64 }
  0x1b   : > { %418 = vmatpush.bf16.msra.mxu1 %v779_v9  ;;  %815 = vmatpush.bf16.msra.mxu3 %v779_v9 }
  0x1d   : > { %322 = vmatpush.bf16.msra.mxu0 %v770_v3  ;;  %808 = vmatpush.bf16.msra.mxu2 %v770_v3  ;;  %v490_v3 = vadd.s32 %v487_v39, %v481_v59 }
  0x1f   : > { %419 = vmatpush.bf16.msra.mxu1 %v778_v11  ;;  %816 = vmatpush.bf16.msra.mxu3 %v778_v11  ;;  %vm498_vm4 = vcmp.lt.s32.totalorder %v490_v3, 64 }
  0x21   : > { %323 = vmatpush.bf16.msra.mxu0 %v769_v4  ;;  %809 = vmatpush.bf16.msra.mxu2 %v769_v4 }
  0x23   : > { %420 = vmatpush.bf16.msra.mxu1 %v777_v14  ;;  %817 = vmatpush.bf16.msra.mxu3 %v777_v14 }
  0x25   : > { %324 = vmatpush.bf16.msra.mxu0 %v768_v6  ;;  %810 = vmatpush.bf16.msra.mxu2 %v768_v6 }
  0x27   : > { %421 = vmatpush.bf16.msra.mxu1 %v776_v17  ;;  %818 = vmatpush.bf16.msra.mxu3 %v776_v17 }
  0x29   : > { %325 = vmatpush.bf16.msra.mxu0 %v767_v8  ;;  %811 = vmatpush.bf16.msra.mxu2 %v767_v8 }
  0x2b   : > { %422 = vmatpush.bf16.msra.mxu1 %v775_v18  ;;  %819 = vmatpush.bf16.msra.mxu3 %v775_v18 }
  0x2d   : > { %326 = vmatpush.bf16.msra.mxu0 %v766_v10  ;;  %812 = vmatpush.bf16.msra.mxu2 %v766_v10 }
  0x2f   : > { %423 = vmatpush.bf16.msra.mxu1 %v774_v19  ;;  %820 = vmatpush.bf16.msra.mxu3 %v774_v19  ;;  %v485_v19 = vadd.s32 48, %v479_v35 }
  0x30   : > { %327 = vmatmul.bf16.vlgmr.msra.gmra.mxu0 %v762_v12  ;;  %337 = vmatmul.bf16.vlgmr.msra.gmra.mxu2 %v764_v13 }
  0x40   : > { %332 = vmatmul.bf16.gmra.mxu0 %v763_v15  ;;  %342 = vmatmul.bf16.gmra.mxu2 %v765_v16 }
  0xad   : > { %v328_v20 = vpop.f32.mrf.mxu0 }
  0xb3   : > { %v338_v21 = vpop.f32.mrf.mxu2 }
  0xb5   : > { %v330_v22 = vpop.f32.mrf.mxu0 }
  0xb6   : > { %v348_v23 = vpack.c.bf16 %v330_v22, %v328_v20  ;;  %v486_v20 = vadd.s32 56, %v479_v35  ;;  %v494_v22 = vadd.s32 %v487_v39, %v485_v19 }
  0xb8   : > { %424 = vmatmul.bf16.vlgmr.msra.gmra.mxu1 %v348_v23  ;;  %vm502_vm6 = vcmp.lt.s32.totalorder %v494_v22, 64 }
  0xbb   : > { %v340_v24 = vpop.f32.mrf.mxu2 }
  0xbc   : > { %v350_v25 = vpack.c.bf16 %v340_v24, %v338_v21  ;;  %v495_v24 = vadd.s32 %v487_v39, %v486_v20 }
  0xbd   : > { %v333_v26 = vpop.f32.mrf.mxu0 }
  0xbe   : > { %434 = vmatmul.bf16.vlgmr.msra.gmra.mxu3 %v350_v25  ;;  %vm503_vm7 = vcmp.lt.s32.totalorder %v495_v24, 64 }
  0xc3   : > { %v343_v27 = vpop.f32.mrf.mxu2 }
  0xc5   : > { %v335_v28 = vpop.f32.mrf.mxu0 }
  0xc6   : > { %v349_v29 = vpack.c.bf16 %v335_v28, %v333_v26 }
  0xc8   : > { %429 = vmatmul.bf16.gmra.mxu1 %v349_v29 }
  0xcb   : > { %v345_v30 = vpop.f32.mrf.mxu2 }
  0xcc   : > { %v351_v31 = vpack.c.bf16 %v345_v30, %v343_v27 }
  0xce   : > { %439 = vmatmul.bf16.gmra.mxu3 %v351_v31 }
 0x135   : > { %v425_v34 = vpop.f32.mrf.mxu1 }
 0x136   : > { %v449_v36 = vmul.f32 %v990_v33, %v425_v34 }
 0x138   : > { %v461_v40 = vadd.f32 %v997_v37, %v449_v36 }
 0x13a   : > { %v469_v45 = vmax.f32 %v461_v40, 0.0 }
 0x13c   : > { %v504_v49 = vsel %vm496_vm0, %v469_v45, 0.0 }
 0x13d   : > { %v427_v42 = vpop.f32.mrf.mxu1 }
 0x13e   : > { %v450_v44 = vmul.f32 %v990_v33, %v427_v42 }
 0x140   : > { %v462_v46 = vadd.f32 %v997_v37, %v450_v44 }
 0x141   : > { %v435_v47 = vpop.f32.mrf.mxu3 }
 0x142   : > { %v470_v48 = vmax.f32 %v462_v46, 0.0  ;;  %v453_v51 = vmul.f32 %v990_v33, %v435_v47 }
 0x144   : > { %v505_v50 = vsel %vm497_vm1, %v470_v48, 0.0  ;;  %v465_v56 = vadd.f32 %v997_v37, %v453_v51 }
 0x145   : > { %v785_v52 = vpack.c.bf16 %v505_v50, %v504_v49  ;;  %v430_v54 = vpop.f32.mrf.mxu1 }
 0x146   : > { %v451_v57 = vmul.f32 %v990_v33, %v430_v54  ;;  %v473_v0 = vmax.f32 %v465_v56, 0.0 }
 0x147   : > { %786 = vst [vmem:[%s1004_s11] sm:$0xff] %v785_v52  }
 0x148   : > { %v463_v1 = vadd.f32 %v997_v37, %v451_v57  ;;  %v508_v8 = vsel %vm500_vm2, %v473_v0, 0.0 }
 0x149   : > { %v437_v60 = vpop.f32.mrf.mxu3 }
 0x14a   : > { %v454_v63 = vmul.f32 %v990_v33, %v437_v60  ;;  %v471_v9 = vmax.f32 %v463_v1, 0.0 }
 0x14c   : > { %v466_v2 = vadd.f32 %v997_v37, %v454_v63  ;;  %v506_v15 = vsel %vm498_vm4, %v471_v9, 0.0 }
 0x14d   : > { %v432_v4 = vpop.f32.mrf.mxu1 }
 0x14e   : > { %v474_v6 = vmax.f32 %v466_v2, 0.0  ;;  %v452_v7 = vmul.f32 %v990_v33, %v432_v4  ;;  %v556_v32 = vld [vmem:[%s1004_s11] sm:$0xf] (%p931_p4) }
 0x14f   : > { %752 = vst [vmem:[%s633_s15 + $0x8] sm:$0xf] (%p931_p4), %v556_v32 }
 0x150   : > { %v509_v10 = vsel %vm501_vm3, %v474_v6, 0.0  ;;  %v464_v11 = vadd.f32 %v997_v37, %v452_v7 }
 0x151   : > { %v795_v12 = vpack.c.bf16 %v509_v10, %v508_v8  ;;  %v440_v13 = vpop.f32.mrf.mxu3 }
 0x152   : > { %v472_v14 = vmax.f32 %v464_v11, 0.0  ;;  %v455_v17 = vmul.f32 %v990_v33, %v440_v13 }
 0x153   : > { %803 = vst [vmem:[%s1004_s11 + $0x10] sm:$0xff] %v795_v12  }
 0x154   : > { %v507_v16 = vsel %vm499_vm5, %v472_v14, 0.0  ;;  %v467_v21 = vadd.f32 %v997_v37, %v455_v17 }
 0x155   : > { %v790_v18 = vpack.c.bf16 %v507_v16, %v506_v15 }
 0x156   : > { %v475_v26 = vmax.f32 %v467_v21, 0.0 }
 0x157   : > { %802 = vst [vmem:[%s1004_s11 + $0x8] sm:$0xff] %v790_v18  }
 0x158   : > { %v510_v29 = vsel %vm502_vm6, %v475_v26, 0.0 }
 0x159   : > { %v442_v23 = vpop.f32.mrf.mxu3 }
 0x15a   : > { %v456_v25 = vmul.f32 %v990_v33, %v442_v23  ;;  %v558_v33 = vld [vmem:[%s1004_s11 + $0x4] sm:$0xf] (%p931_p4)  ;;  %v564_v36 = vld [vmem:[%s1004_s11 + $0x10] sm:$0xf] (%p931_p4) }
 0x15b   : > { %753 = vst [vmem:[%s633_s15 + $0x14] sm:$0xf] (%p931_p4), %v558_v33 }
 0x15c   : > { %v468_v27 = vadd.f32 %v997_v37, %v456_v25  ;;  %v566_v37 = vld [vmem:[%s1004_s11 + $0x14] sm:$0xf] (%p931_p4)  ;;  %756 = vst [vmem:[%s633_s15 + $0x38] sm:$0xf] (%p931_p4), %v564_v36 }
 0x15d   : > { %757 = vst [vmem:[%s633_s15 + $0x44] sm:$0xf] (%p931_p4), %v566_v37 }
 0x15e   : > { %v476_v28 = vmax.f32 %v468_v27, 0.0  ;;  %v560_v34 = vld [vmem:[%s1004_s11 + $0x8] sm:$0xf] (%p931_p4)  ;;  %v562_v35 = vld [vmem:[%s1004_s11 + $0xc] sm:$0xf] (%p931_p4) }
 0x15f   : > { %534 = sbr.rel (!%p931_p4) target bundleno = 365 (0x16d), region = 44  ;;  %754 = vst [vmem:[%s633_s15 + $0x20] sm:$0xf] (%p931_p4), %v560_v34 }
 0x160   : > { %v511_v30 = vsel %vm503_vm7, %v476_v28, 0.0  ;;  %755 = vst [vmem:[%s633_s15 + $0x2c] sm:$0xf] (%p931_p4), %v562_v35 }
 0x161   : > { %v800_v31 = vpack.c.bf16 %v511_v30, %v510_v29 }
 0x163   : > { %804 = vst [vmem:[%s1004_s11 + $0x18] sm:$0xff] %v800_v31  }
 0x16a   : > { %v568_v38 = vld [vmem:[%s1004_s11 + $0x18] sm:$0xf]  ;;  %v570_v39 = vld [vmem:[%s1004_s11 + $0x1c] sm:$0xf] }
 0x16b   : > { %758 = vst [vmem:[%s633_s15 + $0x50] sm:$0xf] %v568_v38 }
 0x16c   : > { %759 = vst [vmem:[%s633_s15 + $0x5c] sm:$0xf] %v570_v39 }
 0x16d PF: > { %p13_p8 = scmp.ge.s32.totalorder %s921_s24, 4   ;;  %s1053_s21 = smov %s865_s22 }
 0x16e   : > { %s1054_s22 = smov %s929_s27  ;;  %s1055_s23 = smov %s921_s24 }
 0x16f   :  { %15 = sbr.rel (!%p13_p8) target bundleno = 2 (0x2), region = 111 }

// kernel: mixhop_gcn_forward.6
= control target key start
LH: loop header
LB: loop body
LE: loop exit
PB: predicated region body
PF: predicated region fallthrough
CT: control target
= control target key end

     0   :  { %s1039_s24 = smov 0   ;;  %s1041_s25 = smov 0   ;;  %s1194_s0 = inlined_call_operand.vmem [shape: bf16[128,128], index: 0, kind: input, shape index: {}]   ;;  %s1195_s1 = inlined_call_operand.vmem [shape: bf16[128,128], index: 1, kind: input, shape index: {}]   ;;  %s1196_s2 = inlined_call_operand.vmem [shape: bf16[128,128], index: 2, kind: input, shape index: {}]   ;;  %s1197_s3 = inlined_call_operand.vmem [shape: f32[1,128], index: 3, kind: input, shape index: {}]   ;;  %s1198_s4 = inlined_call_operand.vmem [shape: f32[1,128], index: 4, kind: input, shape index: {}]   ;;  %s1199_s5 = inlined_call_operand.vmem [shape: bf16[128,384], index: 5, kind: input, shape index: {}, may-alias: {5,7}]   ;;  %s1200_s6 = inlined_call_operand.vmem [shape: bf16[128,128], index: 6, kind: output, shape index: {0}]   ;;  %s1201_s7 = inlined_call_operand.vmem [shape: bf16[128,384], index: 7, kind: output, shape index: {1}, may-alias: {5,7}]  }
   0x1   :  { %s1043_s26 = smov 0  }
   0x2 LB: > { %s1052_s5 = sadd.s32 4294967295, %s997_s26   ;;  %s1054_s27 = sadd.s32 1, %s997_s26   ;;  %s997_s26 = sphi %s1043_s26, %s1205_s26   ;;  %s993_s25 = sphi %s1041_s25, %s1204_s25   ;;  %s989_s24 = sphi %s1039_s24, %s1203_s24  }
   0x3   : > { %s158_s28 = ssub.s32 %s997_s26, %s1054_s27  ;;  %s161_s29 = sadd.s32 1, %s993_s25 }
   0x4   : > { %p159_p0 = scmp.eq.s32.totalorder %s158_s28, 0  ;;  %p171_p1 = scmp.ne.s32.totalorder %s993_s25, %s989_s24 }
   0x5   : > { %p172_p2 = scmp.eq.s32.totalorder %s1052_s5, 1  ;;  %p773_p3 = scmp.ge.s32.totalorder %s997_s26, 1 }
   0x6   : > { %s1062_s30 = scalar_select %p159_p0, %s993_s25, %s161_s29  }
   0x7   : > { %p1064_p4 = por %p172_p2, %p171_p1  ;;  %p217_p5 = scmp.lt.s32.totalorder %s997_s26, 3 }
   0x9   : > { %p218_p6 = pnand %p773_p3, %p217_p5 }
   0xa   : > { %s775_s17 = sshll.u32 (!%p218_p6), %s1052_s5, 3  ;;  %s859_s15 = sshll.u32 (!%p218_p6), %s1052_s5, 6 }
   0xb   : > { %221 = sbr.rel (%p218_p6) target bundleno = 369 (0x171), region = 40  ;;  %p252_p7 = scmp.lt.s32.totalorder (!%p218_p6), %s775_s17, 15 }
   0xc   : > { %s248_s19 = sand.u32 (!%p218_p6), 1, %s989_s24  }
   0xd   : > { %s774_s20 = sshll.u32 (!%p218_p6), %s248_s19, 5 }
   0xe   : > { %s1153_s21 = scalar_lea.vmem (!%p218_p6), [#allocation2], %s774_s20 }
  0x10   : > { %v877_v0 = vld [vmem:[%s1195_s1 + $0x38] sm:$0xff]  ;;  %v876_v1 = vld [vmem:[%s1195_s1 + $0x30] sm:$0xff]  ;;  %v875_v2 = vld [vmem:[%s1195_s1 + $0x28] sm:$0xff]  ;;  %s1207_s17 = smov (!%p252_p7, %s775_s17), 15  ;;  %v555_v52 = vlaneseq  ;;  %v564_v59 = vstv %s859_s15  ;;  %s948_s24 = smul.u32 (%p1064_p4), 96, %s1052_s5 }
  0x11   : > { %360 = vmatpush.bf16.msra.mxu0 %v877_v0  ;;  %932 = vmatpush.bf16.msra.mxu2 %v877_v0  ;;  %v874_v3 = vld [vmem:[%s1195_s1 + $0x20] sm:$0xff]  ;;  %v873_v4 = vld [vmem:[%s1195_s1 + $0x18] sm:$0xff]  ;;  %v872_v6 = vld [vmem:[%s1195_s1 + $0x10] sm:$0xff]  ;;  %s776_s10 = sshll.u32 %s1207_s17, 2 }
  0x12   : > { %v885_v5 = vld [vmem:[%s1196_s2 + $0x38] sm:$0xff]  ;;  %v884_v7 = vld [vmem:[%s1196_s2 + $0x30] sm:$0xff]  ;;  %v871_v8 = vld [vmem:[%s1195_s1 + $0x8] sm:$0xff]  ;;  %s255_s18 = scalar_lea.vmem %s1194_s0, %s776_s10  ;;  %s1130_s14 = scalar_lea.vmem %s1200_s6, %s776_s10  ;;  %v556_v55 = vshrl.u32 %v555_v52, 7 }
  0x13   : > { %493 = vmatpush.bf16.msra.mxu1 %v885_v5  ;;  %940 = vmatpush.bf16.msra.mxu3 %v885_v5  ;;  %v883_v9 = vld [vmem:[%s1196_s2 + $0x28] sm:$0xff]  ;;  %v870_v10 = vld [vmem:[%s1195_s1] sm:$0xff]  ;;  %v868_v13 = vld [vmem:[%s255_s18 + $0x10] sm:$0xff]  ;;  %s624_s26 = scalar_lea.vmem (%p1064_p4), %s1201_s7, %s948_s24 }
  0x14   : > { %v882_v11 = vld [vmem:[%s1196_s2 + $0x20] sm:$0xff]  ;;  %v867_v14 = vld [vmem:[%s255_s18 + $0x8] sm:$0xff]  ;;  %v869_v15 = vld [vmem:[%s255_s18 + $0x18] sm:$0xff]  ;;  %v557_v58 = vadd.s32 8, %v556_v55  ;;  %v565_v61 = vadd.s32 %v564_v59, %v556_v55 }
  0x15   : > { %361 = vmatpush.bf16.msra.mxu0 %v876_v1  ;;  %933 = vmatpush.bf16.msra.mxu2 %v876_v1  ;;  %v866_v12 = vld [vmem:[%s255_s18] sm:$0xff]  ;;  %v881_v16 = vld [vmem:[%s1196_s2 + $0x18] sm:$0xff]  ;;  %v880_v17 = vld [vmem:[%s1196_s2 + $0x10] sm:$0xff] }
  0x16   : > { %v879_v18 = vld [vmem:[%s1196_s2 + $0x8] sm:$0xff]  ;;  %v878_v19 = vld [vmem:[%s1196_s2] sm:$0xff]  ;;  %v566_v63 = vadd.s32 %v564_v59, %v557_v58  ;;  %vm573_vm0 = vcmp.lt.s32.totalorder %v565_v61, 64 }
  0x17   : > { %494 = vmatpush.bf16.msra.mxu1 %v884_v7  ;;  %941 = vmatpush.bf16.msra.mxu3 %v884_v7  ;;  %v1139_v53 = vld [vmem:[%s1197_s3] ss:$0 sm:$0xff] }
  0x18   : > { %v1146_v57 = vld [vmem:[%s1198_s4] ss:$0 sm:$0xff]  ;;  %vm574_vm1 = vcmp.lt.s32.totalorder %v566_v63, 64 }
  0x19   : > { %362 = vmatpush.bf16.msra.mxu0 %v875_v2  ;;  %934 = vmatpush.bf16.msra.mxu2 %v875_v2 }
  0x1b   : > { %495 = vmatpush.bf16.msra.mxu1 %v883_v9  ;;  %942 = vmatpush.bf16.msra.mxu3 %v883_v9  ;;  %v560_v9 = vadd.s32 32, %v556_v55 }
  0x1d   : > { %363 = vmatpush.bf16.msra.mxu0 %v874_v3  ;;  %935 = vmatpush.bf16.msra.mxu2 %v874_v3 }
  0x1f   : > { %496 = vmatpush.bf16.msra.mxu1 %v882_v11  ;;  %943 = vmatpush.bf16.msra.mxu3 %v882_v11  ;;  %v561_v11 = vadd.s32 40, %v556_v55 }
  0x21   : > { %364 = vmatpush.bf16.msra.mxu0 %v873_v4  ;;  %936 = vmatpush.bf16.msra.mxu2 %v873_v4 }
  0x23   : > { %497 = vmatpush.bf16.msra.mxu1 %v881_v16  ;;  %944 = vmatpush.bf16.msra.mxu3 %v881_v16 }
  0x25   : > { %365 = vmatpush.bf16.msra.mxu0 %v872_v6  ;;  %937 = vmatpush.bf16.msra.mxu2 %v872_v6 }
  0x27   : > { %498 = vmatpush.bf16.msra.mxu1 %v880_v17  ;;  %945 = vmatpush.bf16.msra.mxu3 %v880_v17  ;;  %v570_v17 = vadd.s32 %v564_v59, %v561_v11 }
  0x29   : > { %366 = vmatpush.bf16.msra.mxu0 %v871_v8  ;;  %938 = vmatpush.bf16.msra.mxu2 %v871_v8  ;;  %vm578_vm3 = vcmp.lt.s32.totalorder %v570_v17, 64 }
  0x2b   : > { %499 = vmatpush.bf16.msra.mxu1 %v879_v18  ;;  %946 = vmatpush.bf16.msra.mxu3 %v879_v18  ;;  %v559_v18 = vadd.s32 24, %v556_v55 }
  0x2d   : > { %367 = vmatpush.bf16.msra.mxu0 %v870_v10  ;;  %939 = vmatpush.bf16.msra.mxu2 %v870_v10 }
  0x2f   : > { %500 = vmatpush.bf16.msra.mxu1 %v878_v19  ;;  %947 = vmatpush.bf16.msra.mxu3 %v878_v19 }
  0x30   : > { %368 = vmatmul.bf16.vlgmr.msra.gmra.mxu0 %v866_v12  ;;  %378 = vmatmul.bf16.vlgmr.msra.gmra.mxu2 %v868_v13 }
  0x40   : > { %373 = vmatmul.bf16.gmra.mxu0 %v867_v14  ;;  %383 = vmatmul.bf16.gmra.mxu2 %v869_v15  ;;  %v569_v14 = vadd.s32 %v564_v59, %v560_v9  ;;  %v558_v15 = vadd.s32 16, %v556_v55 }
  0x42   : > { %vm577_vm2 = vcmp.lt.s32.totalorder %v569_v14, 64 }
  0xad   : > { %v369_v20 = vpop.f32.mrf.mxu0 }
  0xae   : > { %v389_v21 = vpack.c.bf16 %v369_v20, %v369_v20 }
  0xb0   : > { %v429_v24 = vunpack.c.l.b16 %v389_v21 }
  0xb3   : > { %v379_v22 = vpop.f32.mrf.mxu2 }
  0xb4   : > { %v393_v28 = vpack.c.bf16 %v379_v22, %v379_v22 }
  0xb5   : > { %v371_v23 = vpop.f32.mrf.mxu0 }
  0xb6   : > { %v390_v25 = vpack.c.bf16 %v371_v23, %v371_v23  ;;  %v889_v26 = vpack.c.bf16 %v371_v23, %v369_v20  ;;  %v433_v34 = vunpack.c.l.b16 %v393_v28  ;;  %v567_v23 = vadd.s32 %v564_v59, %v558_v15 }
  0xb8   : > { %890 = vst [vmem:[%s1130_s14] sm:$0xff] %v889_v26   ;;  %v430_v27 = vunpack.c.l.b16 %v390_v25  ;;  %v568_v25 = vadd.s32 %v564_v59, %v559_v18  ;;  %vm575_vm4 = vcmp.lt.s32.totalorder %v567_v23, 64 }
  0xba   : > { %v437_v29 = vpack.c.b16 %v430_v27, %v429_v24  ;;  %vm576_vm5 = vcmp.lt.s32.totalorder %v568_v25, 64 }
  0xbb   : > { %v381_v30 = vpop.f32.mrf.mxu2 }
  0xbc   : > { %v394_v31 = vpack.c.bf16 %v381_v30, %v381_v30  ;;  %v899_v32 = vpack.c.bf16 %v381_v30, %v379_v22  ;;  %501 = vmatmul.bf16.vlgmr.msra.gmra.mxu1 %v437_v29 }
  0xbd   : > { %v374_v33 = vpop.f32.mrf.mxu0 }
  0xbe   : > { %927 = vst [vmem:[%s1130_s14 + $0x10] sm:$0xff] %v899_v32   ;;  %v434_v35 = vunpack.c.l.b16 %v394_v31  ;;  %v391_v37 = vpack.c.bf16 %v374_v33, %v374_v33 }
  0xc0   : > { %v439_v36 = vpack.c.b16 %v434_v35, %v433_v34  ;;  %v431_v40 = vunpack.c.l.b16 %v391_v37 }
  0xc2   : > { %511 = vmatmul.bf16.vlgmr.msra.gmra.mxu3 %v439_v36 }
  0xc3   : > { %v384_v38 = vpop.f32.mrf.mxu2 }
  0xc4   : > { %v395_v44 = vpack.c.bf16 %v384_v38, %v384_v38 }
  0xc5   : > { %v376_v39 = vpop.f32.mrf.mxu0 }
  0xc6   : > { %v392_v41 = vpack.c.bf16 %v376_v39, %v376_v39  ;;  %v894_v42 = vpack.c.bf16 %v376_v39, %v374_v33  ;;  %v435_v49 = vunpack.c.l.b16 %v395_v44  ;;  %v562_v39 = vadd.s32 48, %v556_v55 }
  0xc8   : > { %926 = vst [vmem:[%s1130_s14 + $0x8] sm:$0xff] %v894_v42   ;;  %v432_v43 = vunpack.c.l.b16 %v392_v41  ;;  %v571_v42 = vadd.s32 %v564_v59, %v562_v39 }
  0xca   : > { %v438_v45 = vpack.c.b16 %v432_v43, %v431_v40  ;;  %v563_v40 = vadd.s32 56, %v556_v55  ;;  %vm579_vm6 = vcmp.lt.s32.totalorder %v571_v42, 64 }
  0xcb   : > { %v386_v46 = vpop.f32.mrf.mxu2 }
  0xcc   : > { %v396_v47 = vpack.c.bf16 %v386_v46, %v386_v46  ;;  %v904_v48 = vpack.c.bf16 %v386_v46, %v384_v38  ;;  %506 = vmatmul.bf16.gmra.mxu1 %v438_v45  ;;  %v572_v44 = vadd.s32 %v564_v59, %v563_v40 }
  0xce   : > { %928 = vst [vmem:[%s1130_s14 + $0x18] sm:$0xff] %v904_v48   ;;  %v436_v50 = vunpack.c.l.b16 %v396_v47  ;;  %vm580_vm7 = vcmp.lt.s32.totalorder %v572_v44, 64 }
  0xd0   : > { %v440_v51 = vpack.c.b16 %v436_v50, %v435_v49 }
  0xd2   : > { %516 = vmatmul.bf16.gmra.mxu3 %v440_v51 }
 0x139   : > { %v502_v54 = vpop.f32.mrf.mxu1 }
 0x13a   : > { %v526_v56 = vmul.f32 %v1139_v53, %v502_v54 }
 0x13c   : > { %v538_v60 = vadd.f32 %v1146_v57, %v526_v56 }
 0x13e   : > { %v546_v1 = vmax.f32 %v538_v60, 0.0 }
 0x140   : > { %v581_v5 = vsel %vm573_vm0, %v546_v1, 0.0 }
 0x141   : > { %v504_v62 = vpop.f32.mrf.mxu1 }
 0x142   : > { %v527_v0 = vmul.f32 %v1139_v53, %v504_v62 }
 0x144   : > { %v539_v2 = vadd.f32 %v1146_v57, %v527_v0 }
 0x145   : > { %v512_v3 = vpop.f32.mrf.mxu3 }
 0x146   : > { %v547_v4 = vmax.f32 %v539_v2, 0.0  ;;  %v530_v7 = vmul.f32 %v1139_v53, %v512_v3 }
 0x148   : > { %v582_v6 = vsel %vm574_vm1, %v547_v4, 0.0  ;;  %v542_v12 = vadd.f32 %v1146_v57, %v530_v7 }
 0x149   : > { %v909_v8 = vpack.c.bf16 %v582_v6, %v581_v5  ;;  %v507_v10 = vpop.f32.mrf.mxu1 }
 0x14a   : > { %v528_v13 = vmul.f32 %v1139_v53, %v507_v10  ;;  %v550_v20 = vmax.f32 %v542_v12, 0.0 }
 0x14b   : > { %910 = vst [vmem:[%s1153_s21] sm:$0xff] %v909_v8  }
 0x14c   : > { %v540_v21 = vadd.f32 %v1146_v57, %v528_v13  ;;  %v585_v28 = vsel %vm577_vm2, %v550_v20, 0.0 }
 0x14d   : > { %v514_v16 = vpop.f32.mrf.mxu3 }
 0x14e   : > { %v531_v19 = vmul.f32 %v1139_v53, %v514_v16  ;;  %v548_v29 = vmax.f32 %v540_v21, 0.0 }
 0x150   : > { %v543_v22 = vadd.f32 %v1146_v57, %v531_v19  ;;  %v583_v35 = vsel %vm575_vm4, %v548_v29, 0.0 }
 0x151   : > { %v509_v24 = vpop.f32.mrf.mxu1 }
 0x152   : > { %v551_v26 = vmax.f32 %v543_v22, 0.0  ;;  %v529_v27 = vmul.f32 %v1139_v53, %v509_v24  ;;  %v641_v52 = vld [vmem:[%s1153_s21] sm:$0xf] (%p1064_p4) }
 0x153   : > { %642 = vst [vmem:[%s624_s26] sm:$0xf] (%p1064_p4), %v641_v52 }
 0x154   : > { %v586_v30 = vsel %vm578_vm3, %v551_v26, 0.0  ;;  %v541_v31 = vadd.f32 %v1146_v57, %v529_v27 }
 0x155   : > { %v919_v32 = vpack.c.bf16 %v586_v30, %v585_v28  ;;  %v517_v33 = vpop.f32.mrf.mxu3 }
 0x156   : > { %v549_v34 = vmax.f32 %v541_v31, 0.0  ;;  %v532_v37 = vmul.f32 %v1139_v53, %v517_v33 }
 0x157   : > { %930 = vst [vmem:[%s1153_s21 + $0x10] sm:$0xff] %v919_v32  }
 0x158   : > { %v584_v36 = vsel %vm576_vm5, %v549_v34, 0.0  ;;  %v544_v41 = vadd.f32 %v1146_v57, %v532_v37 }
 0x159   : > { %v914_v38 = vpack.c.bf16 %v584_v36, %v583_v35 }
 0x15a   : > { %v552_v46 = vmax.f32 %v544_v41, 0.0 }
 0x15b   : > { %929 = vst [vmem:[%s1153_s21 + $0x8] sm:$0xff] %v914_v38  }
 0x15c   : > { %v587_v49 = vsel %vm579_vm6, %v552_v46, 0.0 }
 0x15d   : > { %v519_v43 = vpop.f32.mrf.mxu3 }
 0x15e   : > { %v533_v45 = vmul.f32 %v1139_v53, %v519_v43  ;;  %v643_v53 = vld [vmem:[%s1153_s21 + $0x4] sm:$0xf] (%p1064_p4)  ;;  %v649_v56 = vld [vmem:[%s1153_s21 + $0x10] sm:$0xf] (%p1064_p4) }
 0x15f   : > { %644 = vst [vmem:[%s624_s26 + $0xc] sm:$0xf] (%p1064_p4), %v643_v53 }
 0x160   : > { %v545_v47 = vadd.f32 %v1146_v57, %v533_v45  ;;  %v651_v57 = vld [vmem:[%s1153_s21 + $0x14] sm:$0xf] (%p1064_p4)  ;;  %650 = vst [vmem:[%s624_s26 + $0x30] sm:$0xf] (%p1064_p4), %v649_v56 }
 0x161   : > { %652 = vst [vmem:[%s624_s26 + $0x3c] sm:$0xf] (%p1064_p4), %v651_v57 }
 0x162   : > { %v553_v48 = vmax.f32 %v545_v47, 0.0  ;;  %v645_v54 = vld [vmem:[%s1153_s21 + $0x8] sm:$0xf] (%p1064_p4)  ;;  %v647_v55 = vld [vmem:[%s1153_s21 + $0xc] sm:$0xf] (%p1064_p4) }
 0x163   : > { %620 = sbr.rel (!%p1064_p4) target bundleno = 369 (0x171), region = 48  ;;  %646 = vst [vmem:[%s624_s26 + $0x18] sm:$0xf] (%p1064_p4), %v645_v54 }
 0x164   : > { %v588_v50 = vsel %vm580_vm7, %v553_v48, 0.0  ;;  %648 = vst [vmem:[%s624_s26 + $0x24] sm:$0xf] (%p1064_p4), %v647_v55 }
 0x165   : > { %v924_v51 = vpack.c.bf16 %v588_v50, %v587_v49 }
 0x167   : > { %931 = vst [vmem:[%s1153_s21 + $0x18] sm:$0xff] %v924_v51  }
 0x16e   : > { %v653_v58 = vld [vmem:[%s1153_s21 + $0x18] sm:$0xf]  ;;  %v655_v59 = vld [vmem:[%s1153_s21 + $0x1c] sm:$0xf] }
 0x16f   : > { %654 = vst [vmem:[%s624_s26 + $0x48] sm:$0xf] %v653_v58 }
 0x170   : > { %656 = vst [vmem:[%s624_s26 + $0x54] sm:$0xf] %v655_v59 }
 0x171 PF: > { %p15_p8 = scmp.ge.s32.totalorder %s1054_s27, 4   ;;  %s1203_s24 = smov %s993_s25 }
 0x172   : > { %s1204_s25 = smov %s1062_s30  ;;  %s1205_s26 = smov %s1054_s27 }
 0x173   :  { %17 = sbr.rel (!%p15_p8) target bundleno = 2 (0x2), region = 123 }

// kernel: mixhop_gcn_forward.7
= control target key start
LH: loop header
LB: loop body
LE: loop exit
PB: predicated region body
PF: predicated region fallthrough
CT: control target
= control target key end

     0   :  { %s1047_s24 = smov 0   ;;  %s1049_s25 = smov 0   ;;  %s1202_s0 = inlined_call_operand.vmem [shape: bf16[128,128], index: 0, kind: input, shape index: {}]   ;;  %s1203_s1 = inlined_call_operand.vmem [shape: bf16[128,128], index: 1, kind: input, shape index: {}]   ;;  %s1204_s2 = inlined_call_operand.vmem [shape: bf16[128,128], index: 2, kind: input, shape index: {}]   ;;  %s1205_s3 = inlined_call_operand.vmem [shape: f32[1,128], index: 3, kind: input, shape index: {}]   ;;  %s1206_s4 = inlined_call_operand.vmem [shape: f32[1,128], index: 4, kind: input, shape index: {}]   ;;  %s1207_s5 = inlined_call_operand.vmem [shape: bf16[128,384], index: 5, kind: input, shape index: {}, may-alias: {5,7}]   ;;  %s1208_s6 = inlined_call_operand.vmem [shape: bf16[128,128], index: 6, kind: output, shape index: {0}]   ;;  %s1209_s7 = inlined_call_operand.vmem [shape: bf16[128,384], index: 7, kind: output, shape index: {1}, may-alias: {5,7}]  }
   0x1   :  { %s1051_s26 = smov 0  }
   0x2 LB: > { %s1060_s5 = sadd.s32 4294967295, %s1005_s26   ;;  %s1062_s27 = sadd.s32 1, %s1005_s26   ;;  %s1005_s26 = sphi %s1051_s26, %s1213_s26   ;;  %s1001_s25 = sphi %s1049_s25, %s1212_s25   ;;  %s997_s24 = sphi %s1047_s24, %s1211_s24  }
   0x3   : > { %s158_s28 = ssub.s32 %s1005_s26, %s1062_s27  ;;  %s161_s29 = sadd.s32 1, %s1001_s25 }
   0x4   : > { %p159_p0 = scmp.eq.s32.totalorder %s158_s28, 0  ;;  %p171_p1 = scmp.ne.s32.totalorder %s1001_s25, %s997_s24 }
   0x5   : > { %p172_p2 = scmp.eq.s32.totalorder %s1060_s5, 1  ;;  %p776_p3 = scmp.ge.s32.totalorder %s1005_s26, 1 }
   0x6   : > { %s1070_s30 = scalar_select %p159_p0, %s1001_s25, %s161_s29  }
   0x7   : > { %p1072_p4 = por %p172_p2, %p171_p1  ;;  %p217_p5 = scmp.lt.s32.totalorder %s1005_s26, 3 }
   0x9   : > { %p218_p6 = pnand %p776_p3, %p217_p5 }
   0xa   : > { %s778_s17 = sshll.u32 (!%p218_p6), %s1060_s5, 3  ;;  %s862_s15 = sshll.u32 (!%p218_p6), %s1060_s5, 6 }
   0xb   : > { %221 = sbr.rel (%p218_p6) target bundleno = 369 (0x171), region = 40  ;;  %p252_p7 = scmp.lt.s32.totalorder (!%p218_p6), %s778_s17, 15 }
   0xc   : > { %s248_s19 = sand.u32 (!%p218_p6), 1, %s997_s24  }
   0xd   : > { %s777_s20 = sshll.u32 (!%p218_p6), %s248_s19, 5 }
   0xe   : > { %s1161_s21 = scalar_lea.vmem (!%p218_p6), [#allocation2], %s777_s20 }
  0x10   : > { %v886_v0 = vld [vmem:[%s1203_s1 + $0x38] sm:$0xff]  ;;  %v885_v1 = vld [vmem:[%s1203_s1 + $0x30] sm:$0xff]  ;;  %v884_v2 = vld [vmem:[%s1203_s1 + $0x28] sm:$0xff]  ;;  %s1215_s17 = smov (!%p252_p7, %s778_s17), 15  ;;  %v555_v52 = vlaneseq  ;;  %v564_v59 = vstv %s862_s15  ;;  %s864_s24 = smul.u32 (%p1072_p4), 96, %s1060_s5 }
  0x11   : > { %360 = vmatpush.bf16.msra.mxu0 %v886_v0  ;;  %941 = vmatpush.bf16.msra.mxu2 %v886_v0  ;;  %v883_v3 = vld [vmem:[%s1203_s1 + $0x20] sm:$0xff]  ;;  %v882_v4 = vld [vmem:[%s1203_s1 + $0x18] sm:$0xff]  ;;  %v881_v6 = vld [vmem:[%s1203_s1 + $0x10] sm:$0xff]  ;;  %s779_s10 = sshll.u32 %s1215_s17, 2 }
  0x12   : > { %v894_v5 = vld [vmem:[%s1204_s2 + $0x38] sm:$0xff]  ;;  %v893_v7 = vld [vmem:[%s1204_s2 + $0x30] sm:$0xff]  ;;  %v880_v8 = vld [vmem:[%s1203_s1 + $0x8] sm:$0xff]  ;;  %s255_s18 = scalar_lea.vmem %s1202_s0, %s779_s10  ;;  %s1138_s14 = scalar_lea.vmem %s1208_s6, %s779_s10  ;;  %v556_v55 = vshrl.u32 %v555_v52, 7 }
  0x13   : > { %493 = vmatpush.bf16.msra.mxu1 %v894_v5  ;;  %949 = vmatpush.bf16.msra.mxu3 %v894_v5  ;;  %v892_v9 = vld [vmem:[%s1204_s2 + $0x28] sm:$0xff]  ;;  %v879_v10 = vld [vmem:[%s1203_s1] sm:$0xff]  ;;  %v877_v13 = vld [vmem:[%s255_s18 + $0x10] sm:$0xff]  ;;  %s733_s26 = scalar_lea.vmem (%p1072_p4), %s1209_s7, %s864_s24 }
  0x14   : > { %v891_v11 = vld [vmem:[%s1204_s2 + $0x20] sm:$0xff]  ;;  %v876_v14 = vld [vmem:[%s255_s18 + $0x8] sm:$0xff]  ;;  %v878_v15 = vld [vmem:[%s255_s18 + $0x18] sm:$0xff]  ;;  %v557_v58 = vadd.s32 8, %v556_v55  ;;  %v565_v61 = vadd.s32 %v564_v59, %v556_v55 }
  0x15   : > { %361 = vmatpush.bf16.msra.mxu0 %v885_v1  ;;  %942 = vmatpush.bf16.msra.mxu2 %v885_v1  ;;  %v875_v12 = vld [vmem:[%s255_s18] sm:$0xff]  ;;  %v890_v16 = vld [vmem:[%s1204_s2 + $0x18] sm:$0xff]  ;;  %v889_v17 = vld [vmem:[%s1204_s2 + $0x10] sm:$0xff] }
  0x16   : > { %v888_v18 = vld [vmem:[%s1204_s2 + $0x8] sm:$0xff]  ;;  %v887_v19 = vld [vmem:[%s1204_s2] sm:$0xff]  ;;  %v566_v63 = vadd.s32 %v564_v59, %v557_v58  ;;  %vm573_vm0 = vcmp.lt.s32.totalorder %v565_v61, 64 }
  0x17   : > { %494 = vmatpush.bf16.msra.mxu1 %v893_v7  ;;  %950 = vmatpush.bf16.msra.mxu3 %v893_v7  ;;  %v1147_v53 = vld [vmem:[%s1205_s3] ss:$0 sm:$0xff] }
  0x18   : > { %v1154_v57 = vld [vmem:[%s1206_s4] ss:$0 sm:$0xff]  ;;  %vm574_vm1 = vcmp.lt.s32.totalorder %v566_v63, 64 }
  0x19   : > { %362 = vmatpush.bf16.msra.mxu0 %v884_v2  ;;  %943 = vmatpush.bf16.msra.mxu2 %v884_v2 }
  0x1b   : > { %495 = vmatpush.bf16.msra.mxu1 %v892_v9  ;;  %951 = vmatpush.bf16.msra.mxu3 %v892_v9  ;;  %v560_v9 = vadd.s32 32, %v556_v55 }
  0x1d   : > { %363 = vmatpush.bf16.msra.mxu0 %v883_v3  ;;  %944 = vmatpush.bf16.msra.mxu2 %v883_v3 }
  0x1f   : > { %496 = vmatpush.bf16.msra.mxu1 %v891_v11  ;;  %952 = vmatpush.bf16.msra.mxu3 %v891_v11  ;;  %v561_v11 = vadd.s32 40, %v556_v55 }
  0x21   : > { %364 = vmatpush.bf16.msra.mxu0 %v882_v4  ;;  %945 = vmatpush.bf16.msra.mxu2 %v882_v4 }
  0x23   : > { %497 = vmatpush.bf16.msra.mxu1 %v890_v16  ;;  %953 = vmatpush.bf16.msra.mxu3 %v890_v16 }
  0x25   : > { %365 = vmatpush.bf16.msra.mxu0 %v881_v6  ;;  %946 = vmatpush.bf16.msra.mxu2 %v881_v6 }
  0x27   : > { %498 = vmatpush.bf16.msra.mxu1 %v889_v17  ;;  %954 = vmatpush.bf16.msra.mxu3 %v889_v17  ;;  %v570_v17 = vadd.s32 %v564_v59, %v561_v11 }
  0x29   : > { %366 = vmatpush.bf16.msra.mxu0 %v880_v8  ;;  %947 = vmatpush.bf16.msra.mxu2 %v880_v8  ;;  %vm578_vm3 = vcmp.lt.s32.totalorder %v570_v17, 64 }
  0x2b   : > { %499 = vmatpush.bf16.msra.mxu1 %v888_v18  ;;  %955 = vmatpush.bf16.msra.mxu3 %v888_v18  ;;  %v559_v18 = vadd.s32 24, %v556_v55 }
  0x2d   : > { %367 = vmatpush.bf16.msra.mxu0 %v879_v10  ;;  %948 = vmatpush.bf16.msra.mxu2 %v879_v10 }
  0x2f   : > { %500 = vmatpush.bf16.msra.mxu1 %v887_v19  ;;  %956 = vmatpush.bf16.msra.mxu3 %v887_v19 }
  0x30   : > { %368 = vmatmul.bf16.vlgmr.msra.gmra.mxu0 %v875_v12  ;;  %378 = vmatmul.bf16.vlgmr.msra.gmra.mxu2 %v877_v13 }
  0x40   : > { %373 = vmatmul.bf16.gmra.mxu0 %v876_v14  ;;  %383 = vmatmul.bf16.gmra.mxu2 %v878_v15  ;;  %v569_v14 = vadd.s32 %v564_v59, %v560_v9  ;;  %v558_v15 = vadd.s32 16, %v556_v55 }
  0x42   : > { %vm577_vm2 = vcmp.lt.s32.totalorder %v569_v14, 64 }
  0xad   : > { %v369_v20 = vpop.f32.mrf.mxu0 }
  0xae   : > { %v389_v21 = vpack.c.bf16 %v369_v20, %v369_v20 }
  0xb0   : > { %v429_v24 = vunpack.c.l.b16 %v389_v21 }
  0xb3   : > { %v379_v22 = vpop.f32.mrf.mxu2 }
  0xb4   : > { %v393_v28 = vpack.c.bf16 %v379_v22, %v379_v22 }
  0xb5   : > { %v371_v23 = vpop.f32.mrf.mxu0 }
  0xb6   : > { %v390_v25 = vpack.c.bf16 %v371_v23, %v371_v23  ;;  %v898_v26 = vpack.c.bf16 %v371_v23, %v369_v20  ;;  %v433_v34 = vunpack.c.l.b16 %v393_v28  ;;  %v567_v23 = vadd.s32 %v564_v59, %v558_v15 }
  0xb8   : > { %899 = vst [vmem:[%s1138_s14] sm:$0xff] %v898_v26   ;;  %v430_v27 = vunpack.c.l.b16 %v390_v25  ;;  %v568_v25 = vadd.s32 %v564_v59, %v559_v18  ;;  %vm575_vm4 = vcmp.lt.s32.totalorder %v567_v23, 64 }
  0xba   : > { %v437_v29 = vpack.c.b16 %v430_v27, %v429_v24  ;;  %vm576_vm5 = vcmp.lt.s32.totalorder %v568_v25, 64 }
  0xbb   : > { %v381_v30 = vpop.f32.mrf.mxu2 }
  0xbc   : > { %v394_v31 = vpack.c.bf16 %v381_v30, %v381_v30  ;;  %v908_v32 = vpack.c.bf16 %v381_v30, %v379_v22  ;;  %501 = vmatmul.bf16.vlgmr.msra.gmra.mxu1 %v437_v29 }
  0xbd   : > { %v374_v33 = vpop.f32.mrf.mxu0 }
  0xbe   : > { %936 = vst [vmem:[%s1138_s14 + $0x10] sm:$0xff] %v908_v32   ;;  %v434_v35 = vunpack.c.l.b16 %v394_v31  ;;  %v391_v37 = vpack.c.bf16 %v374_v33, %v374_v33 }
  0xc0   : > { %v439_v36 = vpack.c.b16 %v434_v35, %v433_v34  ;;  %v431_v40 = vunpack.c.l.b16 %v391_v37 }
  0xc2   : > { %511 = vmatmul.bf16.vlgmr.msra.gmra.mxu3 %v439_v36 }
  0xc3   : > { %v384_v38 = vpop.f32.mrf.mxu2 }
  0xc4   : > { %v395_v44 = vpack.c.bf16 %v384_v38, %v384_v38 }
  0xc5   : > { %v376_v39 = vpop.f32.mrf.mxu0 }
  0xc6   : > { %v392_v41 = vpack.c.bf16 %v376_v39, %v376_v39  ;;  %v903_v42 = vpack.c.bf16 %v376_v39, %v374_v33  ;;  %v435_v49 = vunpack.c.l.b16 %v395_v44  ;;  %v562_v39 = vadd.s32 48, %v556_v55 }
  0xc8   : > { %935 = vst [vmem:[%s1138_s14 + $0x8] sm:$0xff] %v903_v42   ;;  %v432_v43 = vunpack.c.l.b16 %v392_v41  ;;  %v571_v42 = vadd.s32 %v564_v59, %v562_v39 }
  0xca   : > { %v438_v45 = vpack.c.b16 %v432_v43, %v431_v40  ;;  %v563_v40 = vadd.s32 56, %v556_v55  ;;  %vm579_vm6 = vcmp.lt.s32.totalorder %v571_v42, 64 }
  0xcb   : > { %v386_v46 = vpop.f32.mrf.mxu2 }
  0xcc   : > { %v396_v47 = vpack.c.bf16 %v386_v46, %v386_v46  ;;  %v913_v48 = vpack.c.bf16 %v386_v46, %v384_v38  ;;  %506 = vmatmul.bf16.gmra.mxu1 %v438_v45  ;;  %v572_v44 = vadd.s32 %v564_v59, %v563_v40 }
  0xce   : > { %937 = vst [vmem:[%s1138_s14 + $0x18] sm:$0xff] %v913_v48   ;;  %v436_v50 = vunpack.c.l.b16 %v396_v47  ;;  %vm580_vm7 = vcmp.lt.s32.totalorder %v572_v44, 64 }
  0xd0   : > { %v440_v51 = vpack.c.b16 %v436_v50, %v435_v49 }
  0xd2   : > { %516 = vmatmul.bf16.gmra.mxu3 %v440_v51 }
 0x139   : > { %v502_v54 = vpop.f32.mrf.mxu1 }
 0x13a   : > { %v526_v56 = vmul.f32 %v1147_v53, %v502_v54 }
 0x13c   : > { %v538_v60 = vadd.f32 %v1154_v57, %v526_v56 }
 0x13e   : > { %v546_v1 = vmax.f32 %v538_v60, 0.0 }
 0x140   : > { %v581_v5 = vsel %vm573_vm0, %v546_v1, 0.0 }
 0x141   : > { %v504_v62 = vpop.f32.mrf.mxu1 }
 0x142   : > { %v527_v0 = vmul.f32 %v1147_v53, %v504_v62 }
 0x144   : > { %v539_v2 = vadd.f32 %v1154_v57, %v527_v0 }
 0x145   : > { %v512_v3 = vpop.f32.mrf.mxu3 }
 0x146   : > { %v547_v4 = vmax.f32 %v539_v2, 0.0  ;;  %v530_v7 = vmul.f32 %v1147_v53, %v512_v3 }
 0x148   : > { %v582_v6 = vsel %vm574_vm1, %v547_v4, 0.0  ;;  %v542_v12 = vadd.f32 %v1154_v57, %v530_v7 }
 0x149   : > { %v918_v8 = vpack.c.bf16 %v582_v6, %v581_v5  ;;  %v507_v10 = vpop.f32.mrf.mxu1 }
 0x14a   : > { %v528_v13 = vmul.f32 %v1147_v53, %v507_v10  ;;  %v550_v20 = vmax.f32 %v542_v12, 0.0 }
 0x14b   : > { %919 = vst [vmem:[%s1161_s21] sm:$0xff] %v918_v8  }
 0x14c   : > { %v540_v21 = vadd.f32 %v1154_v57, %v528_v13  ;;  %v585_v28 = vsel %vm577_vm2, %v550_v20, 0.0 }
 0x14d   : > { %v514_v16 = vpop.f32.mrf.mxu3 }
 0x14e   : > { %v531_v19 = vmul.f32 %v1147_v53, %v514_v16  ;;  %v548_v29 = vmax.f32 %v540_v21, 0.0 }
 0x150   : > { %v543_v22 = vadd.f32 %v1154_v57, %v531_v19  ;;  %v583_v35 = vsel %vm575_vm4, %v548_v29, 0.0 }
 0x151   : > { %v509_v24 = vpop.f32.mrf.mxu1 }
 0x152   : > { %v551_v26 = vmax.f32 %v543_v22, 0.0  ;;  %v529_v27 = vmul.f32 %v1147_v53, %v509_v24  ;;  %v642_v52 = vld [vmem:[%s1161_s21] sm:$0xf] (%p1072_p4) }
 0x153   : > { %865 = vst [vmem:[%s733_s26 + $0x4] sm:$0xf] (%p1072_p4), %v642_v52 }
 0x154   : > { %v586_v30 = vsel %vm578_vm3, %v551_v26, 0.0  ;;  %v541_v31 = vadd.f32 %v1154_v57, %v529_v27 }
 0x155   : > { %v928_v32 = vpack.c.bf16 %v586_v30, %v585_v28  ;;  %v517_v33 = vpop.f32.mrf.mxu3 }
 0x156   : > { %v549_v34 = vmax.f32 %v541_v31, 0.0  ;;  %v532_v37 = vmul.f32 %v1147_v53, %v517_v33 }
 0x157   : > { %939 = vst [vmem:[%s1161_s21 + $0x10] sm:$0xff] %v928_v32  }
 0x158   : > { %v584_v36 = vsel %vm576_vm5, %v549_v34, 0.0  ;;  %v544_v41 = vadd.f32 %v1154_v57, %v532_v37 }
 0x159   : > { %v923_v38 = vpack.c.bf16 %v584_v36, %v583_v35 }
 0x15a   : > { %v552_v46 = vmax.f32 %v544_v41, 0.0 }
 0x15b   : > { %938 = vst [vmem:[%s1161_s21 + $0x8] sm:$0xff] %v923_v38  }
 0x15c   : > { %v587_v49 = vsel %vm579_vm6, %v552_v46, 0.0 }
 0x15d   : > { %v519_v43 = vpop.f32.mrf.mxu3 }
 0x15e   : > { %v533_v45 = vmul.f32 %v1147_v53, %v519_v43  ;;  %v644_v53 = vld [vmem:[%s1161_s21 + $0x4] sm:$0xf] (%p1072_p4)  ;;  %v650_v56 = vld [vmem:[%s1161_s21 + $0x10] sm:$0xf] (%p1072_p4) }
 0x15f   : > { %866 = vst [vmem:[%s733_s26 + $0x10] sm:$0xf] (%p1072_p4), %v644_v53 }
 0x160   : > { %v545_v47 = vadd.f32 %v1154_v57, %v533_v45  ;;  %v652_v57 = vld [vmem:[%s1161_s21 + $0x14] sm:$0xf] (%p1072_p4)  ;;  %869 = vst [vmem:[%s733_s26 + $0x34] sm:$0xf] (%p1072_p4), %v650_v56 }
 0x161   : > { %870 = vst [vmem:[%s733_s26 + $0x40] sm:$0xf] (%p1072_p4), %v652_v57 }
 0x162   : > { %v553_v48 = vmax.f32 %v545_v47, 0.0  ;;  %v646_v54 = vld [vmem:[%s1161_s21 + $0x8] sm:$0xf] (%p1072_p4)  ;;  %v648_v55 = vld [vmem:[%s1161_s21 + $0xc] sm:$0xf] (%p1072_p4) }
 0x163   : > { %620 = sbr.rel (!%p1072_p4) target bundleno = 369 (0x171), region = 48  ;;  %867 = vst [vmem:[%s733_s26 + $0x1c] sm:$0xf] (%p1072_p4), %v646_v54 }
 0x164   : > { %v588_v50 = vsel %vm580_vm7, %v553_v48, 0.0  ;;  %868 = vst [vmem:[%s733_s26 + $0x28] sm:$0xf] (%p1072_p4), %v648_v55 }
 0x165   : > { %v933_v51 = vpack.c.bf16 %v588_v50, %v587_v49 }
 0x167   : > { %940 = vst [vmem:[%s1161_s21 + $0x18] sm:$0xff] %v933_v51  }
 0x16e   : > { %v654_v58 = vld [vmem:[%s1161_s21 + $0x18] sm:$0xf]  ;;  %v656_v59 = vld [vmem:[%s1161_s21 + $0x1c] sm:$0xf] }
 0x16f   : > { %871 = vst [vmem:[%s733_s26 + $0x4c] sm:$0xf] %v654_v58 }
 0x170   : > { %872 = vst [vmem:[%s733_s26 + $0x58] sm:$0xf] %v656_v59 }
 0x171 PF: > { %p15_p8 = scmp.ge.s32.totalorder %s1062_s27, 4   ;;  %s1211_s24 = smov %s1001_s25 }
 0x172   : > { %s1212_s25 = smov %s1070_s30  ;;  %s1213_s26 = smov %s1062_s27 }
 0x173   :  { %17 = sbr.rel (!%p15_p8) target bundleno = 2 (0x2), region = 123 }

// kernel: mixhop_gcn_forward.9
= control target key start
LH: loop header
LB: loop body
LE: loop exit
PB: predicated region body
PF: predicated region fallthrough
CT: control target
= control target key end

     0   :  { %s1577_s24 = smov 0   ;;  %s1579_s25 = smov 0   ;;  %s1935_s0 = inlined_call_operand.vmem [shape: bf16[128,128], index: 0, kind: input, shape index: {}]   ;;  %s1936_s1 = inlined_call_operand.vmem [shape: bf16[128,384], index: 1, kind: input, shape index: {}]   ;;  %s1937_s2 = inlined_call_operand.vmem [shape: bf16[384,128], index: 2, kind: input, shape index: {}]   ;;  %s1938_s3 = inlined_call_operand.vmem [shape: f32[1,128], index: 3, kind: input, shape index: {}]   ;;  %s1939_s4 = inlined_call_operand.vmem [shape: f32[1,128], index: 4, kind: input, shape index: {}]   ;;  %s1940_s5 = inlined_call_operand.vmem [shape: bf16[128,384], index: 5, kind: input, shape index: {}, may-alias: {5,7}]   ;;  %s1941_s6 = inlined_call_operand.vmem [shape: bf16[128,384], index: 6, kind: output, shape index: {0}]   ;;  %s1942_s7 = inlined_call_operand.vmem [shape: bf16[128,384], index: 7, kind: output, shape index: {1}, may-alias: {5,7}]  }
   0x1   :  { %s1581_s26 = smov 0  }
   0x2 LB: > { %s1590_s5 = sadd.s32 4294967295, %s1535_s26   ;;  %s1592_s27 = sadd.s32 1, %s1535_s26   ;;  %s1535_s26 = sphi %s1581_s26, %s1946_s26   ;;  %s1531_s25 = sphi %s1579_s25, %s1945_s25   ;;  %s1527_s24 = sphi %s1577_s24, %s1944_s24  }
   0x3   : > { %s158_s28 = ssub.s32 %s1535_s26, %s1592_s27  ;;  %s161_s29 = sadd.s32 1, %s1531_s25 }
   0x4   : > { %p159_p0 = scmp.eq.s32.totalorder %s158_s28, 0  ;;  %p171_p1 = scmp.ne.s32.totalorder %s1531_s25, %s1527_s24 }
   0x5   : > { %p172_p2 = scmp.eq.s32.totalorder %s1590_s5, 1  ;;  %p1173_p3 = scmp.ge.s32.totalorder %s1535_s26, 1 }
   0x6   : > { %s1600_s30 = scalar_select %p159_p0, %s1531_s25, %s161_s29  }
   0x7   : > { %p1602_p4 = por %p172_p2, %p171_p1  ;;  %p217_p5 = scmp.lt.s32.totalorder %s1535_s26, 3 }
   0x9   : > { %p218_p6 = pnand %p1173_p3, %p217_p5 }
   0xa   : > { %s1175_s13 = sshll.u32 (!%p218_p6), %s1590_s5, 3  ;;  %s1387_s28 = sshll.u32 (!%p218_p6), %s1590_s5, 6 }
   0xb   : > { %221 = sbr.rel (%p218_p6) target bundleno = 431 (0x1af), region = 40  ;;  %p253_p7 = scmp.lt.s32.totalorder (!%p218_p6), %s1175_s13, 15 }
   0xc   : > { %s249_s11 = sand.u32 (!%p218_p6), 1, %s1527_s24  }
   0xd   : > { %s1174_s12 = sshll.u32 (!%p218_p6), %s249_s11, 5 }
   0xe   : > { %s1881_s14 = scalar_lea.vmem (!%p218_p6), [#allocation2], %s1174_s12 }
  0x10   : > { %v1281_v0 = vld [vmem:[%s1936_s1 + $0xa8] sm:$0xf]  ;;  %v1420_v1 = vld [vmem:[%s1936_s1 + $0xb0] sm:$0xf0]  ;;  %v1419_v2 = vld [vmem:[%s1936_s1 + $0xac] sm:$0xf] }
  0x11   : > { %v1282_v3 = vor.u32 %v1420_v1, %v1281_v0  ;;  %v1283_v4 = vld [vmem:[%s1936_s1 + $0xb4] sm:$0xf0]  ;;  %v1269_v5 = vld [vmem:[%s1936_s1 + $0x90] sm:$0xf]  ;;  %v1417_v6 = vld [vmem:[%s1936_s1 + $0x98] sm:$0xf0] }
  0x12   : > { %v1286_v7 = vor.u32 %v1419_v2, %v1283_v4  ;;  %v1416_v8 = vld [vmem:[%s1936_s1 + $0x94] sm:$0xf]  ;;  %v1271_v9 = vld [vmem:[%s1936_s1 + $0x9c] sm:$0xf0]  ;;  %v1270_v10 = vor.u32 %v1417_v6, %v1269_v5  ;;  %v1257_v12 = vld [vmem:[%s1936_s1 + $0x78] sm:$0xf] }
  0x13   : > { %458 = vmatpush.bf16.msra.mxu0 %v1282_v3  ;;  %1469 = vmatpush.bf16.msra.mxu2 %v1282_v3  ;;  %v1274_v11 = vor.u32 %v1416_v8, %v1271_v9  ;;  %v1414_v13 = vld [vmem:[%s1936_s1 + $0x80] sm:$0xf0]  ;;  %v1413_v14 = vld [vmem:[%s1936_s1 + $0x7c] sm:$0xf]  ;;  %v1259_v15 = vld [vmem:[%s1936_s1 + $0x84] sm:$0xf0] }
  0x14   : > { %487 = vmatpush.bf16.msra.mxu1 %v1286_v7  ;;  %1477 = vmatpush.bf16.msra.mxu3 %v1286_v7  ;;  %v1258_v16 = vor.u32 %v1414_v13, %v1257_v12  ;;  %v1262_v17 = vor.u32 %v1413_v14, %v1259_v15  ;;  %v1245_v18 = vld [vmem:[%s1936_s1 + $0x60] sm:$0xf]  ;;  %v1411_v19 = vld [vmem:[%s1936_s1 + $0x68] sm:$0xf0]  ;;  %v1410_v20 = vld [vmem:[%s1936_s1 + $0x64] sm:$0xf] }
  0x15   : > { %v1247_v21 = vld [vmem:[%s1936_s1 + $0x6c] sm:$0xf0]  ;;  %v1246_v22 = vor.u32 %v1411_v19, %v1245_v18  ;;  %v1233_v24 = vld [vmem:[%s1936_s1 + $0x48] sm:$0xf]  ;;  %v1408_v25 = vld [vmem:[%s1936_s1 + $0x50] sm:$0xf0] }
  0x16   : > { %v1250_v23 = vor.u32 %v1410_v20, %v1247_v21  ;;  %v1407_v26 = vld [vmem:[%s1936_s1 + $0x4c] sm:$0xf]  ;;  %v1235_v27 = vld [vmem:[%s1936_s1 + $0x54] sm:$0xf0]  ;;  %v1234_v28 = vor.u32 %v1408_v25, %v1233_v24  ;;  %v1221_v30 = vld [vmem:[%s1936_s1 + $0x30] sm:$0xf] }
  0x17   : > { %459 = vmatpush.bf16.msra.mxu0 %v1270_v10  ;;  %1470 = vmatpush.bf16.msra.mxu2 %v1270_v10  ;;  %v1238_v29 = vor.u32 %v1407_v26, %v1235_v27  ;;  %v1405_v31 = vld [vmem:[%s1936_s1 + $0x38] sm:$0xf0]  ;;  %v1404_v32 = vld [vmem:[%s1936_s1 + $0x34] sm:$0xf]  ;;  %v1223_v33 = vld [vmem:[%s1936_s1 + $0x3c] sm:$0xf0] }
  0x18   : > { %488 = vmatpush.bf16.msra.mxu1 %v1274_v11  ;;  %1478 = vmatpush.bf16.msra.mxu3 %v1274_v11  ;;  %v1222_v34 = vor.u32 %v1405_v31, %v1221_v30  ;;  %v1226_v35 = vor.u32 %v1404_v32, %v1223_v33  ;;  %v1209_v36 = vld [vmem:[%s1936_s1 + $0x18] sm:$0xf]  ;;  %v1402_v37 = vld [vmem:[%s1936_s1 + $0x20] sm:$0xf0]  ;;  %s1948_s13 = smov (!%p253_p7, %s1175_s13), 15  ;;  %v1428_v14 = vld [vmem:[%s1937_s2 + $0x30] sm:$0xff] }
  0x19   : > { %v1401_v38 = vld [vmem:[%s1936_s1 + $0x1c] sm:$0xf]  ;;  %v1211_v39 = vld [vmem:[%s1936_s1 + $0x24] sm:$0xf0]  ;;  %v1210_v40 = vor.u32 %v1402_v37, %v1209_v36  ;;  %v1197_v42 = vld [vmem:[%s1936_s1] sm:$0xf] }
  0x1a   : > { %v1214_v41 = vor.u32 %v1401_v38, %v1211_v39  ;;  %v1399_v43 = vld [vmem:[%s1936_s1 + $0x8] sm:$0xf0]  ;;  %s1176_s17 = sshll.u32 %s1948_s13, 2  ;;  %v1398_v44 = vld [vmem:[%s1936_s1 + $0x4] sm:$0xf]  ;;  %v1429_v12 = vld [vmem:[%s1937_s2 + $0x38] sm:$0xff] }
  0x1b   : > { %460 = vmatpush.bf16.msra.mxu0 %v1258_v16  ;;  %1471 = vmatpush.bf16.msra.mxu2 %v1258_v16  ;;  %v1199_v45 = vld [vmem:[%s1936_s1 + $0xc] sm:$0xf0]  ;;  %v1421_v47 = vld [vmem:[%s1936_s1 + $0xb8] sm:$0xf0]  ;;  %v1198_v48 = vor.u32 %v1399_v43, %v1197_v42  ;;  %s1715_s10 = scalar_lea.vmem %s1935_s0, %s1176_s17  ;;  %v1277_v51 = vld [vmem:[%s1936_s1 + $0x98] sm:$0xf] }
  0x1c   : > { %489 = vmatpush.bf16.msra.mxu1 %v1262_v17  ;;  %1479 = vmatpush.bf16.msra.mxu3 %v1262_v17  ;;  %v1289_v46 = vld [vmem:[%s1936_s1 + $0xb0] sm:$0xf]  ;;  %v1202_v49 = vor.u32 %v1398_v44, %v1199_v45  ;;  %v1394_v52 = vld [vmem:[%s1715_s10] sm:$0xff]  ;;  %v1415_v57 = vld [vmem:[%s1936_s1 + $0x88] sm:$0xf0]  ;;  %s1485_s9 = smul.u32 12, %s1948_s13 }
  0x1d   : > { %v1290_v50 = vor.u32 %v1421_v47, %v1289_v46  ;;  %v1396_v53 = vld [vmem:[%s1715_s10 + $0x10] sm:$0xff]  ;;  %v1418_v54 = vld [vmem:[%s1936_s1 + $0xa0] sm:$0xf0]  ;;  %v1265_v56 = vld [vmem:[%s1936_s1 + $0x80] sm:$0xf]  ;;  %s1486_s24 = smul.u32 (%p1602_p4), 96, %s1590_s5 }
  0x1e   : > { %v1278_v55 = vor.u32 %v1418_v54, %v1277_v51  ;;  %v1266_v58 = vor.u32 %v1415_v57, %v1265_v56  ;;  %v1253_v59 = vld [vmem:[%s1936_s1 + $0x68] sm:$0xf]  ;;  %v1412_v60 = vld [vmem:[%s1936_s1 + $0x70] sm:$0xf0]  ;;  %v1241_v62 = vld [vmem:[%s1936_s1 + $0x50] sm:$0xf]  ;;  %s1827_s16 = scalar_lea.vmem %s1941_s6, %s1485_s9 }
  0x1f   : > { %461 = vmatpush.bf16.msra.mxu0 %v1246_v22  ;;  %1472 = vmatpush.bf16.msra.mxu2 %v1246_v22  ;;  %v1254_v61 = vor.u32 %v1412_v60, %v1253_v59  ;;  %v1409_v63 = vld [vmem:[%s1936_s1 + $0x58] sm:$0xf0]  ;;  %v1395_v0 = vld [vmem:[%s1715_s10 + $0x8] sm:$0xff]  ;;  %v1229_v3 = vld [vmem:[%s1936_s1 + $0x38] sm:$0xf]  ;;  %s1023_s17 = scalar_lea.vmem (%p1602_p4), %s1942_s7, %s1486_s24 }
  0x20   : > { %490 = vmatpush.bf16.msra.mxu1 %v1250_v23  ;;  %1480 = vmatpush.bf16.msra.mxu3 %v1250_v23  ;;  %v1242_v1 = vor.u32 %v1409_v63, %v1241_v62  ;;  %v1397_v2 = vld [vmem:[%s1715_s10 + $0x18] sm:$0xff]  ;;  %v1406_v4 = vld [vmem:[%s1936_s1 + $0x40] sm:$0xf0]  ;;  %v1217_v6 = vld [vmem:[%s1936_s1 + $0x20] sm:$0xf] }
  0x21   : > { %v1230_v5 = vor.u32 %v1406_v4, %v1229_v3  ;;  %v1403_v7 = vld [vmem:[%s1936_s1 + $0x28] sm:$0xf0]  ;;  %v1205_v9 = vld [vmem:[%s1936_s1 + $0x8] sm:$0xf]  ;;  %v1400_v10 = vld [vmem:[%s1936_s1 + $0x10] sm:$0xf0] }
  0x22   : > { %v1218_v8 = vor.u32 %v1403_v7, %v1217_v6  ;;  %v1206_v11 = vor.u32 %v1400_v10, %v1205_v9  ;;  %v1437_v13 = vld [vmem:[%s1937_s2 + $0x78] sm:$0xff]  ;;  %v1436_v15 = vld [vmem:[%s1937_s2 + $0x70] sm:$0xff]  ;;  %v1427_v16 = vld [vmem:[%s1937_s2 + $0x28] sm:$0xff] }
  0x23   : > { %462 = vmatpush.bf16.msra.mxu0 %v1234_v28  ;;  %1473 = vmatpush.bf16.msra.mxu2 %v1234_v28  ;;  %v1435_v17 = vld [vmem:[%s1937_s2 + $0x68] sm:$0xff]  ;;  %v1426_v18 = vld [vmem:[%s1937_s2 + $0x20] sm:$0xff]  ;;  %v1425_v20 = vld [vmem:[%s1937_s2 + $0x18] sm:$0xff] }
  0x24   : > { %491 = vmatpush.bf16.msra.mxu1 %v1238_v29  ;;  %1481 = vmatpush.bf16.msra.mxu3 %v1238_v29  ;;  %v1434_v19 = vld [vmem:[%s1937_s2 + $0x60] sm:$0xff]  ;;  %v1433_v21 = vld [vmem:[%s1937_s2 + $0x58] sm:$0xff]  ;;  %v1424_v22 = vld [vmem:[%s1937_s2 + $0x10] sm:$0xff] }
  0x25   : > { %v1432_v23 = vld [vmem:[%s1937_s2 + $0x50] sm:$0xff]  ;;  %v1423_v24 = vld [vmem:[%s1937_s2 + $0x8] sm:$0xff]  ;;  %v1422_v26 = vld [vmem:[%s1937_s2] sm:$0xff] }
  0x26   : > { %v1431_v25 = vld [vmem:[%s1937_s2 + $0x48] sm:$0xff]  ;;  %v1430_v27 = vld [vmem:[%s1937_s2 + $0x40] sm:$0xff]  ;;  %v1445_v28 = vld [vmem:[%s1937_s2 + $0xb8] sm:$0xff] }
  0x27   : > { %463 = vmatpush.bf16.msra.mxu0 %v1222_v34  ;;  %1474 = vmatpush.bf16.msra.mxu2 %v1222_v34  ;;  %v1444_v29 = vld [vmem:[%s1937_s2 + $0xb0] sm:$0xff]  ;;  %v1443_v30 = vld [vmem:[%s1937_s2 + $0xa8] sm:$0xff]  ;;  %v1442_v33 = vld [vmem:[%s1937_s2 + $0xa0] sm:$0xff] }
  0x28   : > { %492 = vmatpush.bf16.msra.mxu1 %v1226_v35  ;;  %1482 = vmatpush.bf16.msra.mxu3 %v1226_v35  ;;  %v1441_v35 = vld [vmem:[%s1937_s2 + $0x98] sm:$0xff]  ;;  %v1439_v45 = vld [vmem:[%s1937_s2 + $0x88] sm:$0xff] }
  0x2b   : > { %464 = vmatpush.bf16.msra.mxu0 %v1210_v40  ;;  %1475 = vmatpush.bf16.msra.mxu2 %v1210_v40 }
  0x2c   : > { %493 = vmatpush.bf16.msra.mxu1 %v1214_v41  ;;  %1483 = vmatpush.bf16.msra.mxu3 %v1214_v41  ;;  %v1440_v41 = vld [vmem:[%s1937_s2 + $0x90] sm:$0xff] }
  0x2f   : > { %465 = vmatpush.bf16.msra.mxu0 %v1198_v48  ;;  %1476 = vmatpush.bf16.msra.mxu2 %v1198_v48 }
  0x30   : > { %494 = vmatpush.bf16.msra.mxu1 %v1202_v49  ;;  %1484 = vmatpush.bf16.msra.mxu3 %v1202_v49 }
  0x32   : > { %466 = vmatmul.bf16.vlgmr.msra.gmra.mxu0 %v1394_v52  ;;  %476 = vmatmul.bf16.vlgmr.msra.gmra.mxu2 %v1396_v53 }
  0x33   : > { %516 = vmatpush.bf16.msrb.mxu2 %v1290_v50  ;;  %495 = vmatmul.bf16.vlgmr.msra.gmra.mxu1 %v1394_v52 }
  0x34   : > { %505 = vmatmul.bf16.vlgmr.msra.gmra.mxu3 %v1396_v53  ;;  %862 = vmatpush.bf16.msrb.mxu0 %v1437_v13 }
  0x35   : > { %833 = vmatpush.bf16.msrb.mxu3 %v1429_v12  ;;  %891 = vmatpush.bf16.msrb.mxu1 %v1445_v28 }
  0x37   : > { %517 = vmatpush.bf16.msrb.mxu2 %v1278_v55  ;;  %v1438_v55 = vld [vmem:[%s1937_s2 + $0x80] sm:$0xff] }
  0x38   : > { %863 = vmatpush.bf16.msrb.mxu0 %v1436_v15 }
  0x39   : > { %834 = vmatpush.bf16.msrb.mxu3 %v1428_v14  ;;  %892 = vmatpush.bf16.msrb.mxu1 %v1444_v29 }
  0x3b   : > { %518 = vmatpush.bf16.msrb.mxu2 %v1266_v58 }
  0x3c   : > { %864 = vmatpush.bf16.msrb.mxu0 %v1435_v17 }
  0x3d   : > { %835 = vmatpush.bf16.msrb.mxu3 %v1427_v16  ;;  %893 = vmatpush.bf16.msrb.mxu1 %v1443_v30 }
  0x3f   : > { %519 = vmatpush.bf16.msrb.mxu2 %v1254_v61 }
  0x40   : > { %865 = vmatpush.bf16.msrb.mxu0 %v1434_v19 }
  0x41   : > { %836 = vmatpush.bf16.msrb.mxu3 %v1426_v18  ;;  %894 = vmatpush.bf16.msrb.mxu1 %v1442_v33 }
  0x42   : > { %471 = vmatmul.bf16.gmra.mxu0 %v1395_v0  ;;  %481 = vmatmul.bf16.gmra.mxu2 %v1397_v2 }
  0x43   : > { %520 = vmatpush.bf16.msrb.mxu2 %v1242_v1  ;;  %500 = vmatmul.bf16.gmra.mxu1 %v1395_v0 }
  0x44   : > { %510 = vmatmul.bf16.gmra.mxu3 %v1397_v2  ;;  %866 = vmatpush.bf16.msrb.mxu0 %v1433_v21 }
  0x45   : > { %837 = vmatpush.bf16.msrb.mxu3 %v1425_v20  ;;  %895 = vmatpush.bf16.msrb.mxu1 %v1441_v35 }
  0x47   : > { %521 = vmatpush.bf16.msrb.mxu2 %v1230_v5 }
  0x48   : > { %867 = vmatpush.bf16.msrb.mxu0 %v1432_v23 }
  0x49   : > { %838 = vmatpush.bf16.msrb.mxu3 %v1424_v22  ;;  %896 = vmatpush.bf16.msrb.mxu1 %v1440_v41 }
  0x4b   : > { %522 = vmatpush.bf16.msrb.mxu2 %v1218_v8 }
  0x4c   : > { %868 = vmatpush.bf16.msrb.mxu0 %v1431_v25 }
  0x4d   : > { %839 = vmatpush.bf16.msrb.mxu3 %v1423_v24  ;;  %897 = vmatpush.bf16.msrb.mxu1 %v1439_v45 }
  0x4f   : > { %523 = vmatpush.bf16.msrb.mxu2 %v1206_v11 }
  0x50   : > { %869 = vmatpush.bf16.msrb.mxu0 %v1430_v27 }
  0x51   : > { %840 = vmatpush.bf16.msrb.mxu3 %v1422_v26  ;;  %898 = vmatpush.bf16.msrb.mxu1 %v1438_v55 }
  0x52   : > { %524 = vmatmul.bf16.vlgmr.msrb.gmra.mxu2 %v1394_v52 }
  0x62   : > { %529 = vmatmul.bf16.gmra.mxu2 %v1395_v0 }
  0x72   : > { %534 = vmatmul.bf16.gmra.mxu2 %v1396_v53 }
  0x82   : > { %539 = vmatmul.bf16.gmra.mxu2 %v1397_v2 }
  0xaf   : > { %v467_v31 = vpop.f32.mrf.mxu0 }
  0xb0   : > { %v496_v32 = vpop.f32.mrf.mxu1 }
  0xb1   : > { %v545_v34 = vpack.c.bf16 %v496_v32, %v467_v31 }
  0xb3   : > { %561 = vst [vmem:[%s1827_s16] sm:$0xff] %v545_v34  ;;  %v641_v42 = vunpack.c.l.b16 %v545_v34  ;;  %v642_v43 = vunpack.c.h.b16 %v545_v34 }
  0xb5   : > { %v477_v36 = vpop.f32.mrf.mxu2 }
  0xb7   : > { %v506_v37 = vpop.f32.mrf.mxu3  ;;  %v469_v39 = vpop.f32.mrf.mxu0 }
  0xb8   : > { %v553_v38 = vpack.c.bf16 %v506_v37, %v477_v36  ;;  %v498_v40 = vpop.f32.mrf.mxu1 }
  0xb9   : > { %v547_v44 = vpack.c.bf16 %v498_v40, %v469_v39 }
  0xba   : > { %569 = vst [vmem:[%s1827_s16 + $0x30] sm:$0xff] %v553_v38  ;;  %v653_v12 = vunpack.c.l.b16 %v553_v38  ;;  %v654_v13 = vunpack.c.h.b16 %v553_v38 }
  0xbb   : > { %563 = vst [vmem:[%s1827_s16 + $0xc] sm:$0xff] %v547_v44  ;;  %v644_v46 = vunpack.c.l.b16 %v547_v44  ;;  %v645_v47 = vunpack.c.h.b16 %v547_v44 }
  0xbd   : > { %v479_v48 = vpop.f32.mrf.mxu2  ;;  %v665_v49 = vpack.c.b16 %v644_v46, %v641_v42  ;;  %v666_v50 = vpack.c.b16 %v645_v47, %v642_v43 }
  0xbf   : > { %v508_v51 = vpop.f32.mrf.mxu3  ;;  %841 = vmatmul.bf16.vlgmr.msrb.gmra.mxu3 %v665_v49  ;;  %870 = vmatmul.bf16.vlgmr.msrb.gmra.mxu0 %v666_v50  ;;  %v472_v53 = vpop.f32.mrf.mxu0 }
  0xc0   : > { %v555_v52 = vpack.c.bf16 %v508_v51, %v479_v48  ;;  %v501_v54 = vpop.f32.mrf.mxu1 }
  0xc1   : > { %v549_v56 = vpack.c.bf16 %v501_v54, %v472_v53  ;;  %v953_v54 = vlaneseq }
  0xc2   : > { %571 = vst [vmem:[%s1827_s16 + $0x3c] sm:$0xff] %v555_v52  ;;  %v656_v10 = vunpack.c.l.b16 %v555_v52  ;;  %v657_v11 = vunpack.c.h.b16 %v555_v52 }
  0xc3   : > { %565 = vst [vmem:[%s1827_s16 + $0x18] sm:$0xff] %v549_v56  ;;  %v647_v63 = vunpack.c.l.b16 %v549_v56  ;;  %v648_v0 = vunpack.c.h.b16 %v549_v56  ;;  %v1860_v56 = vld [vmem:[%s1938_s3] ss:$0 sm:$0xff] }
  0xc4   : > { %v671_v15 = vpack.c.b16 %v656_v10, %v653_v12  ;;  %v672_v16 = vpack.c.b16 %v657_v11, %v654_v13 }
  0xc5   : > { %v482_v57 = vpop.f32.mrf.mxu2 }
  0xc7   : > { %v511_v58 = vpop.f32.mrf.mxu3  ;;  %v474_v60 = vpop.f32.mrf.mxu0 }
  0xc8   : > { %v557_v59 = vpack.c.bf16 %v511_v58, %v482_v57  ;;  %v503_v61 = vpop.f32.mrf.mxu1 }
  0xc9   : > { %v551_v62 = vpack.c.bf16 %v503_v61, %v474_v60  ;;  %v1869_v61 = vld [vmem:[%s1939_s4] ss:$0 sm:$0xff] }
  0xca   : > { %573 = vst [vmem:[%s1827_s16 + $0x48] sm:$0xff] %v557_v59  ;;  %v659_v25 = vunpack.c.l.b16 %v557_v59  ;;  %v660_v26 = vunpack.c.h.b16 %v557_v59  ;;  %v1863_v59 = vshrl.u32 %v953_v54, 7 }
  0xcb   : > { %567 = vst [vmem:[%s1827_s16 + $0x24] sm:$0xff] %v551_v62  ;;  %v650_v1 = vunpack.c.l.b16 %v551_v62  ;;  %v651_v2 = vunpack.c.h.b16 %v551_v62 }
  0xcc   : > { %v955_v62 = vadd.s32 8, %v1863_v59 }
  0xcd   : > { %v484_v3 = vpop.f32.mrf.mxu2  ;;  %v668_v4 = vpack.c.b16 %v650_v1, %v647_v63  ;;  %v669_v5 = vpack.c.b16 %v651_v2, %v648_v0  ;;  %v1872_v0 = vstv %s1387_s28 }
  0xcf   : > { %v513_v6 = vpop.f32.mrf.mxu3  ;;  %846 = vmatmul.bf16.gmra.mxu3 %v668_v4  ;;  %875 = vmatmul.bf16.gmra.mxu0 %v669_v5  ;;  %v963_v4 = vadd.s32 %v1872_v0, %v1863_v59  ;;  %v964_v5 = vadd.s32 %v1872_v0, %v955_v62 }
  0xd0   : > { %v559_v7 = vpack.c.bf16 %v513_v6, %v484_v3 }
  0xd1   : > { %vm971_vm0 = vcmp.lt.s32.totalorder %v963_v4, 64  ;;  %vm972_vm1 = vcmp.lt.s32.totalorder %v964_v5, 64  ;;  %v960_v5 = vadd.s32 48, %v1863_v59 }
  0xd2   : > { %575 = vst [vmem:[%s1827_s16 + $0x54] sm:$0xff] %v559_v7  ;;  %v662_v23 = vunpack.c.l.b16 %v559_v7  ;;  %v663_v24 = vunpack.c.h.b16 %v559_v7 }
  0xd4   : > { %v674_v28 = vpack.c.b16 %v662_v23, %v659_v25  ;;  %v675_v29 = vpack.c.b16 %v663_v24, %v660_v26 }
  0xd5   : > { %v525_v8 = vpop.f32.mrf.mxu2 }
  0xd6   : > { %v546_v9 = vpack.c.bf16 %v525_v8, %v525_v8 }
  0xd8   : > { %562 = vst [vmem:[%s1827_s16 + $0x8] sm:$0xf] %v546_v9  ;;  %v643_v18 = vunpack.c.l.b16 %v546_v9 }
  0xdd   : > { %v527_v14 = vpop.f32.mrf.mxu2 }
  0xde   : > { %v548_v17 = vpack.c.bf16 %v527_v14, %v527_v14 }
  0xdf   : > { %851 = vmatmul.bf16.gmra.mxu3 %v671_v15  ;;  %880 = vmatmul.bf16.gmra.mxu0 %v672_v16 }
  0xe0   : > { %564 = vst [vmem:[%s1827_s16 + $0x14] sm:$0xf] %v548_v17  ;;  %v646_v19 = vunpack.c.l.b16 %v548_v17 }
  0xe2   : > { %v667_v20 = vpack.c.b16 %v646_v19, %v643_v18 }
  0xe4   : > { %899 = vmatmul.bf16.vlgmr.msrb.gmra.mxu1 %v667_v20  ;;  %v956_v20 = vadd.s32 16, %v1863_v59 }
  0xe5   : > { %v530_v21 = vpop.f32.mrf.mxu2 }
  0xe6   : > { %v550_v22 = vpack.c.bf16 %v530_v21, %v530_v21  ;;  %v957_v21 = vadd.s32 24, %v1863_v59 }
  0xe8   : > { %566 = vst [vmem:[%s1827_s16 + $0x20] sm:$0xf] %v550_v22  ;;  %v649_v31 = vunpack.c.l.b16 %v550_v22 }
  0xed   : > { %v532_v27 = vpop.f32.mrf.mxu2 }
  0xee   : > { %v552_v30 = vpack.c.bf16 %v532_v27, %v532_v27  ;;  %v965_v27 = vadd.s32 %v1872_v0, %v956_v20 }
  0xef   : > { %856 = vmatmul.bf16.gmra.mxu3 %v674_v28  ;;  %885 = vmatmul.bf16.gmra.mxu0 %v675_v29  ;;  %v966_v28 = vadd.s32 %v1872_v0, %v957_v21 }
  0xf0   : > { %568 = vst [vmem:[%s1827_s16 + $0x2c] sm:$0xf] %v552_v30  ;;  %v652_v32 = vunpack.c.l.b16 %v552_v30  ;;  %vm973_vm2 = vcmp.lt.s32.totalorder %v965_v27, 64 }
  0xf1   : > { %vm974_vm3 = vcmp.lt.s32.totalorder %v966_v28, 64 }
  0xf2   : > { %v670_v33 = vpack.c.b16 %v652_v32, %v649_v31 }
  0xf4   : > { %904 = vmatmul.bf16.gmra.mxu1 %v670_v33 }
  0xf5   : > { %v535_v34 = vpop.f32.mrf.mxu2 }
  0xf6   : > { %v554_v35 = vpack.c.bf16 %v535_v34, %v535_v34 }
  0xf8   : > { %570 = vst [vmem:[%s1827_s16 + $0x38] sm:$0xf] %v554_v35  ;;  %v655_v38 = vunpack.c.l.b16 %v554_v35 }
  0xfd   : > { %v537_v36 = vpop.f32.mrf.mxu2 }
  0xfe   : > { %v556_v37 = vpack.c.bf16 %v537_v36, %v537_v36 }
 0x100   : > { %572 = vst [vmem:[%s1827_s16 + $0x44] sm:$0xf] %v556_v37  ;;  %v658_v39 = vunpack.c.l.b16 %v556_v37 }
 0x102   : > { %v673_v40 = vpack.c.b16 %v658_v39, %v655_v38 }
 0x104   : > { %909 = vmatmul.bf16.gmra.mxu1 %v673_v40 }
 0x105   : > { %v540_v41 = vpop.f32.mrf.mxu2 }
 0x106   : > { %v558_v42 = vpack.c.bf16 %v540_v41, %v540_v41 }
 0x108   : > { %574 = vst [vmem:[%s1827_s16 + $0x50] sm:$0xf] %v558_v42  ;;  %v661_v45 = vunpack.c.l.b16 %v558_v42  ;;  %v958_v42 = vadd.s32 32, %v1863_v59 }
 0x10d   : > { %v542_v43 = vpop.f32.mrf.mxu2 }
 0x10e   : > { %v560_v44 = vpack.c.bf16 %v542_v43, %v542_v43  ;;  %v959_v43 = vadd.s32 40, %v1863_v59 }
 0x110   : > { %576 = vst [vmem:[%s1827_s16 + $0x5c] sm:$0xf] %v560_v44  ;;  %v664_v46 = vunpack.c.l.b16 %v560_v44 }
 0x112   : > { %v676_v47 = vpack.c.b16 %v664_v46, %v661_v45 }
 0x114   : > { %914 = vmatmul.bf16.gmra.mxu1 %v676_v47 }
 0x13c   : > { %v871_v49 = vpop.f32.mrf.mxu0 }
 0x142   : > { %v842_v48 = vpop.f32.mrf.mxu3 }
 0x143   : > { %v872_v52 = vadd.f32 %v871_v49, %v842_v48  ;;  %v967_v49 = vadd.s32 %v1872_v0, %v958_v42 }
 0x144   : > { %v873_v51 = vpop.f32.mrf.mxu0 }
 0x145   : > { %vm975_vm4 = vcmp.lt.s32.totalorder %v967_v49, 64 }
 0x14a   : > { %v844_v50 = vpop.f32.mrf.mxu3 }
 0x14b   : > { %v874_v63 = vadd.f32 %v873_v51, %v844_v50  ;;  %v968_v50 = vadd.s32 %v1872_v0, %v959_v43 }
 0x14c   : > { %v876_v58 = vpop.f32.mrf.mxu0 }
 0x14d   : > { %vm976_vm5 = vcmp.lt.s32.totalorder %v968_v50, 64 }
 0x152   : > { %v847_v57 = vpop.f32.mrf.mxu3 }
 0x153   : > { %v877_v11 = vadd.f32 %v876_v58, %v847_v57 }
 0x154   : > { %v878_v10 = vpop.f32.mrf.mxu0 }
 0x15a   : > { %v849_v7 = vpop.f32.mrf.mxu3 }
 0x15b   : > { %v879_v22 = vadd.f32 %v878_v10, %v849_v7 }
 0x15c   : > { %v881_v23 = vpop.f32.mrf.mxu0 }
 0x161   : > { %v900_v53 = vpop.f32.mrf.mxu1 }
 0x162   : > { %v901_v55 = vadd.f32 %v900_v53, %v872_v52  ;;  %v852_v19 = vpop.f32.mrf.mxu3 }
 0x163   : > { %v882_v32 = vadd.f32 %v881_v23, %v852_v19 }
 0x164   : > { %v924_v60 = vmul.f32 %v1860_v56, %v901_v55  ;;  %v883_v39 = vpop.f32.mrf.mxu0 }
 0x166   : > { %v936_v2 = vadd.f32 %v1869_v61, %v924_v60 }
 0x168   : > { %v944_v8 = vmax.f32 %v936_v2, 0.0 }
 0x169   : > { %v902_v1 = vpop.f32.mrf.mxu1 }
 0x16a   : > { %v903_v3 = vadd.f32 %v902_v1, %v874_v63  ;;  %v979_v14 = vsel %vm971_vm0, %v944_v8, 0.0  ;;  %v854_v34 = vpop.f32.mrf.mxu3 }
 0x16b   : > { %v884_v44 = vadd.f32 %v883_v39, %v854_v34 }
 0x16c   : > { %v925_v6 = vmul.f32 %v1860_v56, %v903_v3  ;;  %v886_v52 = vpop.f32.mrf.mxu0 }
 0x16e   : > { %v937_v9 = vadd.f32 %v1869_v61, %v925_v6  ;;  %v961_v6 = vadd.s32 56, %v1863_v59 }
 0x170   : > { %v945_v12 = vmax.f32 %v937_v9, 0.0 }
 0x171   : > { %v905_v13 = vpop.f32.mrf.mxu1 }
 0x172   : > { %v980_v15 = vsel %vm972_vm1, %v945_v12, 0.0  ;;  %v906_v16 = vadd.f32 %v905_v13, %v877_v11  ;;  %v857_v48 = vpop.f32.mrf.mxu3  ;;  %v969_v11 = vadd.s32 %v1872_v0, %v960_v5  ;;  %v970_v12 = vadd.s32 %v1872_v0, %v961_v6 }
 0x173   : > { %v1449_v17 = vpack.c.bf16 %v980_v15, %v979_v14  ;;  %v887_v55 = vadd.f32 %v886_v52, %v857_v48 }
 0x174   : > { %v926_v18 = vmul.f32 %v1860_v56, %v906_v16  ;;  %v888_v4 = vpop.f32.mrf.mxu0  ;;  %vm977_vm6 = vcmp.lt.s32.totalorder %v969_v11, 64  ;;  %vm978_vm7 = vcmp.lt.s32.totalorder %v970_v12, 64 }
 0x175   : > { %1450 = vst [vmem:[%s1881_s14] sm:$0xff] %v1449_v17  }
 0x176   : > { %v938_v25 = vadd.f32 %v1869_v61, %v926_v18 }
 0x178   : > { %v946_v30 = vmax.f32 %v938_v25, 0.0 }
 0x179   : > { %v907_v24 = vpop.f32.mrf.mxu1 }
 0x17a   : > { %v908_v26 = vadd.f32 %v907_v24, %v879_v22  ;;  %v981_v36 = vsel %vm973_vm2, %v946_v30, 0.0  ;;  %v859_v2 = vpop.f32.mrf.mxu3 }
 0x17b   : > { %v889_v7 = vadd.f32 %v888_v4, %v859_v2 }
 0x17c   : > { %v927_v29 = vmul.f32 %v1860_v56, %v908_v26 }
 0x17e   : > { %v939_v31 = vadd.f32 %v1869_v61, %v927_v29 }
 0x180   : > { %v947_v33 = vmax.f32 %v939_v31, 0.0 }
 0x181   : > { %v910_v35 = vpop.f32.mrf.mxu1 }
 0x182   : > { %v982_v37 = vsel %vm974_vm3, %v947_v33, 0.0  ;;  %v911_v38 = vadd.f32 %v910_v35, %v882_v32 }
 0x183   : > { %v1454_v40 = vpack.c.bf16 %v982_v37, %v981_v36 }
 0x184   : > { %v928_v41 = vmul.f32 %v1860_v56, %v911_v38 }
 0x185   : > { %1466 = vst [vmem:[%s1881_s14 + $0x8] sm:$0xff] %v1454_v40  }
 0x186   : > { %v940_v46 = vadd.f32 %v1869_v61, %v928_v41 }
 0x188   : > { %v948_v53 = vmax.f32 %v940_v46, 0.0 }
 0x189   : > { %v912_v45 = vpop.f32.mrf.mxu1 }
 0x18a   : > { %v913_v47 = vadd.f32 %v912_v45, %v884_v44  ;;  %v983_v60 = vsel %vm975_vm4, %v948_v53, 0.0 }
 0x18c   : > { %v929_v51 = vmul.f32 %v1860_v56, %v913_v47  ;;  %v1044_v0 = vld [vmem:[%s1881_s14 + $0x8] sm:$0xf] (%p1602_p4)  ;;  %v1046_v19 = vld [vmem:[%s1881_s14 + $0xc] sm:$0xf] (%p1602_p4) }
 0x18d   : > { %1045 = vst [vmem:[%s1023_s17 + $0x18] sm:$0xf] (%p1602_p4), %v1044_v0 }
 0x18e   : > { %v941_v54 = vadd.f32 %v1869_v61, %v929_v51  ;;  %1047 = vst [vmem:[%s1023_s17 + $0x24] sm:$0xf] (%p1602_p4), %v1046_v19 }
 0x190   : > { %v949_v57 = vmax.f32 %v941_v54, 0.0 }
 0x191   : > { %v915_v58 = vpop.f32.mrf.mxu1 }
 0x192   : > { %v984_v62 = vsel %vm976_vm5, %v949_v57, 0.0  ;;  %v916_v63 = vadd.f32 %v915_v58, %v887_v55 }
 0x193   : > { %v1459_v1 = vpack.c.bf16 %v984_v62, %v983_v60 }
 0x194   : > { %v930_v3 = vmul.f32 %v1860_v56, %v916_v63 }
 0x195   : > { %1467 = vst [vmem:[%s1881_s14 + $0x10] sm:$0xff] %v1459_v1  }
 0x196   : > { %v942_v9 = vadd.f32 %v1869_v61, %v930_v3 }
 0x198   : > { %v950_v14 = vmax.f32 %v942_v9, 0.0 }
 0x199   : > { %v917_v8 = vpop.f32.mrf.mxu1 }
 0x19a   : > { %v918_v10 = vadd.f32 %v917_v8, %v889_v7  ;;  %v985_v17 = vsel %vm977_vm6, %v950_v14, 0.0 }
 0x19c   : > { %v931_v13 = vmul.f32 %v1860_v56, %v918_v10  ;;  %v1040_v56 = vld [vmem:[%s1881_s14] sm:$0xf] (%p1602_p4)  ;;  %v1048_v20 = vld [vmem:[%s1881_s14 + $0x10] sm:$0xf] (%p1602_p4)  ;;  %v1050_v21 = vld [vmem:[%s1881_s14 + $0x14] sm:$0xf] (%p1602_p4) }
 0x19d   : > { %1041 = vst [vmem:[%s1023_s17] sm:$0xf] (%p1602_p4), %v1040_v56 }
 0x19e   : > { %v943_v15 = vadd.f32 %v1869_v61, %v931_v13  ;;  %v1042_v61 = vld [vmem:[%s1881_s14 + $0x4] sm:$0xf] (%p1602_p4)  ;;  %1049 = vst [vmem:[%s1023_s17 + $0x30] sm:$0xf] (%p1602_p4), %v1048_v20 }
 0x19f   : > { %1043 = vst [vmem:[%s1023_s17 + $0xc] sm:$0xf] (%p1602_p4), %v1042_v61 }
 0x1a0   : > { %v951_v16 = vmax.f32 %v943_v15, 0.0  ;;  %1051 = vst [vmem:[%s1023_s17 + $0x3c] sm:$0xf] (%p1602_p4), %v1050_v21 }
 0x1a1   : > { %1019 = sbr.rel (!%p1602_p4) target bundleno = 431 (0x1af), region = 48 }
 0x1a2   : > { %v986_v59 = vsel %vm978_vm7, %v951_v16, 0.0 }
 0x1a3   : > { %v1464_v18 = vpack.c.bf16 %v986_v59, %v985_v17 }
 0x1a5   : > { %1468 = vst [vmem:[%s1881_s14 + $0x18] sm:$0xff] %v1464_v18  }
 0x1ac   : > { %v1052_v22 = vld [vmem:[%s1881_s14 + $0x18] sm:$0xf]  ;;  %v1054_v23 = vld [vmem:[%s1881_s14 + $0x1c] sm:$0xf] }
 0x1ad   : > { %1053 = vst [vmem:[%s1023_s17 + $0x48] sm:$0xf] %v1052_v22 }
 0x1ae   : > { %1055 = vst [vmem:[%s1023_s17 + $0x54] sm:$0xf] %v1054_v23 }
 0x1af PF: > { %p15_p8 = scmp.ge.s32.totalorder %s1592_s27, 4   ;;  %s1944_s24 = smov %s1531_s25 }
 0x1b0   : > { %s1945_s25 = smov %s1600_s30  ;;  %s1946_s26 = smov %s1592_s27 }
 0x1b1   :  { %17 = sbr.rel (!%p15_p8) target bundleno = 2 (0x2), region = 123 }

// kernel: mixhop_gcn_forward.11
= control target key start
LH: loop header
LB: loop body
LE: loop exit
PB: predicated region body
PF: predicated region fallthrough
CT: control target
= control target key end

     0   :  { %s1414_s21 = smov 0   ;;  %s1416_s22 = smov 0   ;;  %s1747_s0 = inlined_call_operand.vmem [shape: bf16[128,128], index: 0, kind: input, shape index: {}]   ;;  %s1748_s1 = inlined_call_operand.vmem [shape: bf16[128,384], index: 1, kind: input, shape index: {}]   ;;  %s1749_s2 = inlined_call_operand.vmem [shape: bf16[384,128], index: 2, kind: input, shape index: {}]   ;;  %s1750_s3 = inlined_call_operand.vmem [shape: f32[1,128], index: 3, kind: input, shape index: {}]   ;;  %s1751_s4 = inlined_call_operand.vmem [shape: f32[1,128], index: 4, kind: input, shape index: {}]   ;;  %s1752_s5 = inlined_call_operand.vmem [shape: bf16[128,384], index: 5, kind: input, shape index: {}, may-alias: {5,6}]   ;;  %s1753_s6 = inlined_call_operand.vmem [shape: bf16[128,384], index: 6, kind: output, shape index: {}, may-alias: {5,6}]  }
   0x1   :  { %s1418_s23 = smov 0  }
   0x2 LB: > { %s1427_s5 = sadd.s32 4294967295, %s1377_s23   ;;  %s1429_s24 = sadd.s32 1, %s1377_s23   ;;  %s1377_s23 = sphi %s1418_s23, %s1757_s23   ;;  %s1373_s22 = sphi %s1416_s22, %s1756_s22   ;;  %s1369_s21 = sphi %s1414_s21, %s1755_s21  }
   0x3   : > { %s130_s25 = ssub.s32 %s1377_s23, %s1429_s24  ;;  %s133_s26 = sadd.s32 1, %s1373_s22 }
   0x4   : > { %p131_p0 = scmp.eq.s32.totalorder %s130_s25, 0  ;;  %p143_p1 = scmp.ne.s32.totalorder %s1373_s22, %s1369_s21 }
   0x5   : > { %p144_p2 = scmp.eq.s32.totalorder %s1427_s5, 1  ;;  %p1013_p3 = scmp.ge.s32.totalorder %s1377_s23, 1 }
   0x6   : > { %s1437_s27 = scalar_select %p131_p0, %s1373_s22, %s133_s26  }
   0x7   : > { %p1439_p4 = por %p144_p2, %p143_p1  ;;  %p189_p5 = scmp.lt.s32.totalorder %s1377_s23, 3 }
   0x9   : > { %p190_p6 = pnand %p1013_p3, %p189_p5 }
   0xa   : > { %s1015_s7 = sshll.u32 (!%p190_p6), %s1427_s5, 3  ;;  %s1225_s29 = sshll.u32 (!%p190_p6), %s1427_s5, 6 }
   0xb   : > { %193 = sbr.rel (%p190_p6) target bundleno = 427 (0x1ab), region = 40  ;;  %p217_p7 = scmp.lt.s32.totalorder (!%p190_p6), %s1015_s7, 15 }
   0xc   : > { %s213_s9 = sand.u32 (!%p190_p6), 1, %s1369_s21  }
  0x10   : > { %v1119_v0 = vld [vmem:[%s1748_s1 + $0xa8] sm:$0xf]  ;;  %v1264_v1 = vld [vmem:[%s1748_s1 + $0xb0] sm:$0xf0]  ;;  %v1107_v2 = vld [vmem:[%s1748_s1 + $0x90] sm:$0xf] }
  0x11   : > { %v1120_v3 = vor.u32 %v1264_v1, %v1119_v0  ;;  %v1261_v4 = vld [vmem:[%s1748_s1 + $0x98] sm:$0xf0]  ;;  %v1263_v5 = vld [vmem:[%s1748_s1 + $0xac] sm:$0xf]  ;;  %v1121_v6 = vld [vmem:[%s1748_s1 + $0xb4] sm:$0xf0] }
  0x12   : > { %v1124_v7 = vor.u32 %v1263_v5, %v1121_v6  ;;  %v1260_v8 = vld [vmem:[%s1748_s1 + $0x94] sm:$0xf]  ;;  %v1108_v9 = vor.u32 %v1261_v4, %v1107_v2  ;;  %v1109_v10 = vld [vmem:[%s1748_s1 + $0x9c] sm:$0xf0]  ;;  %v1095_v11 = vld [vmem:[%s1748_s1 + $0x78] sm:$0xf] }
  0x13   : > { %415 = vmatpush.bf16.msra.mxu0 %v1120_v3  ;;  %1313 = vmatpush.bf16.msra.mxu2 %v1120_v3  ;;  %v1258_v12 = vld [vmem:[%s1748_s1 + $0x80] sm:$0xf0]  ;;  %v1112_v13 = vor.u32 %v1260_v8, %v1109_v10  ;;  %v1257_v14 = vld [vmem:[%s1748_s1 + $0x7c] sm:$0xf]  ;;  %v1097_v15 = vld [vmem:[%s1748_s1 + $0x84] sm:$0xf0] }
  0x14   : > { %444 = vmatpush.bf16.msra.mxu1 %v1124_v7  ;;  %1321 = vmatpush.bf16.msra.mxu3 %v1124_v7  ;;  %v1096_v16 = vor.u32 %v1258_v12, %v1095_v11  ;;  %v1083_v17 = vld [vmem:[%s1748_s1 + $0x60] sm:$0xf]  ;;  %v1255_v18 = vld [vmem:[%s1748_s1 + $0x68] sm:$0xf0]  ;;  %v1100_v19 = vor.u32 %v1257_v14, %v1097_v15  ;;  %v1254_v20 = vld [vmem:[%s1748_s1 + $0x64] sm:$0xf] }
  0x15   : > { %v1085_v21 = vld [vmem:[%s1748_s1 + $0x6c] sm:$0xf0]  ;;  %v1084_v22 = vor.u32 %v1255_v18, %v1083_v17  ;;  %v1071_v23 = vld [vmem:[%s1748_s1 + $0x48] sm:$0xf]  ;;  %v1252_v24 = vld [vmem:[%s1748_s1 + $0x50] sm:$0xf0] }
  0x16   : > { %v1088_v25 = vor.u32 %v1254_v20, %v1085_v21  ;;  %v1251_v26 = vld [vmem:[%s1748_s1 + $0x4c] sm:$0xf]  ;;  %v1073_v27 = vld [vmem:[%s1748_s1 + $0x54] sm:$0xf0]  ;;  %v1072_v28 = vor.u32 %v1252_v24, %v1071_v23  ;;  %v1059_v29 = vld [vmem:[%s1748_s1 + $0x30] sm:$0xf] }
  0x17   : > { %416 = vmatpush.bf16.msra.mxu0 %v1108_v9  ;;  %1314 = vmatpush.bf16.msra.mxu2 %v1108_v9  ;;  %v1249_v30 = vld [vmem:[%s1748_s1 + $0x38] sm:$0xf0]  ;;  %v1076_v31 = vor.u32 %v1251_v26, %v1073_v27  ;;  %v1248_v32 = vld [vmem:[%s1748_s1 + $0x34] sm:$0xf]  ;;  %v1061_v33 = vld [vmem:[%s1748_s1 + $0x3c] sm:$0xf0] }
  0x18   : > { %445 = vmatpush.bf16.msra.mxu1 %v1112_v13  ;;  %1322 = vmatpush.bf16.msra.mxu3 %v1112_v13  ;;  %v1060_v34 = vor.u32 %v1249_v30, %v1059_v29  ;;  %v1047_v35 = vld [vmem:[%s1748_s1 + $0x18] sm:$0xf]  ;;  %v1246_v36 = vld [vmem:[%s1748_s1 + $0x20] sm:$0xf0]  ;;  %v1064_v37 = vor.u32 %v1248_v32, %v1061_v33  ;;  %s1759_s7 = smov (!%p217_p7, %s1015_s7), 15  ;;  %v1272_v14 = vld [vmem:[%s1749_s2 + $0x30] sm:$0xff] }
  0x19   : > { %v1245_v38 = vld [vmem:[%s1748_s1 + $0x1c] sm:$0xf]  ;;  %v1049_v39 = vld [vmem:[%s1748_s1 + $0x24] sm:$0xf0]  ;;  %v1048_v40 = vor.u32 %v1246_v36, %v1047_v35  ;;  %v1035_v41 = vld [vmem:[%s1748_s1] sm:$0xf] }
  0x1a   : > { %v1243_v42 = vld [vmem:[%s1748_s1 + $0x8] sm:$0xf0]  ;;  %v1052_v43 = vor.u32 %v1245_v38, %v1049_v39  ;;  %s1016_s10 = sshll.u32 %s1759_s7, 2  ;;  %v1127_v44 = vld [vmem:[%s1748_s1 + $0xb0] sm:$0xf]  ;;  %v1273_v12 = vld [vmem:[%s1749_s2 + $0x38] sm:$0xff] }
  0x1b   : > { %417 = vmatpush.bf16.msra.mxu0 %v1096_v16  ;;  %1315 = vmatpush.bf16.msra.mxu2 %v1096_v16  ;;  %v1265_v45 = vld [vmem:[%s1748_s1 + $0xb8] sm:$0xf0]  ;;  %v1242_v46 = vld [vmem:[%s1748_s1 + $0x4] sm:$0xf]  ;;  %v1037_v47 = vld [vmem:[%s1748_s1 + $0xc] sm:$0xf0]  ;;  %v1036_v48 = vor.u32 %v1243_v42, %v1035_v41  ;;  %s1549_s20 = scalar_lea.vmem %s1747_s0, %s1016_s10 }
  0x1c   : > { %446 = vmatpush.bf16.msra.mxu1 %v1100_v19  ;;  %1323 = vmatpush.bf16.msra.mxu3 %v1100_v19  ;;  %v1128_v49 = vor.u32 %v1265_v45, %v1127_v44  ;;  %v1040_v50 = vor.u32 %v1242_v46, %v1037_v47  ;;  %v1115_v51 = vld [vmem:[%s1748_s1 + $0x98] sm:$0xf]  ;;  %v1262_v52 = vld [vmem:[%s1748_s1 + $0xa0] sm:$0xf0]  ;;  %v1240_v54 = vld [vmem:[%s1549_s20 + $0x10] sm:$0xff]  ;;  %s1014_s10 = sshll.u32 %s213_s9, 5 }
  0x1d   : > { %v1238_v53 = vld [vmem:[%s1549_s20] sm:$0xff]  ;;  %v1116_v55 = vor.u32 %v1262_v52, %v1115_v51  ;;  %v1259_v57 = vld [vmem:[%s1748_s1 + $0x88] sm:$0xf0]  ;;  %v1091_v59 = vld [vmem:[%s1748_s1 + $0x68] sm:$0xf]  ;;  %s1227_s21 = smul.u32 (%p1439_p4), 96, %s1427_s5 }
  0x1e   : > { %v1103_v56 = vld [vmem:[%s1748_s1 + $0x80] sm:$0xf]  ;;  %v1256_v60 = vld [vmem:[%s1748_s1 + $0x70] sm:$0xf0]  ;;  %v1079_v62 = vld [vmem:[%s1748_s1 + $0x50] sm:$0xf] }
  0x1f   : > { %418 = vmatpush.bf16.msra.mxu0 %v1084_v22  ;;  %1316 = vmatpush.bf16.msra.mxu2 %v1084_v22  ;;  %v1104_v58 = vor.u32 %v1259_v57, %v1103_v56  ;;  %v1092_v61 = vor.u32 %v1256_v60, %v1091_v59  ;;  %v1253_v63 = vld [vmem:[%s1748_s1 + $0x58] sm:$0xf0]  ;;  %v1067_v1 = vld [vmem:[%s1748_s1 + $0x38] sm:$0xf]  ;;  %v1250_v2 = vld [vmem:[%s1748_s1 + $0x40] sm:$0xf0]  ;;  %s981_s13 = scalar_lea.vmem (%p1439_p4), %s1753_s6, %s1227_s21 }
  0x20   : > { %447 = vmatpush.bf16.msra.mxu1 %v1088_v25  ;;  %1324 = vmatpush.bf16.msra.mxu3 %v1088_v25  ;;  %v1080_v0 = vor.u32 %v1253_v63, %v1079_v62  ;;  %v1239_v3 = vld [vmem:[%s1549_s20 + $0x8] sm:$0xff]  ;;  %v1241_v4 = vld [vmem:[%s1549_s20 + $0x18] sm:$0xff]  ;;  %v1068_v5 = vor.u32 %v1250_v2, %v1067_v1  ;;  %v1055_v6 = vld [vmem:[%s1748_s1 + $0x20] sm:$0xf]  ;;  %s1693_s20 = scalar_lea.vmem [#allocation2], %s1014_s10 }
  0x21   : > { %v1247_v7 = vld [vmem:[%s1748_s1 + $0x28] sm:$0xf0]  ;;  %v1043_v9 = vld [vmem:[%s1748_s1 + $0x8] sm:$0xf]  ;;  %v1244_v10 = vld [vmem:[%s1748_s1 + $0x10] sm:$0xf0] }
  0x22   : > { %v1056_v8 = vor.u32 %v1247_v7, %v1055_v6  ;;  %v1044_v11 = vor.u32 %v1244_v10, %v1043_v9  ;;  %v1281_v13 = vld [vmem:[%s1749_s2 + $0x78] sm:$0xff]  ;;  %v1280_v15 = vld [vmem:[%s1749_s2 + $0x70] sm:$0xff]  ;;  %v1271_v16 = vld [vmem:[%s1749_s2 + $0x28] sm:$0xff] }
  0x23   : > { %419 = vmatpush.bf16.msra.mxu0 %v1072_v28  ;;  %1317 = vmatpush.bf16.msra.mxu2 %v1072_v28  ;;  %v1279_v17 = vld [vmem:[%s1749_s2 + $0x68] sm:$0xff]  ;;  %v1270_v18 = vld [vmem:[%s1749_s2 + $0x20] sm:$0xff]  ;;  %v1269_v20 = vld [vmem:[%s1749_s2 + $0x18] sm:$0xff] }
  0x24   : > { %448 = vmatpush.bf16.msra.mxu1 %v1076_v31  ;;  %1325 = vmatpush.bf16.msra.mxu3 %v1076_v31  ;;  %v1278_v19 = vld [vmem:[%s1749_s2 + $0x60] sm:$0xff]  ;;  %v1268_v21 = vld [vmem:[%s1749_s2 + $0x10] sm:$0xff]  ;;  %v1277_v22 = vld [vmem:[%s1749_s2 + $0x58] sm:$0xff] }
  0x25   : > { %v1267_v23 = vld [vmem:[%s1749_s2 + $0x8] sm:$0xff]  ;;  %v1276_v24 = vld [vmem:[%s1749_s2 + $0x50] sm:$0xff]  ;;  %v1266_v25 = vld [vmem:[%s1749_s2] sm:$0xff] }
  0x26   : > { %v1275_v26 = vld [vmem:[%s1749_s2 + $0x48] sm:$0xff]  ;;  %v1274_v27 = vld [vmem:[%s1749_s2 + $0x40] sm:$0xff]  ;;  %v1289_v28 = vld [vmem:[%s1749_s2 + $0xb8] sm:$0xff] }
  0x27   : > { %420 = vmatpush.bf16.msra.mxu0 %v1060_v34  ;;  %1318 = vmatpush.bf16.msra.mxu2 %v1060_v34  ;;  %v1288_v29 = vld [vmem:[%s1749_s2 + $0xb0] sm:$0xff]  ;;  %v1287_v30 = vld [vmem:[%s1749_s2 + $0xa8] sm:$0xff]  ;;  %v1286_v31 = vld [vmem:[%s1749_s2 + $0xa0] sm:$0xff] }
  0x28   : > { %449 = vmatpush.bf16.msra.mxu1 %v1064_v37  ;;  %1326 = vmatpush.bf16.msra.mxu3 %v1064_v37  ;;  %v1285_v32 = vld [vmem:[%s1749_s2 + $0x98] sm:$0xff]  ;;  %v1284_v35 = vld [vmem:[%s1749_s2 + $0x90] sm:$0xff]  ;;  %v1283_v37 = vld [vmem:[%s1749_s2 + $0x88] sm:$0xff] }
  0x29   : > { %v1282_v42 = vld [vmem:[%s1749_s2 + $0x80] sm:$0xff] }
  0x2b   : > { %421 = vmatpush.bf16.msra.mxu0 %v1048_v40  ;;  %1319 = vmatpush.bf16.msra.mxu2 %v1048_v40 }
  0x2c   : > { %450 = vmatpush.bf16.msra.mxu1 %v1052_v43  ;;  %1327 = vmatpush.bf16.msra.mxu3 %v1052_v43 }
  0x2f   : > { %422 = vmatpush.bf16.msra.mxu0 %v1036_v48  ;;  %1320 = vmatpush.bf16.msra.mxu2 %v1036_v48 }
  0x30   : > { %451 = vmatpush.bf16.msra.mxu1 %v1040_v50  ;;  %1328 = vmatpush.bf16.msra.mxu3 %v1040_v50 }
  0x32   : > { %423 = vmatmul.bf16.vlgmr.msra.gmra.mxu0 %v1238_v53  ;;  %433 = vmatmul.bf16.vlgmr.msra.gmra.mxu2 %v1240_v54 }
  0x33   : > { %473 = vmatpush.bf16.msrb.mxu2 %v1128_v49  ;;  %452 = vmatmul.bf16.vlgmr.msra.gmra.mxu1 %v1238_v53 }
  0x34   : > { %462 = vmatmul.bf16.vlgmr.msra.gmra.mxu3 %v1240_v54  ;;  %735 = vmatpush.bf16.msrb.mxu0 %v1281_v13 }
  0x35   : > { %706 = vmatpush.bf16.msrb.mxu3 %v1273_v12  ;;  %764 = vmatpush.bf16.msrb.mxu1 %v1289_v28 }
  0x37   : > { %474 = vmatpush.bf16.msrb.mxu2 %v1116_v55 }
  0x38   : > { %736 = vmatpush.bf16.msrb.mxu0 %v1280_v15 }
  0x39   : > { %707 = vmatpush.bf16.msrb.mxu3 %v1272_v14  ;;  %765 = vmatpush.bf16.msrb.mxu1 %v1288_v29  ;;  %v826_v14 = vlaneseq }
  0x3b   : > { %475 = vmatpush.bf16.msrb.mxu2 %v1104_v58 }
  0x3c   : > { %737 = vmatpush.bf16.msrb.mxu0 %v1279_v17  ;;  %v1672_v17 = vld [vmem:[%s1750_s3] ss:$0 sm:$0xff] }
  0x3d   : > { %708 = vmatpush.bf16.msrb.mxu3 %v1271_v16  ;;  %766 = vmatpush.bf16.msrb.mxu1 %v1287_v30 }
  0x3f   : > { %476 = vmatpush.bf16.msrb.mxu2 %v1092_v61 }
  0x40   : > { %738 = vmatpush.bf16.msrb.mxu0 %v1278_v19  ;;  %v1675_v19 = vshrl.u32 %v826_v14, 7 }
  0x41   : > { %709 = vmatpush.bf16.msrb.mxu3 %v1270_v18  ;;  %767 = vmatpush.bf16.msrb.mxu1 %v1286_v31 }
  0x42   : > { %428 = vmatmul.bf16.gmra.mxu0 %v1239_v3  ;;  %438 = vmatmul.bf16.gmra.mxu2 %v1241_v4 }
  0x43   : > { %477 = vmatpush.bf16.msrb.mxu2 %v1080_v0  ;;  %457 = vmatmul.bf16.gmra.mxu1 %v1239_v3 }
  0x44   : > { %467 = vmatmul.bf16.gmra.mxu3 %v1241_v4  ;;  %739 = vmatpush.bf16.msrb.mxu0 %v1277_v22  ;;  %v828_v22 = vadd.s32 8, %v1675_v19 }
  0x45   : > { %710 = vmatpush.bf16.msrb.mxu3 %v1269_v20  ;;  %768 = vmatpush.bf16.msrb.mxu1 %v1285_v32 }
  0x47   : > { %478 = vmatpush.bf16.msrb.mxu2 %v1068_v5 }
  0x48   : > { %740 = vmatpush.bf16.msrb.mxu0 %v1276_v24  ;;  %v1684_v24 = vstv %s1225_s29 }
  0x49   : > { %711 = vmatpush.bf16.msrb.mxu3 %v1268_v21  ;;  %769 = vmatpush.bf16.msrb.mxu1 %v1284_v35  ;;  %v1681_v21 = vld [vmem:[%s1751_s4] ss:$0 sm:$0xff]  ;;  %v836_v28 = vadd.s32 %v1684_v24, %v1675_v19  ;;  %v837_v29 = vadd.s32 %v1684_v24, %v828_v22 }
  0x4b   : > { %479 = vmatpush.bf16.msrb.mxu2 %v1056_v8  ;;  %vm844_vm0 = vcmp.lt.s32.totalorder %v836_v28, 64  ;;  %vm845_vm1 = vcmp.lt.s32.totalorder %v837_v29, 64  ;;  %v833_v29 = vadd.s32 48, %v1675_v19 }
  0x4c   : > { %741 = vmatpush.bf16.msrb.mxu0 %v1275_v26 }
  0x4d   : > { %712 = vmatpush.bf16.msrb.mxu3 %v1267_v23  ;;  %770 = vmatpush.bf16.msrb.mxu1 %v1283_v37 }
  0x4f   : > { %480 = vmatpush.bf16.msrb.mxu2 %v1044_v11 }
  0x50   : > { %742 = vmatpush.bf16.msrb.mxu0 %v1274_v27 }
  0x51   : > { %713 = vmatpush.bf16.msrb.mxu3 %v1266_v25  ;;  %771 = vmatpush.bf16.msrb.mxu1 %v1282_v42 }
  0x52   : > { %481 = vmatmul.bf16.vlgmr.msrb.gmra.mxu2 %v1238_v53 }
  0x62   : > { %486 = vmatmul.bf16.gmra.mxu2 %v1239_v3 }
  0x72   : > { %491 = vmatmul.bf16.gmra.mxu2 %v1240_v54 }
  0x82   : > { %496 = vmatmul.bf16.gmra.mxu2 %v1241_v4 }
  0xaf   : > { %v424_v33 = vpop.f32.mrf.mxu0 }
  0xb0   : > { %v453_v34 = vpop.f32.mrf.mxu1 }
  0xb5   : > { %v434_v36 = vpop.f32.mrf.mxu2 }
  0xb7   : > { %v426_v38 = vpop.f32.mrf.mxu0  ;;  %v463_v47 = vpop.f32.mrf.mxu3 }
  0xb8   : > { %v502_v39 = vpack.c.bf16 %v426_v38, %v424_v33  ;;  %v455_v40 = vpop.f32.mrf.mxu1 }
  0xb9   : > { %v503_v41 = vpack.c.bf16 %v455_v40, %v453_v34 }
  0xba   : > { %714 = vmatmul.bf16.vlgmr.msrb.gmra.mxu3 %v502_v39 }
  0xbb   : > { %743 = vmatmul.bf16.vlgmr.msrb.gmra.mxu0 %v503_v41 }
  0xbd   : > { %v436_v43 = vpop.f32.mrf.mxu2 }
  0xbe   : > { %v508_v56 = vpack.c.bf16 %v436_v43, %v434_v36 }
  0xbf   : > { %v429_v44 = vpop.f32.mrf.mxu0  ;;  %v465_v53 = vpop.f32.mrf.mxu3 }
  0xc0   : > { %v458_v45 = vpop.f32.mrf.mxu1  ;;  %v509_v55 = vpack.c.bf16 %v465_v53, %v463_v47 }
  0xc5   : > { %v439_v46 = vpop.f32.mrf.mxu2 }
  0xc7   : > { %v431_v48 = vpop.f32.mrf.mxu0  ;;  %v468_v57 = vpop.f32.mrf.mxu3 }
  0xc8   : > { %v505_v49 = vpack.c.bf16 %v431_v48, %v429_v44  ;;  %v460_v50 = vpop.f32.mrf.mxu1 }
  0xc9   : > { %v506_v51 = vpack.c.bf16 %v460_v50, %v458_v45  ;;  %v829_v45 = vadd.s32 16, %v1675_v19 }
  0xca   : > { %719 = vmatmul.bf16.gmra.mxu3 %v505_v49 }
  0xcb   : > { %748 = vmatmul.bf16.gmra.mxu0 %v506_v51  ;;  %v838_v51 = vadd.s32 %v1684_v24, %v829_v45 }
  0xcd   : > { %v441_v52 = vpop.f32.mrf.mxu2  ;;  %vm846_vm2 = vcmp.lt.s32.totalorder %v838_v51, 64 }
  0xce   : > { %v511_v63 = vpack.c.bf16 %v441_v52, %v439_v46  ;;  %v830_v46 = vadd.s32 24, %v1675_v19 }
  0xcf   : > { %v470_v60 = vpop.f32.mrf.mxu3 }
  0xd0   : > { %v512_v62 = vpack.c.bf16 %v470_v60, %v468_v57  ;;  %v839_v52 = vadd.s32 %v1684_v24, %v830_v46 }
  0xd2   : > { %vm847_vm3 = vcmp.lt.s32.totalorder %v839_v52, 64 }
  0xd5   : > { %v482_v54 = vpop.f32.mrf.mxu2 }
  0xda   : > { %724 = vmatmul.bf16.gmra.mxu3 %v508_v56 }
  0xdb   : > { %753 = vmatmul.bf16.gmra.mxu0 %v509_v55 }
  0xdd   : > { %v484_v58 = vpop.f32.mrf.mxu2 }
  0xde   : > { %v504_v59 = vpack.c.bf16 %v484_v58, %v482_v54 }
  0xe0   : > { %772 = vmatmul.bf16.vlgmr.msrb.gmra.mxu1 %v504_v59 }
  0xe5   : > { %v487_v61 = vpop.f32.mrf.mxu2 }
  0xea   : > { %729 = vmatmul.bf16.gmra.mxu3 %v511_v63 }
  0xeb   : > { %758 = vmatmul.bf16.gmra.mxu0 %v512_v62 }
  0xed   : > { %v489_v0 = vpop.f32.mrf.mxu2 }
  0xee   : > { %v507_v1 = vpack.c.bf16 %v489_v0, %v487_v61 }
  0xf0   : > { %777 = vmatmul.bf16.gmra.mxu1 %v507_v1 }
  0xf5   : > { %v492_v2 = vpop.f32.mrf.mxu2 }
  0xfd   : > { %v494_v3 = vpop.f32.mrf.mxu2 }
  0xfe   : > { %v510_v4 = vpack.c.bf16 %v494_v3, %v492_v2  ;;  %v831_v2 = vadd.s32 32, %v1675_v19  ;;  %v832_v3 = vadd.s32 40, %v1675_v19 }
 0x100   : > { %782 = vmatmul.bf16.gmra.mxu1 %v510_v4 }
 0x105   : > { %v497_v5 = vpop.f32.mrf.mxu2 }
 0x10d   : > { %v499_v6 = vpop.f32.mrf.mxu2 }
 0x10e   : > { %v513_v7 = vpack.c.bf16 %v499_v6, %v497_v5 }
 0x110   : > { %787 = vmatmul.bf16.gmra.mxu1 %v513_v7 }
 0x138   : > { %v744_v8 = vpop.f32.mrf.mxu0 }
 0x13d   : > { %v715_v9 = vpop.f32.mrf.mxu3 }
 0x13e   : > { %v745_v12 = vadd.f32 %v744_v8, %v715_v9 }
 0x140   : > { %v746_v10 = vpop.f32.mrf.mxu0 }
 0x145   : > { %v717_v11 = vpop.f32.mrf.mxu3 }
 0x146   : > { %v747_v23 = vadd.f32 %v746_v10, %v717_v11  ;;  %v840_v10 = vadd.s32 %v1684_v24, %v831_v2  ;;  %v841_v11 = vadd.s32 %v1684_v24, %v832_v3 }
 0x148   : > { %v749_v15 = vpop.f32.mrf.mxu0  ;;  %vm848_vm4 = vcmp.lt.s32.totalorder %v840_v10, 64  ;;  %vm849_vm5 = vcmp.lt.s32.totalorder %v841_v11, 64 }
 0x14d   : > { %v720_v18 = vpop.f32.mrf.mxu3 }
 0x14e   : > { %v750_v35 = vadd.f32 %v749_v15, %v720_v18 }
 0x150   : > { %v751_v30 = vpop.f32.mrf.mxu0 }
 0x155   : > { %v722_v32 = vpop.f32.mrf.mxu3 }
 0x156   : > { %v752_v47 = vadd.f32 %v751_v30, %v722_v32  ;;  %v834_v30 = vadd.s32 56, %v1675_v19 }
 0x158   : > { %v754_v42 = vpop.f32.mrf.mxu0 }
 0x15d   : > { %v773_v13 = vpop.f32.mrf.mxu1  ;;  %v725_v44 = vpop.f32.mrf.mxu3 }
 0x15e   : > { %v774_v16 = vadd.f32 %v773_v13, %v745_v12  ;;  %v755_v56 = vadd.f32 %v754_v42, %v725_v44 }
 0x160   : > { %v797_v20 = vmul.f32 %v1672_v17, %v774_v16  ;;  %v756_v57 = vpop.f32.mrf.mxu0 }
 0x162   : > { %v809_v26 = vadd.f32 %v1681_v21, %v797_v20 }
 0x164   : > { %v817_v33 = vmax.f32 %v809_v26, 0.0 }
 0x165   : > { %v775_v25 = vpop.f32.mrf.mxu1  ;;  %v727_v59 = vpop.f32.mrf.mxu3 }
 0x166   : > { %v776_v27 = vadd.f32 %v775_v25, %v747_v23  ;;  %v852_v38 = vsel %vm844_vm0, %v817_v33, 0.0  ;;  %v757_v4 = vadd.f32 %v756_v57, %v727_v59 }
 0x168   : > { %v798_v31 = vmul.f32 %v1672_v17, %v776_v27  ;;  %v759_v9 = vpop.f32.mrf.mxu0 }
 0x16a   : > { %v810_v34 = vadd.f32 %v1681_v21, %v798_v31 }
 0x16c   : > { %v818_v36 = vmax.f32 %v810_v34, 0.0 }
 0x16d   : > { %v778_v37 = vpop.f32.mrf.mxu1  ;;  %v730_v8 = vpop.f32.mrf.mxu3 }
 0x16e   : > { %v853_v39 = vsel %vm845_vm1, %v818_v36, 0.0  ;;  %v779_v40 = vadd.f32 %v778_v37, %v750_v35  ;;  %v760_v15 = vadd.f32 %v759_v9, %v730_v8  ;;  %v842_v35 = vadd.s32 %v1684_v24, %v833_v29 }
 0x16f   : > { %v1293_v41 = vpack.c.bf16 %v853_v39, %v852_v38  ;;  %v843_v36 = vadd.s32 %v1684_v24, %v834_v30 }
 0x170   : > { %v799_v43 = vmul.f32 %v1672_v17, %v779_v40  ;;  %v761_v27 = vpop.f32.mrf.mxu0  ;;  %vm850_vm6 = vcmp.lt.s32.totalorder %v842_v35, 64 }
 0x171   : > { %1294 = vst [vmem:[%s1693_s20] sm:$0xff] %v1293_v41   ;;  %vm851_vm7 = vcmp.lt.s32.totalorder %v843_v36, 64 }
 0x172   : > { %v811_v49 = vadd.f32 %v1681_v21, %v799_v43 }
 0x174   : > { %v819_v54 = vmax.f32 %v811_v49, 0.0 }
 0x175   : > { %v780_v48 = vpop.f32.mrf.mxu1  ;;  %v732_v26 = vpop.f32.mrf.mxu3 }
 0x176   : > { %v781_v50 = vadd.f32 %v780_v48, %v752_v47  ;;  %v854_v61 = vsel %vm846_vm2, %v819_v54, 0.0  ;;  %v762_v31 = vadd.f32 %v761_v27, %v732_v26 }
 0x178   : > { %v800_v53 = vmul.f32 %v1672_v17, %v781_v50 }
 0x17a   : > { %v812_v55 = vadd.f32 %v1681_v21, %v800_v53 }
 0x17c   : > { %v820_v58 = vmax.f32 %v812_v55, 0.0 }
 0x17d   : > { %v783_v60 = vpop.f32.mrf.mxu1 }
 0x17e   : > { %v855_v62 = vsel %vm847_vm3, %v820_v58, 0.0  ;;  %v784_v63 = vadd.f32 %v783_v60, %v755_v56 }
 0x17f   : > { %v1298_v0 = vpack.c.bf16 %v855_v62, %v854_v61 }
 0x180   : > { %v801_v1 = vmul.f32 %v1672_v17, %v784_v63 }
 0x181   : > { %1310 = vst [vmem:[%s1693_s20 + $0x8] sm:$0xff] %v1298_v0  }
 0x182   : > { %v813_v6 = vadd.f32 %v1681_v21, %v801_v1 }
 0x184   : > { %v821_v13 = vmax.f32 %v813_v6, 0.0 }
 0x185   : > { %v785_v5 = vpop.f32.mrf.mxu1 }
 0x186   : > { %v786_v7 = vadd.f32 %v785_v5, %v757_v4  ;;  %v856_v20 = vsel %vm848_vm4, %v821_v13, 0.0 }
 0x188   : > { %v802_v12 = vmul.f32 %v1672_v17, %v786_v7  ;;  %v908_v24 = vld [vmem:[%s1693_s20 + $0x8] sm:$0xf] (%p1439_p4)  ;;  %v910_v43 = vld [vmem:[%s1693_s20 + $0xc] sm:$0xf] (%p1439_p4) }
 0x189   : > { %1230 = vst [vmem:[%s981_s13 + $0x20] sm:$0xf] (%p1439_p4), %v908_v24 }
 0x18a   : > { %v814_v14 = vadd.f32 %v1681_v21, %v802_v12  ;;  %1231 = vst [vmem:[%s981_s13 + $0x2c] sm:$0xf] (%p1439_p4), %v910_v43 }
 0x18c   : > { %v822_v16 = vmax.f32 %v814_v14, 0.0 }
 0x18d   : > { %v788_v18 = vpop.f32.mrf.mxu1 }
 0x18e   : > { %v857_v22 = vsel %vm849_vm5, %v822_v16, 0.0  ;;  %v789_v23 = vadd.f32 %v788_v18, %v760_v15 }
 0x18f   : > { %v1303_v25 = vpack.c.bf16 %v857_v22, %v856_v20 }
 0x190   : > { %v803_v28 = vmul.f32 %v1672_v17, %v789_v23 }
 0x191   : > { %1311 = vst [vmem:[%s1693_s20 + $0x10] sm:$0xff] %v1303_v25  }
 0x192   : > { %v815_v33 = vadd.f32 %v1681_v21, %v803_v28 }
 0x194   : > { %v823_v38 = vmax.f32 %v815_v33, 0.0 }
 0x195   : > { %v790_v32 = vpop.f32.mrf.mxu1 }
 0x196   : > { %v791_v34 = vadd.f32 %v790_v32, %v762_v31  ;;  %v858_v41 = vsel %vm850_vm6, %v823_v38, 0.0 }
 0x198   : > { %v804_v37 = vmul.f32 %v1672_v17, %v791_v34  ;;  %v904_v17 = vld [vmem:[%s1693_s20] sm:$0xf] (%p1439_p4)  ;;  %v912_v44 = vld [vmem:[%s1693_s20 + $0x10] sm:$0xf] (%p1439_p4)  ;;  %v914_v45 = vld [vmem:[%s1693_s20 + $0x14] sm:$0xf] (%p1439_p4) }
 0x199   : > { %1228 = vst [vmem:[%s981_s13 + $0x8] sm:$0xf] (%p1439_p4), %v904_v17 }
 0x19a   : > { %v816_v39 = vadd.f32 %v1681_v21, %v804_v37  ;;  %v906_v21 = vld [vmem:[%s1693_s20 + $0x4] sm:$0xf] (%p1439_p4)  ;;  %1232 = vst [vmem:[%s981_s13 + $0x38] sm:$0xf] (%p1439_p4), %v912_v44 }
 0x19b   : > { %1229 = vst [vmem:[%s981_s13 + $0x14] sm:$0xf] (%p1439_p4), %v906_v21 }
 0x19c   : > { %v824_v40 = vmax.f32 %v816_v39, 0.0  ;;  %1233 = vst [vmem:[%s981_s13 + $0x44] sm:$0xf] (%p1439_p4), %v914_v45 }
 0x19d   : > { %882 = sbr.rel (!%p1439_p4) target bundleno = 427 (0x1ab), region = 44 }
 0x19e   : > { %v859_v19 = vsel %vm851_vm7, %v824_v40, 0.0 }
 0x19f   : > { %v1308_v42 = vpack.c.bf16 %v859_v19, %v858_v41 }
 0x1a1   : > { %1312 = vst [vmem:[%s1693_s20 + $0x18] sm:$0xff] %v1308_v42  }
 0x1a8   : > { %v916_v46 = vld [vmem:[%s1693_s20 + $0x18] sm:$0xf]  ;;  %v918_v47 = vld [vmem:[%s1693_s20 + $0x1c] sm:$0xf] }
 0x1a9   : > { %1234 = vst [vmem:[%s981_s13 + $0x50] sm:$0xf] %v916_v46 }
 0x1aa   : > { %1235 = vst [vmem:[%s981_s13 + $0x5c] sm:$0xf] %v918_v47 }
 0x1ab PF: > { %p13_p8 = scmp.ge.s32.totalorder %s1429_s24, 4   ;;  %s1755_s21 = smov %s1373_s22 }
 0x1ac   : > { %s1756_s22 = smov %s1437_s27  ;;  %s1757_s23 = smov %s1429_s24 }
 0x1ad   :  { %15 = sbr.rel (!%p13_p8) target bundleno = 2 (0x2), region = 111 }

// kernel: mixhop_gcn_forward.10
= control target key start
LH: loop header
LB: loop body
LE: loop exit
PB: predicated region body
PF: predicated region fallthrough
CT: control target
= control target key end

     0   :  { %s1585_s24 = smov 0   ;;  %s1587_s25 = smov 0   ;;  %s1943_s0 = inlined_call_operand.vmem [shape: bf16[128,128], index: 0, kind: input, shape index: {}]   ;;  %s1944_s1 = inlined_call_operand.vmem [shape: bf16[128,384], index: 1, kind: input, shape index: {}]   ;;  %s1945_s2 = inlined_call_operand.vmem [shape: bf16[384,128], index: 2, kind: input, shape index: {}]   ;;  %s1946_s3 = inlined_call_operand.vmem [shape: f32[1,128], index: 3, kind: input, shape index: {}]   ;;  %s1947_s4 = inlined_call_operand.vmem [shape: f32[1,128], index: 4, kind: input, shape index: {}]   ;;  %s1948_s5 = inlined_call_operand.vmem [shape: bf16[128,384], index: 5, kind: input, shape index: {}, may-alias: {5,7}]   ;;  %s1949_s6 = inlined_call_operand.vmem [shape: bf16[128,384], index: 6, kind: output, shape index: {0}]   ;;  %s1950_s7 = inlined_call_operand.vmem [shape: bf16[128,384], index: 7, kind: output, shape index: {1}, may-alias: {5,7}]  }
   0x1   :  { %s1589_s26 = smov 0  }
   0x2 LB: > { %s1598_s5 = sadd.s32 4294967295, %s1543_s26   ;;  %s1600_s27 = sadd.s32 1, %s1543_s26   ;;  %s1543_s26 = sphi %s1589_s26, %s1954_s26   ;;  %s1539_s25 = sphi %s1587_s25, %s1953_s25   ;;  %s1535_s24 = sphi %s1585_s24, %s1952_s24  }
   0x3   : > { %s158_s28 = ssub.s32 %s1543_s26, %s1600_s27  ;;  %s161_s29 = sadd.s32 1, %s1539_s25 }
   0x4   : > { %p159_p0 = scmp.eq.s32.totalorder %s158_s28, 0  ;;  %p171_p1 = scmp.ne.s32.totalorder %s1539_s25, %s1535_s24 }
   0x5   : > { %p172_p2 = scmp.eq.s32.totalorder %s1598_s5, 1  ;;  %p1176_p3 = scmp.ge.s32.totalorder %s1543_s26, 1 }
   0x6   : > { %s1608_s30 = scalar_select %p159_p0, %s1539_s25, %s161_s29  }
   0x7   : > { %p1610_p4 = por %p172_p2, %p171_p1  ;;  %p217_p5 = scmp.lt.s32.totalorder %s1543_s26, 3 }
   0x9   : > { %p218_p6 = pnand %p1176_p3, %p217_p5 }
   0xa   : > { %s1178_s13 = sshll.u32 (!%p218_p6), %s1598_s5, 3  ;;  %s1390_s28 = sshll.u32 (!%p218_p6), %s1598_s5, 6 }
   0xb   : > { %221 = sbr.rel (%p218_p6) target bundleno = 431 (0x1af), region = 40  ;;  %p253_p7 = scmp.lt.s32.totalorder (!%p218_p6), %s1178_s13, 15 }
   0xc   : > { %s249_s11 = sand.u32 (!%p218_p6), 1, %s1535_s24  }
   0xd   : > { %s1177_s12 = sshll.u32 (!%p218_p6), %s249_s11, 5 }
   0xe   : > { %s1889_s14 = scalar_lea.vmem (!%p218_p6), [#allocation2], %s1177_s12 }
  0x10   : > { %v1284_v0 = vld [vmem:[%s1944_s1 + $0xa8] sm:$0xf]  ;;  %v1429_v1 = vld [vmem:[%s1944_s1 + $0xb0] sm:$0xf0]  ;;  %v1428_v2 = vld [vmem:[%s1944_s1 + $0xac] sm:$0xf] }
  0x11   : > { %v1285_v3 = vor.u32 %v1429_v1, %v1284_v0  ;;  %v1286_v4 = vld [vmem:[%s1944_s1 + $0xb4] sm:$0xf0]  ;;  %v1272_v5 = vld [vmem:[%s1944_s1 + $0x90] sm:$0xf]  ;;  %v1426_v6 = vld [vmem:[%s1944_s1 + $0x98] sm:$0xf0] }
  0x12   : > { %v1289_v7 = vor.u32 %v1428_v2, %v1286_v4  ;;  %v1425_v8 = vld [vmem:[%s1944_s1 + $0x94] sm:$0xf]  ;;  %v1274_v9 = vld [vmem:[%s1944_s1 + $0x9c] sm:$0xf0]  ;;  %v1273_v10 = vor.u32 %v1426_v6, %v1272_v5  ;;  %v1260_v12 = vld [vmem:[%s1944_s1 + $0x78] sm:$0xf] }
  0x13   : > { %458 = vmatpush.bf16.msra.mxu0 %v1285_v3  ;;  %1478 = vmatpush.bf16.msra.mxu2 %v1285_v3  ;;  %v1277_v11 = vor.u32 %v1425_v8, %v1274_v9  ;;  %v1423_v13 = vld [vmem:[%s1944_s1 + $0x80] sm:$0xf0]  ;;  %v1422_v14 = vld [vmem:[%s1944_s1 + $0x7c] sm:$0xf]  ;;  %v1262_v15 = vld [vmem:[%s1944_s1 + $0x84] sm:$0xf0] }
  0x14   : > { %487 = vmatpush.bf16.msra.mxu1 %v1289_v7  ;;  %1486 = vmatpush.bf16.msra.mxu3 %v1289_v7  ;;  %v1261_v16 = vor.u32 %v1423_v13, %v1260_v12  ;;  %v1265_v17 = vor.u32 %v1422_v14, %v1262_v15  ;;  %v1248_v18 = vld [vmem:[%s1944_s1 + $0x60] sm:$0xf]  ;;  %v1420_v19 = vld [vmem:[%s1944_s1 + $0x68] sm:$0xf0]  ;;  %v1419_v20 = vld [vmem:[%s1944_s1 + $0x64] sm:$0xf] }
  0x15   : > { %v1250_v21 = vld [vmem:[%s1944_s1 + $0x6c] sm:$0xf0]  ;;  %v1249_v22 = vor.u32 %v1420_v19, %v1248_v18  ;;  %v1236_v24 = vld [vmem:[%s1944_s1 + $0x48] sm:$0xf]  ;;  %v1417_v25 = vld [vmem:[%s1944_s1 + $0x50] sm:$0xf0] }
  0x16   : > { %v1253_v23 = vor.u32 %v1419_v20, %v1250_v21  ;;  %v1416_v26 = vld [vmem:[%s1944_s1 + $0x4c] sm:$0xf]  ;;  %v1238_v27 = vld [vmem:[%s1944_s1 + $0x54] sm:$0xf0]  ;;  %v1237_v28 = vor.u32 %v1417_v25, %v1236_v24  ;;  %v1224_v30 = vld [vmem:[%s1944_s1 + $0x30] sm:$0xf] }
  0x17   : > { %459 = vmatpush.bf16.msra.mxu0 %v1273_v10  ;;  %1479 = vmatpush.bf16.msra.mxu2 %v1273_v10  ;;  %v1241_v29 = vor.u32 %v1416_v26, %v1238_v27  ;;  %v1414_v31 = vld [vmem:[%s1944_s1 + $0x38] sm:$0xf0]  ;;  %v1413_v32 = vld [vmem:[%s1944_s1 + $0x34] sm:$0xf]  ;;  %v1226_v33 = vld [vmem:[%s1944_s1 + $0x3c] sm:$0xf0] }
  0x18   : > { %488 = vmatpush.bf16.msra.mxu1 %v1277_v11  ;;  %1487 = vmatpush.bf16.msra.mxu3 %v1277_v11  ;;  %v1225_v34 = vor.u32 %v1414_v31, %v1224_v30  ;;  %v1229_v35 = vor.u32 %v1413_v32, %v1226_v33  ;;  %v1212_v36 = vld [vmem:[%s1944_s1 + $0x18] sm:$0xf]  ;;  %v1411_v37 = vld [vmem:[%s1944_s1 + $0x20] sm:$0xf0]  ;;  %s1956_s13 = smov (!%p253_p7, %s1178_s13), 15  ;;  %v1437_v14 = vld [vmem:[%s1945_s2 + $0x30] sm:$0xff] }
  0x19   : > { %v1410_v38 = vld [vmem:[%s1944_s1 + $0x1c] sm:$0xf]  ;;  %v1214_v39 = vld [vmem:[%s1944_s1 + $0x24] sm:$0xf0]  ;;  %v1213_v40 = vor.u32 %v1411_v37, %v1212_v36  ;;  %v1200_v42 = vld [vmem:[%s1944_s1] sm:$0xf] }
  0x1a   : > { %v1217_v41 = vor.u32 %v1410_v38, %v1214_v39  ;;  %v1408_v43 = vld [vmem:[%s1944_s1 + $0x8] sm:$0xf0]  ;;  %s1179_s17 = sshll.u32 %s1956_s13, 2  ;;  %v1407_v44 = vld [vmem:[%s1944_s1 + $0x4] sm:$0xf]  ;;  %v1438_v12 = vld [vmem:[%s1945_s2 + $0x38] sm:$0xff] }
  0x1b   : > { %460 = vmatpush.bf16.msra.mxu0 %v1261_v16  ;;  %1480 = vmatpush.bf16.msra.mxu2 %v1261_v16  ;;  %v1202_v45 = vld [vmem:[%s1944_s1 + $0xc] sm:$0xf0]  ;;  %v1430_v47 = vld [vmem:[%s1944_s1 + $0xb8] sm:$0xf0]  ;;  %v1201_v48 = vor.u32 %v1408_v43, %v1200_v42  ;;  %s1723_s10 = scalar_lea.vmem %s1943_s0, %s1179_s17  ;;  %v1280_v51 = vld [vmem:[%s1944_s1 + $0x98] sm:$0xf] }
  0x1c   : > { %489 = vmatpush.bf16.msra.mxu1 %v1265_v17  ;;  %1488 = vmatpush.bf16.msra.mxu3 %v1265_v17  ;;  %v1292_v46 = vld [vmem:[%s1944_s1 + $0xb0] sm:$0xf]  ;;  %v1205_v49 = vor.u32 %v1407_v44, %v1202_v45  ;;  %v1403_v52 = vld [vmem:[%s1723_s10] sm:$0xff]  ;;  %v1424_v57 = vld [vmem:[%s1944_s1 + $0x88] sm:$0xf0]  ;;  %s1494_s9 = smul.u32 12, %s1956_s13 }
  0x1d   : > { %v1293_v50 = vor.u32 %v1430_v47, %v1292_v46  ;;  %v1405_v53 = vld [vmem:[%s1723_s10 + $0x10] sm:$0xff]  ;;  %v1427_v54 = vld [vmem:[%s1944_s1 + $0xa0] sm:$0xf0]  ;;  %v1268_v56 = vld [vmem:[%s1944_s1 + $0x80] sm:$0xf]  ;;  %s1392_s24 = smul.u32 (%p1610_p4), 96, %s1598_s5 }
  0x1e   : > { %v1281_v55 = vor.u32 %v1427_v54, %v1280_v51  ;;  %v1269_v58 = vor.u32 %v1424_v57, %v1268_v56  ;;  %v1256_v59 = vld [vmem:[%s1944_s1 + $0x68] sm:$0xf]  ;;  %v1421_v60 = vld [vmem:[%s1944_s1 + $0x70] sm:$0xf0]  ;;  %v1244_v62 = vld [vmem:[%s1944_s1 + $0x50] sm:$0xf]  ;;  %s1835_s16 = scalar_lea.vmem %s1949_s6, %s1494_s9 }
  0x1f   : > { %461 = vmatpush.bf16.msra.mxu0 %v1249_v22  ;;  %1481 = vmatpush.bf16.msra.mxu2 %v1249_v22  ;;  %v1257_v61 = vor.u32 %v1421_v60, %v1256_v59  ;;  %v1418_v63 = vld [vmem:[%s1944_s1 + $0x58] sm:$0xf0]  ;;  %v1404_v0 = vld [vmem:[%s1723_s10 + $0x8] sm:$0xff]  ;;  %v1232_v3 = vld [vmem:[%s1944_s1 + $0x38] sm:$0xf]  ;;  %s1133_s17 = scalar_lea.vmem (%p1610_p4), %s1950_s7, %s1392_s24 }
  0x20   : > { %490 = vmatpush.bf16.msra.mxu1 %v1253_v23  ;;  %1489 = vmatpush.bf16.msra.mxu3 %v1253_v23  ;;  %v1245_v1 = vor.u32 %v1418_v63, %v1244_v62  ;;  %v1406_v2 = vld [vmem:[%s1723_s10 + $0x18] sm:$0xff]  ;;  %v1415_v4 = vld [vmem:[%s1944_s1 + $0x40] sm:$0xf0]  ;;  %v1220_v6 = vld [vmem:[%s1944_s1 + $0x20] sm:$0xf] }
  0x21   : > { %v1233_v5 = vor.u32 %v1415_v4, %v1232_v3  ;;  %v1412_v7 = vld [vmem:[%s1944_s1 + $0x28] sm:$0xf0]  ;;  %v1208_v9 = vld [vmem:[%s1944_s1 + $0x8] sm:$0xf]  ;;  %v1409_v10 = vld [vmem:[%s1944_s1 + $0x10] sm:$0xf0] }
  0x22   : > { %v1221_v8 = vor.u32 %v1412_v7, %v1220_v6  ;;  %v1209_v11 = vor.u32 %v1409_v10, %v1208_v9  ;;  %v1446_v13 = vld [vmem:[%s1945_s2 + $0x78] sm:$0xff]  ;;  %v1445_v15 = vld [vmem:[%s1945_s2 + $0x70] sm:$0xff]  ;;  %v1436_v16 = vld [vmem:[%s1945_s2 + $0x28] sm:$0xff] }
  0x23   : > { %462 = vmatpush.bf16.msra.mxu0 %v1237_v28  ;;  %1482 = vmatpush.bf16.msra.mxu2 %v1237_v28  ;;  %v1444_v17 = vld [vmem:[%s1945_s2 + $0x68] sm:$0xff]  ;;  %v1435_v18 = vld [vmem:[%s1945_s2 + $0x20] sm:$0xff]  ;;  %v1434_v20 = vld [vmem:[%s1945_s2 + $0x18] sm:$0xff] }
  0x24   : > { %491 = vmatpush.bf16.msra.mxu1 %v1241_v29  ;;  %1490 = vmatpush.bf16.msra.mxu3 %v1241_v29  ;;  %v1443_v19 = vld [vmem:[%s1945_s2 + $0x60] sm:$0xff]  ;;  %v1442_v21 = vld [vmem:[%s1945_s2 + $0x58] sm:$0xff]  ;;  %v1433_v22 = vld [vmem:[%s1945_s2 + $0x10] sm:$0xff] }
  0x25   : > { %v1441_v23 = vld [vmem:[%s1945_s2 + $0x50] sm:$0xff]  ;;  %v1432_v24 = vld [vmem:[%s1945_s2 + $0x8] sm:$0xff]  ;;  %v1431_v26 = vld [vmem:[%s1945_s2] sm:$0xff] }
  0x26   : > { %v1440_v25 = vld [vmem:[%s1945_s2 + $0x48] sm:$0xff]  ;;  %v1439_v27 = vld [vmem:[%s1945_s2 + $0x40] sm:$0xff]  ;;  %v1454_v28 = vld [vmem:[%s1945_s2 + $0xb8] sm:$0xff] }
  0x27   : > { %463 = vmatpush.bf16.msra.mxu0 %v1225_v34  ;;  %1483 = vmatpush.bf16.msra.mxu2 %v1225_v34  ;;  %v1453_v29 = vld [vmem:[%s1945_s2 + $0xb0] sm:$0xff]  ;;  %v1452_v30 = vld [vmem:[%s1945_s2 + $0xa8] sm:$0xff]  ;;  %v1451_v33 = vld [vmem:[%s1945_s2 + $0xa0] sm:$0xff] }
  0x28   : > { %492 = vmatpush.bf16.msra.mxu1 %v1229_v35  ;;  %1491 = vmatpush.bf16.msra.mxu3 %v1229_v35  ;;  %v1450_v35 = vld [vmem:[%s1945_s2 + $0x98] sm:$0xff]  ;;  %v1448_v45 = vld [vmem:[%s1945_s2 + $0x88] sm:$0xff] }
  0x2b   : > { %464 = vmatpush.bf16.msra.mxu0 %v1213_v40  ;;  %1484 = vmatpush.bf16.msra.mxu2 %v1213_v40 }
  0x2c   : > { %493 = vmatpush.bf16.msra.mxu1 %v1217_v41  ;;  %1492 = vmatpush.bf16.msra.mxu3 %v1217_v41  ;;  %v1449_v41 = vld [vmem:[%s1945_s2 + $0x90] sm:$0xff] }
  0x2f   : > { %465 = vmatpush.bf16.msra.mxu0 %v1201_v48  ;;  %1485 = vmatpush.bf16.msra.mxu2 %v1201_v48 }
  0x30   : > { %494 = vmatpush.bf16.msra.mxu1 %v1205_v49  ;;  %1493 = vmatpush.bf16.msra.mxu3 %v1205_v49 }
  0x32   : > { %466 = vmatmul.bf16.vlgmr.msra.gmra.mxu0 %v1403_v52  ;;  %476 = vmatmul.bf16.vlgmr.msra.gmra.mxu2 %v1405_v53 }
  0x33   : > { %516 = vmatpush.bf16.msrb.mxu2 %v1293_v50  ;;  %495 = vmatmul.bf16.vlgmr.msra.gmra.mxu1 %v1403_v52 }
  0x34   : > { %505 = vmatmul.bf16.vlgmr.msra.gmra.mxu3 %v1405_v53  ;;  %862 = vmatpush.bf16.msrb.mxu0 %v1446_v13 }
  0x35   : > { %833 = vmatpush.bf16.msrb.mxu3 %v1438_v12  ;;  %891 = vmatpush.bf16.msrb.mxu1 %v1454_v28 }
  0x37   : > { %517 = vmatpush.bf16.msrb.mxu2 %v1281_v55  ;;  %v1447_v55 = vld [vmem:[%s1945_s2 + $0x80] sm:$0xff] }
  0x38   : > { %863 = vmatpush.bf16.msrb.mxu0 %v1445_v15 }
  0x39   : > { %834 = vmatpush.bf16.msrb.mxu3 %v1437_v14  ;;  %892 = vmatpush.bf16.msrb.mxu1 %v1453_v29 }
  0x3b   : > { %518 = vmatpush.bf16.msrb.mxu2 %v1269_v58 }
  0x3c   : > { %864 = vmatpush.bf16.msrb.mxu0 %v1444_v17 }
  0x3d   : > { %835 = vmatpush.bf16.msrb.mxu3 %v1436_v16  ;;  %893 = vmatpush.bf16.msrb.mxu1 %v1452_v30 }
  0x3f   : > { %519 = vmatpush.bf16.msrb.mxu2 %v1257_v61 }
  0x40   : > { %865 = vmatpush.bf16.msrb.mxu0 %v1443_v19 }
  0x41   : > { %836 = vmatpush.bf16.msrb.mxu3 %v1435_v18  ;;  %894 = vmatpush.bf16.msrb.mxu1 %v1451_v33 }
  0x42   : > { %471 = vmatmul.bf16.gmra.mxu0 %v1404_v0  ;;  %481 = vmatmul.bf16.gmra.mxu2 %v1406_v2 }
  0x43   : > { %520 = vmatpush.bf16.msrb.mxu2 %v1245_v1  ;;  %500 = vmatmul.bf16.gmra.mxu1 %v1404_v0 }
  0x44   : > { %510 = vmatmul.bf16.gmra.mxu3 %v1406_v2  ;;  %866 = vmatpush.bf16.msrb.mxu0 %v1442_v21 }
  0x45   : > { %837 = vmatpush.bf16.msrb.mxu3 %v1434_v20  ;;  %895 = vmatpush.bf16.msrb.mxu1 %v1450_v35 }
  0x47   : > { %521 = vmatpush.bf16.msrb.mxu2 %v1233_v5 }
  0x48   : > { %867 = vmatpush.bf16.msrb.mxu0 %v1441_v23 }
  0x49   : > { %838 = vmatpush.bf16.msrb.mxu3 %v1433_v22  ;;  %896 = vmatpush.bf16.msrb.mxu1 %v1449_v41 }
  0x4b   : > { %522 = vmatpush.bf16.msrb.mxu2 %v1221_v8 }
  0x4c   : > { %868 = vmatpush.bf16.msrb.mxu0 %v1440_v25 }
  0x4d   : > { %839 = vmatpush.bf16.msrb.mxu3 %v1432_v24  ;;  %897 = vmatpush.bf16.msrb.mxu1 %v1448_v45 }
  0x4f   : > { %523 = vmatpush.bf16.msrb.mxu2 %v1209_v11 }
  0x50   : > { %869 = vmatpush.bf16.msrb.mxu0 %v1439_v27 }
  0x51   : > { %840 = vmatpush.bf16.msrb.mxu3 %v1431_v26  ;;  %898 = vmatpush.bf16.msrb.mxu1 %v1447_v55 }
  0x52   : > { %524 = vmatmul.bf16.vlgmr.msrb.gmra.mxu2 %v1403_v52 }
  0x62   : > { %529 = vmatmul.bf16.gmra.mxu2 %v1404_v0 }
  0x72   : > { %534 = vmatmul.bf16.gmra.mxu2 %v1405_v53 }
  0x82   : > { %539 = vmatmul.bf16.gmra.mxu2 %v1406_v2 }
  0xaf   : > { %v467_v31 = vpop.f32.mrf.mxu0 }
  0xb0   : > { %v496_v32 = vpop.f32.mrf.mxu1 }
  0xb1   : > { %v545_v34 = vpack.c.bf16 %v496_v32, %v467_v31 }
  0xb3   : > { %561 = vst [vmem:[%s1835_s16] sm:$0xff] %v545_v34  ;;  %v641_v42 = vunpack.c.l.b16 %v545_v34  ;;  %v642_v43 = vunpack.c.h.b16 %v545_v34 }
  0xb5   : > { %v477_v36 = vpop.f32.mrf.mxu2 }
  0xb7   : > { %v506_v37 = vpop.f32.mrf.mxu3  ;;  %v469_v39 = vpop.f32.mrf.mxu0 }
  0xb8   : > { %v553_v38 = vpack.c.bf16 %v506_v37, %v477_v36  ;;  %v498_v40 = vpop.f32.mrf.mxu1 }
  0xb9   : > { %v547_v44 = vpack.c.bf16 %v498_v40, %v469_v39 }
  0xba   : > { %569 = vst [vmem:[%s1835_s16 + $0x30] sm:$0xff] %v553_v38  ;;  %v653_v12 = vunpack.c.l.b16 %v553_v38  ;;  %v654_v13 = vunpack.c.h.b16 %v553_v38 }
  0xbb   : > { %563 = vst [vmem:[%s1835_s16 + $0xc] sm:$0xff] %v547_v44  ;;  %v644_v46 = vunpack.c.l.b16 %v547_v44  ;;  %v645_v47 = vunpack.c.h.b16 %v547_v44 }
  0xbd   : > { %v479_v48 = vpop.f32.mrf.mxu2  ;;  %v665_v49 = vpack.c.b16 %v644_v46, %v641_v42  ;;  %v666_v50 = vpack.c.b16 %v645_v47, %v642_v43 }
  0xbf   : > { %v508_v51 = vpop.f32.mrf.mxu3  ;;  %841 = vmatmul.bf16.vlgmr.msrb.gmra.mxu3 %v665_v49  ;;  %870 = vmatmul.bf16.vlgmr.msrb.gmra.mxu0 %v666_v50  ;;  %v472_v53 = vpop.f32.mrf.mxu0 }
  0xc0   : > { %v555_v52 = vpack.c.bf16 %v508_v51, %v479_v48  ;;  %v501_v54 = vpop.f32.mrf.mxu1 }
  0xc1   : > { %v549_v56 = vpack.c.bf16 %v501_v54, %v472_v53  ;;  %v953_v54 = vlaneseq }
  0xc2   : > { %571 = vst [vmem:[%s1835_s16 + $0x3c] sm:$0xff] %v555_v52  ;;  %v656_v10 = vunpack.c.l.b16 %v555_v52  ;;  %v657_v11 = vunpack.c.h.b16 %v555_v52 }
  0xc3   : > { %565 = vst [vmem:[%s1835_s16 + $0x18] sm:$0xff] %v549_v56  ;;  %v647_v63 = vunpack.c.l.b16 %v549_v56  ;;  %v648_v0 = vunpack.c.h.b16 %v549_v56  ;;  %v1868_v56 = vld [vmem:[%s1946_s3] ss:$0 sm:$0xff] }
  0xc4   : > { %v671_v15 = vpack.c.b16 %v656_v10, %v653_v12  ;;  %v672_v16 = vpack.c.b16 %v657_v11, %v654_v13 }
  0xc5   : > { %v482_v57 = vpop.f32.mrf.mxu2 }
  0xc7   : > { %v511_v58 = vpop.f32.mrf.mxu3  ;;  %v474_v60 = vpop.f32.mrf.mxu0 }
  0xc8   : > { %v557_v59 = vpack.c.bf16 %v511_v58, %v482_v57  ;;  %v503_v61 = vpop.f32.mrf.mxu1 }
  0xc9   : > { %v551_v62 = vpack.c.bf16 %v503_v61, %v474_v60  ;;  %v1877_v61 = vld [vmem:[%s1947_s4] ss:$0 sm:$0xff] }
  0xca   : > { %573 = vst [vmem:[%s1835_s16 + $0x48] sm:$0xff] %v557_v59  ;;  %v659_v25 = vunpack.c.l.b16 %v557_v59  ;;  %v660_v26 = vunpack.c.h.b16 %v557_v59  ;;  %v1871_v59 = vshrl.u32 %v953_v54, 7 }
  0xcb   : > { %567 = vst [vmem:[%s1835_s16 + $0x24] sm:$0xff] %v551_v62  ;;  %v650_v1 = vunpack.c.l.b16 %v551_v62  ;;  %v651_v2 = vunpack.c.h.b16 %v551_v62 }
  0xcc   : > { %v955_v62 = vadd.s32 8, %v1871_v59 }
  0xcd   : > { %v484_v3 = vpop.f32.mrf.mxu2  ;;  %v668_v4 = vpack.c.b16 %v650_v1, %v647_v63  ;;  %v669_v5 = vpack.c.b16 %v651_v2, %v648_v0  ;;  %v1880_v0 = vstv %s1390_s28 }
  0xcf   : > { %v513_v6 = vpop.f32.mrf.mxu3  ;;  %846 = vmatmul.bf16.gmra.mxu3 %v668_v4  ;;  %875 = vmatmul.bf16.gmra.mxu0 %v669_v5  ;;  %v963_v4 = vadd.s32 %v1880_v0, %v1871_v59  ;;  %v964_v5 = vadd.s32 %v1880_v0, %v955_v62 }
  0xd0   : > { %v559_v7 = vpack.c.bf16 %v513_v6, %v484_v3 }
  0xd1   : > { %vm971_vm0 = vcmp.lt.s32.totalorder %v963_v4, 64  ;;  %vm972_vm1 = vcmp.lt.s32.totalorder %v964_v5, 64  ;;  %v960_v5 = vadd.s32 48, %v1871_v59 }
  0xd2   : > { %575 = vst [vmem:[%s1835_s16 + $0x54] sm:$0xff] %v559_v7  ;;  %v662_v23 = vunpack.c.l.b16 %v559_v7  ;;  %v663_v24 = vunpack.c.h.b16 %v559_v7 }
  0xd4   : > { %v674_v28 = vpack.c.b16 %v662_v23, %v659_v25  ;;  %v675_v29 = vpack.c.b16 %v663_v24, %v660_v26 }
  0xd5   : > { %v525_v8 = vpop.f32.mrf.mxu2 }
  0xd6   : > { %v546_v9 = vpack.c.bf16 %v525_v8, %v525_v8 }
  0xd8   : > { %562 = vst [vmem:[%s1835_s16 + $0x8] sm:$0xf] %v546_v9  ;;  %v643_v18 = vunpack.c.l.b16 %v546_v9 }
  0xdd   : > { %v527_v14 = vpop.f32.mrf.mxu2 }
  0xde   : > { %v548_v17 = vpack.c.bf16 %v527_v14, %v527_v14 }
  0xdf   : > { %851 = vmatmul.bf16.gmra.mxu3 %v671_v15  ;;  %880 = vmatmul.bf16.gmra.mxu0 %v672_v16 }
  0xe0   : > { %564 = vst [vmem:[%s1835_s16 + $0x14] sm:$0xf] %v548_v17  ;;  %v646_v19 = vunpack.c.l.b16 %v548_v17 }
  0xe2   : > { %v667_v20 = vpack.c.b16 %v646_v19, %v643_v18 }
  0xe4   : > { %899 = vmatmul.bf16.vlgmr.msrb.gmra.mxu1 %v667_v20  ;;  %v956_v20 = vadd.s32 16, %v1871_v59 }
  0xe5   : > { %v530_v21 = vpop.f32.mrf.mxu2 }
  0xe6   : > { %v550_v22 = vpack.c.bf16 %v530_v21, %v530_v21  ;;  %v957_v21 = vadd.s32 24, %v1871_v59 }
  0xe8   : > { %566 = vst [vmem:[%s1835_s16 + $0x20] sm:$0xf] %v550_v22  ;;  %v649_v31 = vunpack.c.l.b16 %v550_v22 }
  0xed   : > { %v532_v27 = vpop.f32.mrf.mxu2 }
  0xee   : > { %v552_v30 = vpack.c.bf16 %v532_v27, %v532_v27  ;;  %v965_v27 = vadd.s32 %v1880_v0, %v956_v20 }
  0xef   : > { %856 = vmatmul.bf16.gmra.mxu3 %v674_v28  ;;  %885 = vmatmul.bf16.gmra.mxu0 %v675_v29  ;;  %v966_v28 = vadd.s32 %v1880_v0, %v957_v21 }
  0xf0   : > { %568 = vst [vmem:[%s1835_s16 + $0x2c] sm:$0xf] %v552_v30  ;;  %v652_v32 = vunpack.c.l.b16 %v552_v30  ;;  %vm973_vm2 = vcmp.lt.s32.totalorder %v965_v27, 64 }
  0xf1   : > { %vm974_vm3 = vcmp.lt.s32.totalorder %v966_v28, 64 }
  0xf2   : > { %v670_v33 = vpack.c.b16 %v652_v32, %v649_v31 }
  0xf4   : > { %904 = vmatmul.bf16.gmra.mxu1 %v670_v33 }
  0xf5   : > { %v535_v34 = vpop.f32.mrf.mxu2 }
  0xf6   : > { %v554_v35 = vpack.c.bf16 %v535_v34, %v535_v34 }
  0xf8   : > { %570 = vst [vmem:[%s1835_s16 + $0x38] sm:$0xf] %v554_v35  ;;  %v655_v38 = vunpack.c.l.b16 %v554_v35 }
  0xfd   : > { %v537_v36 = vpop.f32.mrf.mxu2 }
  0xfe   : > { %v556_v37 = vpack.c.bf16 %v537_v36, %v537_v36 }
 0x100   : > { %572 = vst [vmem:[%s1835_s16 + $0x44] sm:$0xf] %v556_v37  ;;  %v658_v39 = vunpack.c.l.b16 %v556_v37 }
 0x102   : > { %v673_v40 = vpack.c.b16 %v658_v39, %v655_v38 }
 0x104   : > { %909 = vmatmul.bf16.gmra.mxu1 %v673_v40 }
 0x105   : > { %v540_v41 = vpop.f32.mrf.mxu2 }
 0x106   : > { %v558_v42 = vpack.c.bf16 %v540_v41, %v540_v41 }
 0x108   : > { %574 = vst [vmem:[%s1835_s16 + $0x50] sm:$0xf] %v558_v42  ;;  %v661_v45 = vunpack.c.l.b16 %v558_v42  ;;  %v958_v42 = vadd.s32 32, %v1871_v59 }
 0x10d   : > { %v542_v43 = vpop.f32.mrf.mxu2 }
 0x10e   : > { %v560_v44 = vpack.c.bf16 %v542_v43, %v542_v43  ;;  %v959_v43 = vadd.s32 40, %v1871_v59 }
 0x110   : > { %576 = vst [vmem:[%s1835_s16 + $0x5c] sm:$0xf] %v560_v44  ;;  %v664_v46 = vunpack.c.l.b16 %v560_v44 }
 0x112   : > { %v676_v47 = vpack.c.b16 %v664_v46, %v661_v45 }
 0x114   : > { %914 = vmatmul.bf16.gmra.mxu1 %v676_v47 }
 0x13c   : > { %v871_v49 = vpop.f32.mrf.mxu0 }
 0x142   : > { %v842_v48 = vpop.f32.mrf.mxu3 }
 0x143   : > { %v872_v52 = vadd.f32 %v871_v49, %v842_v48  ;;  %v967_v49 = vadd.s32 %v1880_v0, %v958_v42 }
 0x144   : > { %v873_v51 = vpop.f32.mrf.mxu0 }
 0x145   : > { %vm975_vm4 = vcmp.lt.s32.totalorder %v967_v49, 64 }
 0x14a   : > { %v844_v50 = vpop.f32.mrf.mxu3 }
 0x14b   : > { %v874_v63 = vadd.f32 %v873_v51, %v844_v50  ;;  %v968_v50 = vadd.s32 %v1880_v0, %v959_v43 }
 0x14c   : > { %v876_v58 = vpop.f32.mrf.mxu0 }
 0x14d   : > { %vm976_vm5 = vcmp.lt.s32.totalorder %v968_v50, 64 }
 0x152   : > { %v847_v57 = vpop.f32.mrf.mxu3 }
 0x153   : > { %v877_v11 = vadd.f32 %v876_v58, %v847_v57 }
 0x154   : > { %v878_v10 = vpop.f32.mrf.mxu0 }
 0x15a   : > { %v849_v7 = vpop.f32.mrf.mxu3 }
 0x15b   : > { %v879_v22 = vadd.f32 %v878_v10, %v849_v7 }
 0x15c   : > { %v881_v23 = vpop.f32.mrf.mxu0 }
 0x161   : > { %v900_v53 = vpop.f32.mrf.mxu1 }
 0x162   : > { %v901_v55 = vadd.f32 %v900_v53, %v872_v52  ;;  %v852_v19 = vpop.f32.mrf.mxu3 }
 0x163   : > { %v882_v32 = vadd.f32 %v881_v23, %v852_v19 }
 0x164   : > { %v924_v60 = vmul.f32 %v1868_v56, %v901_v55  ;;  %v883_v39 = vpop.f32.mrf.mxu0 }
 0x166   : > { %v936_v2 = vadd.f32 %v1877_v61, %v924_v60 }
 0x168   : > { %v944_v8 = vmax.f32 %v936_v2, 0.0 }
 0x169   : > { %v902_v1 = vpop.f32.mrf.mxu1 }
 0x16a   : > { %v903_v3 = vadd.f32 %v902_v1, %v874_v63  ;;  %v979_v14 = vsel %vm971_vm0, %v944_v8, 0.0  ;;  %v854_v34 = vpop.f32.mrf.mxu3 }
 0x16b   : > { %v884_v44 = vadd.f32 %v883_v39, %v854_v34 }
 0x16c   : > { %v925_v6 = vmul.f32 %v1868_v56, %v903_v3  ;;  %v886_v52 = vpop.f32.mrf.mxu0 }
 0x16e   : > { %v937_v9 = vadd.f32 %v1877_v61, %v925_v6  ;;  %v961_v6 = vadd.s32 56, %v1871_v59 }
 0x170   : > { %v945_v12 = vmax.f32 %v937_v9, 0.0 }
 0x171   : > { %v905_v13 = vpop.f32.mrf.mxu1 }
 0x172   : > { %v980_v15 = vsel %vm972_vm1, %v945_v12, 0.0  ;;  %v906_v16 = vadd.f32 %v905_v13, %v877_v11  ;;  %v857_v48 = vpop.f32.mrf.mxu3  ;;  %v969_v11 = vadd.s32 %v1880_v0, %v960_v5  ;;  %v970_v12 = vadd.s32 %v1880_v0, %v961_v6 }
 0x173   : > { %v1458_v17 = vpack.c.bf16 %v980_v15, %v979_v14  ;;  %v887_v55 = vadd.f32 %v886_v52, %v857_v48 }
 0x174   : > { %v926_v18 = vmul.f32 %v1868_v56, %v906_v16  ;;  %v888_v4 = vpop.f32.mrf.mxu0  ;;  %vm977_vm6 = vcmp.lt.s32.totalorder %v969_v11, 64  ;;  %vm978_vm7 = vcmp.lt.s32.totalorder %v970_v12, 64 }
 0x175   : > { %1459 = vst [vmem:[%s1889_s14] sm:$0xff] %v1458_v17  }
 0x176   : > { %v938_v25 = vadd.f32 %v1877_v61, %v926_v18 }
 0x178   : > { %v946_v30 = vmax.f32 %v938_v25, 0.0 }
 0x179   : > { %v907_v24 = vpop.f32.mrf.mxu1 }
 0x17a   : > { %v908_v26 = vadd.f32 %v907_v24, %v879_v22  ;;  %v981_v36 = vsel %vm973_vm2, %v946_v30, 0.0  ;;  %v859_v2 = vpop.f32.mrf.mxu3 }
 0x17b   : > { %v889_v7 = vadd.f32 %v888_v4, %v859_v2 }
 0x17c   : > { %v927_v29 = vmul.f32 %v1868_v56, %v908_v26 }
 0x17e   : > { %v939_v31 = vadd.f32 %v1877_v61, %v927_v29 }
 0x180   : > { %v947_v33 = vmax.f32 %v939_v31, 0.0 }
 0x181   : > { %v910_v35 = vpop.f32.mrf.mxu1 }
 0x182   : > { %v982_v37 = vsel %vm974_vm3, %v947_v33, 0.0  ;;  %v911_v38 = vadd.f32 %v910_v35, %v882_v32 }
 0x183   : > { %v1463_v40 = vpack.c.bf16 %v982_v37, %v981_v36 }
 0x184   : > { %v928_v41 = vmul.f32 %v1868_v56, %v911_v38 }
 0x185   : > { %1475 = vst [vmem:[%s1889_s14 + $0x8] sm:$0xff] %v1463_v40  }
 0x186   : > { %v940_v46 = vadd.f32 %v1877_v61, %v928_v41 }
 0x188   : > { %v948_v53 = vmax.f32 %v940_v46, 0.0 }
 0x189   : > { %v912_v45 = vpop.f32.mrf.mxu1 }
 0x18a   : > { %v913_v47 = vadd.f32 %v912_v45, %v884_v44  ;;  %v983_v60 = vsel %vm975_vm4, %v948_v53, 0.0 }
 0x18c   : > { %v929_v51 = vmul.f32 %v1868_v56, %v913_v47  ;;  %v1045_v0 = vld [vmem:[%s1889_s14 + $0x8] sm:$0xf] (%p1610_p4)  ;;  %v1047_v19 = vld [vmem:[%s1889_s14 + $0xc] sm:$0xf] (%p1610_p4) }
 0x18d   : > { %1395 = vst [vmem:[%s1133_s17 + $0x1c] sm:$0xf] (%p1610_p4), %v1045_v0 }
 0x18e   : > { %v941_v54 = vadd.f32 %v1877_v61, %v929_v51  ;;  %1396 = vst [vmem:[%s1133_s17 + $0x28] sm:$0xf] (%p1610_p4), %v1047_v19 }
 0x190   : > { %v949_v57 = vmax.f32 %v941_v54, 0.0 }
 0x191   : > { %v915_v58 = vpop.f32.mrf.mxu1 }
 0x192   : > { %v984_v62 = vsel %vm976_vm5, %v949_v57, 0.0  ;;  %v916_v63 = vadd.f32 %v915_v58, %v887_v55 }
 0x193   : > { %v1468_v1 = vpack.c.bf16 %v984_v62, %v983_v60 }
 0x194   : > { %v930_v3 = vmul.f32 %v1868_v56, %v916_v63 }
 0x195   : > { %1476 = vst [vmem:[%s1889_s14 + $0x10] sm:$0xff] %v1468_v1  }
 0x196   : > { %v942_v9 = vadd.f32 %v1877_v61, %v930_v3 }
 0x198   : > { %v950_v14 = vmax.f32 %v942_v9, 0.0 }
 0x199   : > { %v917_v8 = vpop.f32.mrf.mxu1 }
 0x19a   : > { %v918_v10 = vadd.f32 %v917_v8, %v889_v7  ;;  %v985_v17 = vsel %vm977_vm6, %v950_v14, 0.0 }
 0x19c   : > { %v931_v13 = vmul.f32 %v1868_v56, %v918_v10  ;;  %v1041_v56 = vld [vmem:[%s1889_s14] sm:$0xf] (%p1610_p4)  ;;  %v1049_v20 = vld [vmem:[%s1889_s14 + $0x10] sm:$0xf] (%p1610_p4)  ;;  %v1051_v21 = vld [vmem:[%s1889_s14 + $0x14] sm:$0xf] (%p1610_p4) }
 0x19d   : > { %1393 = vst [vmem:[%s1133_s17 + $0x4] sm:$0xf] (%p1610_p4), %v1041_v56 }
 0x19e   : > { %v943_v15 = vadd.f32 %v1877_v61, %v931_v13  ;;  %v1043_v61 = vld [vmem:[%s1889_s14 + $0x4] sm:$0xf] (%p1610_p4)  ;;  %1397 = vst [vmem:[%s1133_s17 + $0x34] sm:$0xf] (%p1610_p4), %v1049_v20 }
 0x19f   : > { %1394 = vst [vmem:[%s1133_s17 + $0x10] sm:$0xf] (%p1610_p4), %v1043_v61 }
 0x1a0   : > { %v951_v16 = vmax.f32 %v943_v15, 0.0  ;;  %1398 = vst [vmem:[%s1133_s17 + $0x40] sm:$0xf] (%p1610_p4), %v1051_v21 }
 0x1a1   : > { %1019 = sbr.rel (!%p1610_p4) target bundleno = 431 (0x1af), region = 48 }
 0x1a2   : > { %v986_v59 = vsel %vm978_vm7, %v951_v16, 0.0 }
 0x1a3   : > { %v1473_v18 = vpack.c.bf16 %v986_v59, %v985_v17 }
 0x1a5   : > { %1477 = vst [vmem:[%s1889_s14 + $0x18] sm:$0xff] %v1473_v18  }
 0x1ac   : > { %v1053_v22 = vld [vmem:[%s1889_s14 + $0x18] sm:$0xf]  ;;  %v1055_v23 = vld [vmem:[%s1889_s14 + $0x1c] sm:$0xf] }
 0x1ad   : > { %1399 = vst [vmem:[%s1133_s17 + $0x4c] sm:$0xf] %v1053_v22 }
 0x1ae   : > { %1400 = vst [vmem:[%s1133_s17 + $0x58] sm:$0xf] %v1055_v23 }
 0x1af PF: > { %p15_p8 = scmp.ge.s32.totalorder %s1600_s27, 4   ;;  %s1952_s24 = smov %s1539_s25 }
 0x1b0   : > { %s1953_s25 = smov %s1608_s30  ;;  %s1954_s26 = smov %s1600_s27 }
 0x1b1   :  { %17 = sbr.rel (!%p15_p8) target bundleno = 2 (0x2), region = 123 }

</bundles_post_ra>
